<compile_context>
chip_gen: v5e
topology: v5e:2x2
jax: 0.10.0
libtpu: 0.0.40
codegen_flags: <defaults>
</compile_context>

<pallas_src>
import jax
import jax.numpy as jnp
from jax import lax
from jax.experimental import pallas as pl
from jax.experimental.pallas import tpu as pltpu


# ---------------------------------------------------------------------------
# 1) Input projection: gates_x = x @ W_ih + b  for all timesteps at once.
#    x2d: (N, D) bf16, w_ih: (D, 4H) bf16, b: (1, 4H) f32 -> (N, 4H) bf16
# ---------------------------------------------------------------------------
def _input_proj_kernel(x_ref, w_ref, b_ref, o_ref):
    acc = jnp.dot(x_ref[...], w_ref[...], preferred_element_type=jnp.float32)
    o_ref[...] = (acc + b_ref[...]).astype(o_ref.dtype)


def input_projection(x2d, w_ih, b, *, tn=256):
    N, D = x2d.shape
    G = w_ih.shape[1]
    tn = min(tn, N)
    assert N % tn == 0, "row count must be a multiple of the row tile"
    return pl.pallas_call(
        _input_proj_kernel,
        out_shape=jax.ShapeDtypeStruct((N, G), jnp.bfloat16),
        grid_spec=pltpu.PrefetchScalarGridSpec(
            num_scalar_prefetch=0,
            grid=(N // tn,),
            in_specs=[
                pl.BlockSpec((tn, D), lambda i: (i, 0)),
                pl.BlockSpec((D, G), lambda i: (0, 0)),
                pl.BlockSpec((1, G), lambda i: (0, 0)),
            ],
            out_specs=pl.BlockSpec((tn, G), lambda i: (i, 0)),
        ),
        compiler_params=pltpu.CompilerParams(
            dimension_semantics=("parallel",)),   # embarrassingly parallel
    )(x2d, w_ih, b)


# ---------------------------------------------------------------------------
# 2) LSTM recurrence: time loop INSIDE the kernel; grid only over time chunks.
#    Gate order [i, f, o, g]: one sigmoid over the first 3H cols, tanh on last H.
# ---------------------------------------------------------------------------
def _lstm_rec_kernel(gx_ref, whh_ref,
                     hseq_ref, hfin_ref, cfin_ref,
                     h_sc, c_sc):
    chunk = pl.program_id(0)

    @pl.when(chunk == 0)
    def _init():
        h_sc[...] = jnp.zeros_like(h_sc)
        c_sc[...] = jnp.zeros_like(c_sc)

    tc = gx_ref.shape[0]
    H = h_sc.shape[1]
    whh = whh_ref[...]                               # hoisted weight load (bf16)

    def step(t, carry):
        del carry
        gates = (gx_ref[t].astype(jnp.float32)       # precomputed x@W_ih + b
                 + jnp.dot(h_sc[...].astype(whh.dtype), whh,
                           preferred_element_type=jnp.float32))    # (B, 4H) f32
        sig = jax.nn.sigmoid(gates[:, :3 * H])       # one wide sigmoid (i, f, o)
        i_g = sig[:, 0 * H:1 * H]
        f_g = sig[:, 1 * H:2 * H]
        o_g = sig[:, 2 * H:3 * H]
        g_g = jnp.tanh(gates[:, 3 * H:])             # one tanh (g)
        c_new = f_g * c_sc[...] + i_g * g_g
        h_new = o_g * jnp.tanh(c_new)
        c_sc[...] = c_new
        h_sc[...] = h_new
        hseq_ref[t] = h_new.astype(hseq_ref.dtype)
        return 0

    lax.fori_loop(0, tc, step, 0, unroll=(tc <= 16))

    @pl.when(chunk == pl.num_programs(0) - 1)        # write finals once
    def _finalize():
        hfin_ref[...] = h_sc[...]
        cfin_ref[...] = c_sc[...]


def lstm_recurrence(gates_x, w_hh, *, t_chunk=None):
    """gates_x: (T, B, 4H) bf16 pre-activations (x@W_ih + b); w_hh: (H, 4H) bf16."""
    T, B, G = gates_x.shape
    H = w_hh.shape[0]
    tc = T if t_chunk is None else t_chunk
    assert T % tc == 0, "T must be a multiple of the time chunk"
    out_shapes = (
        jax.ShapeDtypeStruct((T, B, H), jnp.bfloat16),   # h sequence (next layer input)
        jax.ShapeDtypeStruct((B, H), jnp.float32),       # final h
        jax.ShapeDtypeStruct((B, H), jnp.float32),       # final c
    )
    return pl.pallas_call(
        _lstm_rec_kernel,
        out_shape=out_shapes,
        grid_spec=pltpu.PrefetchScalarGridSpec(
            num_scalar_prefetch=0,
            grid=(T // tc,),
            in_specs=[
                pl.BlockSpec((tc, B, G), lambda i: (i, 0, 0)),
                pl.BlockSpec((H, G), lambda i: (0, 0)),
            ],
            out_specs=[
                pl.BlockSpec((tc, B, H), lambda i: (i, 0, 0)),
                pl.BlockSpec((B, H), lambda i: (0, 0)),
                pl.BlockSpec((B, H), lambda i: (0, 0)),
            ],
            scratch_shapes=[
                pltpu.VMEM((B, H), jnp.float32),
                pltpu.VMEM((B, H), jnp.float32),
            ],
        ),
        compiler_params=pltpu.CompilerParams(
            dimension_semantics=("arbitrary",)),   # recurrence: must stay sequential
    )(gates_x, w_hh)


# ---------------------------------------------------------------------------
# 3) Decoder: logits = h @ E^T against the *untransposed* tied embedding,
#    tiled over (rows, vocab). No (E, V) transpose ever materialized.
# ---------------------------------------------------------------------------
def _decoder_kernel(x_ref, w_ref, o_ref):
    o_ref[...] = lax.dot_general(
        x_ref[...], w_ref[...],
        dimension_numbers=(((1,), (1,)), ((), ())),   # contract hidden dim
        preferred_element_type=jnp.float32).astype(o_ref.dtype)


def decoder_matmul(x2d, emb_w, *, tn=256, tv=512):
    """x2d: (N, H) bf16; emb_w: (V, H) bf16 -> logits (N, V) f32."""
    N, H = x2d.shape
    V = emb_w.shape[0]
    tn = min(tn, N)
    tv = min(tv, V)
    assert N % tn == 0 and V % tv == 0
    return pl.pallas_call(
        _decoder_kernel,
        out_shape=jax.ShapeDtypeStruct((N, V), jnp.float32),
        grid_spec=pltpu.PrefetchScalarGridSpec(
            num_scalar_prefetch=0,
            grid=(N // tn, V // tv),
            in_specs=[
                pl.BlockSpec((tn, H), lambda i, j: (i, 0)),
                pl.BlockSpec((tv, H), lambda i, j: (j, 0)),
            ],
            out_specs=pl.BlockSpec((tn, tv), lambda i, j: (i, j)),
        ),
        compiler_params=pltpu.CompilerParams(
            dimension_semantics=("parallel", "parallel")),
        # TODO(synk): for very large H, add a K-tiling ("arbitrary") axis with a
        # VMEM accumulator; not needed at these hidden sizes.
    )(x2d, emb_w)


# ---------------------------------------------------------------------------
# Full model forward (embedding gather is glue; matmuls/gates are in Pallas).
# ---------------------------------------------------------------------------
@jax.jit
def rnn_language_model_forward(tokens, params):
    emb_w = params["emb_weight"]                       # (V, E) bf16, tied decoder weight
    T, B = tokens.shape
    x2d = jnp.take(emb_w, tokens.reshape(-1), axis=0)  # (T*B, E) embedding lookup (glue)

    rnn_states = []
    for (w_ih, w_hh, b) in params["lstm"]:
        H = w_hh.shape[0]
        gates_x = input_projection(x2d, w_ih, b)       # (T*B, 4H) bf16, MXU-dense
        h_seq, h_fin, c_fin = lstm_recurrence(
            gates_x.reshape(T, B, 4 * H), w_hh)        # serial part: only h @ W_hh
        rnn_states.append((h_fin, c_fin))
        x2d = h_seq.reshape(T * B, H)                  # feed next layer

    V = emb_w.shape[0]
    logits = decoder_matmul(x2d, emb_w).reshape(T, B, V)
    return logits, rnn_states


# ---------------------------------------------------------------------------
# Deterministic parameter construction (shapes implied by the module).
# emb_sz == n_hid  =>  decoder is a single tied Linear(n_hid, voc_sz, bias=False).
# Gate columns are packed [i, f, o, g] (PyTorch nn.LSTM uses [i, f, g, o]; when
# porting real weights, permute the 4H axis and sum b_ih + b_hh accordingly).
# ---------------------------------------------------------------------------
def make_params(key, voc_sz, emb_sz, n_hid, n_layers):
    assert emb_sz == n_hid, "tied-weight configuration used here"
    keys = jax.random.split(key, 1 + 3 * n_layers)
    emb_weight = (0.1 * jax.random.normal(
        keys[0], (voc_sz, emb_sz), jnp.float32)).astype(jnp.bfloat16)

    lstm_params = []
    d_in = emb_sz
    bound = float(n_hid) ** -0.5
    for l in range(n_layers):
        k_ih, k_hh, k_b = keys[1 + 3 * l: 4 + 3 * l]
        w_ih = jax.random.uniform(
            k_ih, (d_in, 4 * n_hid), jnp.float32, -bound, bound).astype(jnp.bfloat16)
        w_hh = jax.random.uniform(
            k_hh, (n_hid, 4 * n_hid), jnp.float32, -bound, bound).astype(jnp.bfloat16)
        # combined b_ih + b_hh, kept 2D (1, 4H) and in f32 (added to f32 accum)
        b = jax.random.uniform(k_b, (1, 4 * n_hid), jnp.float32, -bound, bound)
        lstm_params.append((w_ih, w_hh, b))
        d_in = n_hid

    # TODO(synk): the emb_sz != n_hid branch (two-Linear decoder with kaiming init)
    # is not exercised here; only the tied-weight single-Linear decoder path is built.
    return {"emb_weight": emb_weight, "lstm": lstm_params}


if __name__ == "__main__":
    VOC_SZ, EMB_SZ, N_HID, N_LAYERS = 256, 128, 128, 2
    T, B = 8, 8

    key = jax.random.PRNGKey(0)
    k_tok, k_param = jax.random.split(key)
    tokens = jax.random.randint(k_tok, (T, B), 0, VOC_SZ, dtype=jnp.int32)  # (T, B)
    params = make_params(k_param, VOC_SZ, EMB_SZ, N_HID, N_LAYERS)

    logits, rnn_states = rnn_language_model_forward(tokens, params)
    jax.block_until_ready(logits)
    for h, c in rnn_states:
        jax.block_until_ready(h)
        jax.block_until_ready(c)

    assert logits.shape == (T, B, VOC_SZ)
    assert logits.dtype == jnp.float32
    assert len(rnn_states) == N_LAYERS
    assert rnn_states[0][0].shape == (B, N_HID)
    assert rnn_states[0][1].shape == (B, N_HID)
    print("KERNEL_OK")
</pallas_src>

<mosaic_0001>
module attributes {stable_mosaic.version = 11 : i64} {
  func.func @_input_proj_kernel(%arg0: i32, %arg1: memref<64x128xbf16, #tpu.memory_space<vmem>>, %arg2: memref<128x512xbf16, #tpu.memory_space<vmem>>, %arg3: memref<1x512xf32, #tpu.memory_space<vmem>>, %arg4: memref<64x512xbf16, #tpu.memory_space<vmem>>) attributes {dimension_semantics = [#tpu.dimension_semantics<parallel>], iteration_bounds = array<i64: 1>, scalar_prefetch = 0 : i64, scratch_operands = 0 : i64, tpu.core_type = #tpu.core_type<tc>, window_params = [{transform_indices = @transform_0, window_bounds = array<i64: 64, 128>}, {pipeline_mode = #tpu.pipeline_mode<synchronous>, transform_indices = @transform_1, window_bounds = array<i64: 128, 512>}, {pipeline_mode = #tpu.pipeline_mode<synchronous>, transform_indices = @transform_2, window_bounds = array<i64: 1, 512>}, {transform_indices = @transform_3, window_bounds = array<i64: 64, 512>}]} {
    %c0 = arith.constant 0 : index
    %c0_0 = arith.constant 0 : index
    %0 = vector.load %arg1[%c0, %c0_0] : memref<64x128xbf16, #tpu.memory_space<vmem>>, vector<64x128xbf16>
    %c0_1 = arith.constant 0 : index
    %c0_2 = arith.constant 0 : index
    %1 = vector.load %arg2[%c0_1, %c0_2] : memref<128x512xbf16, #tpu.memory_space<vmem>>, vector<128x512xbf16>
    %cst = arith.constant dense<0.000000e+00> : vector<64x512xf32>
    %2 = tpu.matmul %0, %1, %cst {dimension_numbers = #tpu.dot_dimension_numbers<[1], [0], [0], [1], [0, 0, 1, 1], [], []>} : vector<64x128xbf16>, vector<128x512xbf16>, vector<64x512xf32> -> vector<64x512xf32>
    %c0_3 = arith.constant 0 : index
    %c0_4 = arith.constant 0 : index
    %3 = vector.load %arg3[%c0_3, %c0_4] : memref<1x512xf32, #tpu.memory_space<vmem>>, vector<1x512xf32>
    %4 = vector.broadcast %3 : vector<1x512xf32> to vector<64x512xf32>
    %5 = arith.addf %2, %4 : vector<64x512xf32>
    %6 = arith.truncf %5 : vector<64x512xf32> to vector<64x512xbf16>
    %c0_5 = arith.constant 0 : index
    %c0_6 = arith.constant 0 : index
    %7 = vector.load %arg4[%c0_5, %c0_6] : memref<64x512xbf16, #tpu.memory_space<vmem>>, vector<64x512xbf16>
    tpu.vector_store %arg4[%c0_5, %c0_6], %6 {strides = array<i32>} : memref<64x512xbf16, #tpu.memory_space<vmem>>, vector<64x512xbf16>,
    return
  }
  func.func @transform_0(%arg0: i32) -> (i32, i32) {
    %c0_i32 = arith.constant 0 : i32
    %c0_i32_0 = arith.constant 0 : i32
    return %arg0, %c0_i32 : i32, i32
  }
  func.func @transform_1(%arg0: i32) -> (i32, i32) {
    %c0_i32 = arith.constant 0 : i32
    %c0_i32_0 = arith.constant 0 : i32
    %c0_i32_1 = arith.constant 0 : i32
    return %c0_i32, %c0_i32_0 : i32, i32
  }
  func.func @transform_2(%arg0: i32) -> (i32, i32) {
    %c0_i32 = arith.constant 0 : i32
    %c0_i32_0 = arith.constant 0 : i32
    %c0_i32_1 = arith.constant 0 : i32
    return %c0_i32, %c0_i32_0 : i32, i32
  }
  func.func @transform_3(%arg0: i32) -> (i32, i32) {
    %c0_i32 = arith.constant 0 : i32
    %c0_i32_0 = arith.constant 0 : i32
    return %arg0, %c0_i32 : i32, i32
  }
}

module attributes {stable_mosaic.version = 11 : i64} {
  func.func @_input_proj_kernel(%arg0: i32, %arg1: memref<64x128xbf16, #tpu.memory_space<vmem>>, %arg2: memref<128x512xbf16, #tpu.memory_space<vmem>>, %arg3: memref<1x512xf32, #tpu.memory_space<vmem>>, %arg4: memref<64x512xbf16, #tpu.memory_space<vmem>>) attributes {dimension_semantics = [#tpu.dimension_semantics<parallel>], iteration_bounds = array<i64: 1>, scalar_prefetch = 0 : i64, scratch_operands = 0 : i64, tpu.core_type = #tpu.core_type<tc>, window_params = [{transform_indices = @transform_0, window_bounds = array<i64: 64, 128>}, {pipeline_mode = #tpu.pipeline_mode<synchronous>, transform_indices = @transform_1, window_bounds = array<i64: 128, 512>}, {pipeline_mode = #tpu.pipeline_mode<synchronous>, transform_indices = @transform_2, window_bounds = array<i64: 1, 512>}, {transform_indices = @transform_3, window_bounds = array<i64: 64, 512>}]} {
    %c0 = arith.constant 0 : index
    %c0_0 = arith.constant 0 : index
    %0 = vector.load %arg1[%c0, %c0_0] : memref<64x128xbf16, #tpu.memory_space<vmem>>, vector<64x128xbf16>
    %c0_1 = arith.constant 0 : index
    %c0_2 = arith.constant 0 : index
    %1 = vector.load %arg2[%c0_1, %c0_2] : memref<128x512xbf16, #tpu.memory_space<vmem>>, vector<128x512xbf16>
    %cst = arith.constant dense<0.000000e+00> : vector<64x512xf32>
    %2 = tpu.matmul %0, %1, %cst {dimension_numbers = #tpu.dot_dimension_numbers<[1], [0], [0], [1], [0, 0, 1, 1], [], []>} : vector<64x128xbf16>, vector<128x512xbf16>, vector<64x512xf32> -> vector<64x512xf32>
    %c0_3 = arith.constant 0 : index
    %c0_4 = arith.constant 0 : index
    %3 = vector.load %arg3[%c0_3, %c0_4] : memref<1x512xf32, #tpu.memory_space<vmem>>, vector<1x512xf32>
    %4 = vector.broadcast %3 : vector<1x512xf32> to vector<64x512xf32>
    %5 = arith.addf %2, %4 : vector<64x512xf32>
    %6 = arith.truncf %5 : vector<64x512xf32> to vector<64x512xbf16>
    %c0_5 = arith.constant 0 : index
    %c0_6 = arith.constant 0 : index
    %7 = vector.load %arg4[%c0_5, %c0_6] : memref<64x512xbf16, #tpu.memory_space<vmem>>, vector<64x512xbf16>
    tpu.vector_store %arg4[%c0_5, %c0_6], %6 {strides = array<i32>} : memref<64x512xbf16, #tpu.memory_space<vmem>>, vector<64x512xbf16>,
    return
  }
  func.func @transform_0(%arg0: i32) -> (i32, i32) {
    %c0_i32 = arith.constant 0 : i32
    %c0_i32_0 = arith.constant 0 : i32
    return %arg0, %c0_i32 : i32, i32
  }
  func.func @transform_1(%arg0: i32) -> (i32, i32) {
    %c0_i32 = arith.constant 0 : i32
    %c0_i32_0 = arith.constant 0 : i32
    %c0_i32_1 = arith.constant 0 : i32
    return %c0_i32, %c0_i32_0 : i32, i32
  }
  func.func @transform_2(%arg0: i32) -> (i32, i32) {
    %c0_i32 = arith.constant 0 : i32
    %c0_i32_0 = arith.constant 0 : i32
    %c0_i32_1 = arith.constant 0 : i32
    return %c0_i32, %c0_i32_0 : i32, i32
  }
  func.func @transform_3(%arg0: i32) -> (i32, i32) {
    %c0_i32 = arith.constant 0 : i32
    %c0_i32_0 = arith.constant 0 : i32
    return %arg0, %c0_i32 : i32, i32
  }
}

module attributes {stable_mosaic.version = 11 : i64} {
  func.func @_lstm_rec_kernel(%arg0: i32, %arg1: memref<8x8x512xbf16, #tpu.memory_space<vmem>>, %arg2: memref<128x512xbf16, #tpu.memory_space<vmem>>, %arg3: memref<8x8x128xbf16, #tpu.memory_space<vmem>>, %arg4: memref<8x128xf32, #tpu.memory_space<vmem>>, %arg5: memref<8x128xf32, #tpu.memory_space<vmem>>, %arg6: memref<8x128xf32, #tpu.memory_space<vmem>>, %arg7: memref<8x128xf32, #tpu.memory_space<vmem>>) attributes {dimension_semantics = [#tpu.dimension_semantics<arbitrary>], iteration_bounds = array<i64: 1>, scalar_prefetch = 0 : i64, scratch_operands = 2 : i64, tpu.core_type = #tpu.core_type<tc>, window_params = [{transform_indices = @transform_0, window_bounds = array<i64: 8, 8, 512>}, {pipeline_mode = #tpu.pipeline_mode<synchronous>, transform_indices = @transform_1, window_bounds = array<i64: 128, 512>}, {transform_indices = @transform_2, window_bounds = array<i64: 8, 8, 128>}, {pipeline_mode = #tpu.pipeline_mode<synchronous>, transform_indices = @transform_3, window_bounds = array<i64: 8, 128>}, {pipeline_mode = #tpu.pipeline_mode<synchronous>, transform_indices = @transform_4, window_bounds = array<i64: 8, 128>}]} {
    %c0_i32 = arith.constant 0 : i32
    %0 = arith.cmpi eq, %arg0, %c0_i32 : i32
    %1 = arith.extui %0 : i1 to i32
    %c0_i32_0 = arith.constant 0 : i32
    %2 = arith.cmpi ne, %1, %c0_i32_0 : i32
    scf.if %2 {
      %cst_116 = arith.constant 0.000000e+00 : f32
      %263 = vector.broadcast %cst_116 : f32 to vector<8x128xf32>
      %c0_117 = arith.constant 0 : index
      %c0_118 = arith.constant 0 : index
      %264 = vector.load %arg6[%c0_117, %c0_118] : memref<8x128xf32, #tpu.memory_space<vmem>>, vector<8x128xf32>
      tpu.vector_store %arg6[%c0_117, %c0_118], %263 {strides = array<i32>} : memref<8x128xf32, #tpu.memory_space<vmem>>, vector<8x128xf32>,
      %cst_119 = arith.constant 0.000000e+00 : f32
      %265 = vector.broadcast %cst_119 : f32 to vector<8x128xf32>
      %c0_120 = arith.constant 0 : index
      %c0_121 = arith.constant 0 : index
      %266 = vector.load %arg7[%c0_120, %c0_121] : memref<8x128xf32, #tpu.memory_space<vmem>>, vector<8x128xf32>
      tpu.vector_store %arg7[%c0_120, %c0_121], %265 {strides = array<i32>} : memref<8x128xf32, #tpu.memory_space<vmem>>, vector<8x128xf32>,
    } else {
    }
    %c0 = arith.constant 0 : index
    %c0_1 = arith.constant 0 : index
    %3 = vector.load %arg2[%c0, %c0_1] : memref<128x512xbf16, #tpu.memory_space<vmem>>, vector<128x512xbf16>
    %c0_i32_2 = arith.constant 0 : i32
    %4 = arith.index_cast %c0_i32_2 : i32 to index
    %c0_3 = arith.constant 0 : index
    %c0_4 = arith.constant 0 : index
    %5 = vector.load %arg1[%4, %c0_3, %c0_4] : memref<8x8x512xbf16, #tpu.memory_space<vmem>>, vector<1x8x512xbf16>
    %6 = vector.shape_cast %5 : vector<1x8x512xbf16> to vector<8x512xbf16>
    %7 = arith.extf %6 : vector<8x512xbf16> to vector<8x512xf32>
    %c0_5 = arith.constant 0 : index
    %c0_6 = arith.constant 0 : index
    %8 = vector.load %arg6[%c0_5, %c0_6] : memref<8x128xf32, #tpu.memory_space<vmem>>, vector<8x128xf32>
    %9 = arith.truncf %8 : vector<8x128xf32> to vector<8x128xbf16>
    %cst = arith.constant dense<0.000000e+00> : vector<8x512xf32>
    %10 = tpu.matmul %9, %3, %cst {dimension_numbers = #tpu.dot_dimension_numbers<[1], [0], [0], [1], [0, 0, 1, 1], [], []>} : vector<8x128xbf16>, vector<128x512xbf16>, vector<8x512xf32> -> vector<8x512xf32>
    %11 = arith.addf %7, %10 : vector<8x512xf32>
    %12 = vector.extract_strided_slice %11 {offsets = [0, 0], sizes = [8, 384], strides = [1, 1]} : vector<8x512xf32> to vector<8x384xf32>
    %13 = arith.negf %12 : vector<8x384xf32>
    %14 = math.exp %13 : vector<8x384xf32>
    %cst_7 = arith.constant 1.000000e+00 : f32
    %15 = vector.broadcast %cst_7 : f32 to vector<8x384xf32>
    %16 = arith.addf %15, %14 : vector<8x384xf32>
    %17 = arith.divf %15, %16 : vector<8x384xf32>
    %18 = vector.extract_strided_slice %17 {offsets = [0, 0], sizes = [8, 128], strides = [1, 1]} : vector<8x384xf32> to vector<8x128xf32>
    %19 = vector.extract_strided_slice %17 {offsets = [0, 128], sizes = [8, 128], strides = [1, 1]} : vector<8x384xf32> to vector<8x128xf32>
    %20 = vector.extract_strided_slice %17 {offsets = [0, 256], sizes = [8, 128], strides = [1, 1]} : vector<8x384xf32> to vector<8x128xf32>
    %21 = vector.extract_strided_slice %11 {offsets = [0, 384], sizes = [8, 128], strides = [1, 1]} : vector<8x512xf32> to vector<8x128xf32>
    %22 = math.tanh %21 : vector<8x128xf32>
    %c0_8 = arith.constant 0 : index
    %c0_9 = arith.constant 0 : index
    %23 = vector.load %arg7[%c0_8, %c0_9] : memref<8x128xf32, #tpu.memory_space<vmem>>, vector<8x128xf32>
    %24 = arith.mulf %19, %23 : vector<8x128xf32>
    %25 = arith.mulf %18, %22 : vector<8x128xf32>
    %26 = arith.addf %24, %25 : vector<8x128xf32>
    %27 = math.tanh %26 : vector<8x128xf32>
    %28 = arith.mulf %20, %27 : vector<8x128xf32>
    %c0_10 = arith.constant 0 : index
    %c0_11 = arith.constant 0 : index
    %29 = vector.load %arg7[%c0_10, %c0_11] : memref<8x128xf32, #tpu.memory_space<vmem>>, vector<8x128xf32>
    tpu.vector_store %arg7[%c0_10, %c0_11], %26 {strides = array<i32>} : memref<8x128xf32, #tpu.memory_space<vmem>>, vector<8x128xf32>,
    %c0_12 = arith.constant 0 : index
    %c0_13 = arith.constant 0 : index
    %30 = vector.load %arg6[%c0_12, %c0_13] : memref<8x128xf32, #tpu.memory_space<vmem>>, vector<8x128xf32>
    tpu.vector_store %arg6[%c0_12, %c0_13], %28 {strides = array<i32>} : memref<8x128xf32, #tpu.memory_space<vmem>>, vector<8x128xf32>,
    %31 = arith.truncf %28 : vector<8x128xf32> to vector<8x128xbf16>
    %32 = arith.index_cast %c0_i32_2 : i32 to index
    %c0_14 = arith.constant 0 : index
    %c0_15 = arith.constant 0 : index
    %33 = vector.load %arg3[%32, %c0_14, %c0_15] : memref<8x8x128xbf16, #tpu.memory_space<vmem>>, vector<1x8x128xbf16>
    %34 = vector.shape_cast %33 : vector<1x8x128xbf16> to vector<8x128xbf16>
    %35 = vector.shape_cast %31 : vector<8x128xbf16> to vector<1x8x128xbf16>
    tpu.vector_store %arg3[%32, %c0_14, %c0_15], %35 {strides = array<i32>} : memref<8x8x128xbf16, #tpu.memory_space<vmem>>, vector<1x8x128xbf16>,
    %c1_i32 = arith.constant 1 : i32
    %36 = arith.index_cast %c1_i32 : i32 to index
    %c0_16 = arith.constant 0 : index
    %c0_17 = arith.constant 0 : index
    %37 = vector.load %arg1[%36, %c0_16, %c0_17] : memref<8x8x512xbf16, #tpu.memory_space<vmem>>, vector<1x8x512xbf16>
    %38 = vector.shape_cast %37 : vector<1x8x512xbf16> to vector<8x512xbf16>
    %39 = arith.extf %38 : vector<8x512xbf16> to vector<8x512xf32>
    %c0_18 = arith.constant 0 : index
    %c0_19 = arith.constant 0 : index
    %40 = vector.load %arg6[%c0_18, %c0_19] : memref<8x128xf32, #tpu.memory_space<vmem>>, vector<8x128xf32>
    %41 = arith.truncf %40 : vector<8x128xf32> to vector<8x128xbf16>
    %cst_20 = arith.constant dense<0.000000e+00> : vector<8x512xf32>
    %42 = tpu.matmul %41, %3, %cst_20 {dimension_numbers = #tpu.dot_dimension_numbers<[1], [0], [0], [1], [0, 0, 1, 1], [], []>} : vector<8x128xbf16>, vector<128x512xbf16>, vector<8x512xf32> -> vector<8x512xf32>
    %43 = arith.addf %39, %42 : vector<8x512xf32>
    %44 = vector.extract_strided_slice %43 {offsets = [0, 0], sizes = [8, 384], strides = [1, 1]} : vector<8x512xf32> to vector<8x384xf32>
    %45 = arith.negf %44 : vector<8x384xf32>
    %46 = math.exp %45 : vector<8x384xf32>
    %cst_21 = arith.constant 1.000000e+00 : f32
    %47 = vector.broadcast %cst_21 : f32 to vector<8x384xf32>
    %48 = arith.addf %47, %46 : vector<8x384xf32>
    %49 = arith.divf %47, %48 : vector<8x384xf32>
    %50 = vector.extract_strided_slice %49 {offsets = [0, 0], sizes = [8, 128], strides = [1, 1]} : vector<8x384xf32> to vector<8x128xf32>
    %51 = vector.extract_strided_slice %49 {offsets = [0, 128], sizes = [8, 128], strides = [1, 1]} : vector<8x384xf32> to vector<8x128xf32>
    %52 = vector.extract_strided_slice %49 {offsets = [0, 256], sizes = [8, 128], strides = [1, 1]} : vector<8x384xf32> to vector<8x128xf32>
    %53 = vector.extract_strided_slice %43 {offsets = [0, 384], sizes = [8, 128], strides = [1, 1]} : vector<8x512xf32> to vector<8x128xf32>
    %54 = math.tanh %53 : vector<8x128xf32>
    %c0_22 = arith.constant 0 : index
    %c0_23 = arith.constant 0 : index
    %55 = vector.load %arg7[%c0_22, %c0_23] : memref<8x128xf32, #tpu.memory_space<vmem>>, vector<8x128xf32>
    %56 = arith.mulf %51, %55 : vector<8x128xf32>
    %57 = arith.mulf %50, %54 : vector<8x128xf32>
    %58 = arith.addf %56, %57 : vector<8x128xf32>
    %59 = math.tanh %58 : vector<8x128xf32>
    %60 = arith.mulf %52, %59 : vector<8x128xf32>
    %c0_24 = arith.constant 0 : index
    %c0_25 = arith.constant 0 : index
    %61 = vector.load %arg7[%c0_24, %c0_25] : memref<8x128xf32, #tpu.memory_space<vmem>>, vector<8x128xf32>
    tpu.vector_store %arg7[%c0_24, %c0_25], %58 {strides = array<i32>} : memref<8x128xf32, #tpu.memory_space<vmem>>, vector<8x128xf32>,
    %c0_26 = arith.constant 0 : index
    %c0_27 = arith.constant 0 : index
    %62 = vector.load %arg6[%c0_26, %c0_27] : memref<8x128xf32, #tpu.memory_space<vmem>>, vector<8x128xf32>
    tpu.vector_store %arg6[%c0_26, %c0_27], %60 {strides = array<i32>} : memref<8x128xf32, #tpu.memory_space<vmem>>, vector<8x128xf32>,
    %63 = arith.truncf %60 : vector<8x128xf32> to vector<8x128xbf16>
    %64 = arith.index_cast %c1_i32 : i32 to index
    %c0_28 = arith.constant 0 : index
    %c0_29 = arith.constant 0 : index
    %65 = vector.load %arg3[%64, %c0_28, %c0_29] : memref<8x8x128xbf16, #tpu.memory_space<vmem>>, vector<1x8x128xbf16>
    %66 = vector.shape_cast %65 : vector<1x8x128xbf16> to vector<8x128xbf16>
    %67 = vector.shape_cast %63 : vector<8x128xbf16> to vector<1x8x128xbf16>
    tpu.vector_store %arg3[%64, %c0_28, %c0_29], %67 {strides = array<i32>} : memref<8x8x128xbf16, #tpu.memory_space<vmem>>, vector<1x8x128xbf16>,
    %c2_i32 = arith.constant 2 : i32
    %68 = arith.index_cast %c2_i32 : i32 to index
    %c0_30 = arith.constant 0 : index
    %c0_31 = arith.constant 0 : index
    %69 = vector.load %arg1[%68, %c0_30, %c0_31] : memref<8x8x512xbf16, #tpu.memory_space<vmem>>, vector<1x8x512xbf16>
    %70 = vector.shape_cast %69 : vector<1x8x512xbf16> to vector<8x512xbf16>
    %71 = arith.extf %70 : vector<8x512xbf16> to vector<8x512xf32>
    %c0_32 = arith.constant 0 : index
    %c0_33 = arith.constant 0 : index
    %72 = vector.load %arg6[%c0_32, %c0_33] : memref<8x128xf32, #tpu.memory_space<vmem>>, vector<8x128xf32>
    %73 = arith.truncf %72 : vector<8x128xf32> to vector<8x128xbf16>
    %cst_34 = arith.constant dense<0.000000e+00> : vector<8x512xf32>
    %74 = tpu.matmul %73, %3, %cst_34 {dimension_numbers = #tpu.dot_dimension_numbers<[1], [0], [0], [1], [0, 0, 1, 1], [], []>} : vector<8x128xbf16>, vector<128x512xbf16>, vector<8x512xf32> -> vector<8x512xf32>
    %75 = arith.addf %71, %74 : vector<8x512xf32>
    %76 = vector.extract_strided_slice %75 {offsets = [0, 0], sizes = [8, 384], strides = [1, 1]} : vector<8x512xf32> to vector<8x384xf32>
    %77 = arith.negf %76 : vector<8x384xf32>
    %78 = math.exp %77 : vector<8x384xf32>
    %cst_35 = arith.constant 1.000000e+00 : f32
    %79 = vector.broadcast %cst_35 : f32 to vector<8x384xf32>
    %80 = arith.addf %79, %78 : vector<8x384xf32>
    %81 = arith.divf %79, %80 : vector<8x384xf32>
    %82 = vector.extract_strided_slice %81 {offsets = [0, 0], sizes = [8, 128], strides = [1, 1]} : vector<8x384xf32> to vector<8x128xf32>
    %83 = vector.extract_strided_slice %81 {offsets = [0, 128], sizes = [8, 128], strides = [1, 1]} : vector<8x384xf32> to vector<8x128xf32>
    %84 = vector.extract_strided_slice %81 {offsets = [0, 256], sizes = [8, 128], strides = [1, 1]} : vector<8x384xf32> to vector<8x128xf32>
    %85 = vector.extract_strided_slice %75 {offsets = [0, 384], sizes = [8, 128], strides = [1, 1]} : vector<8x512xf32> to vector<8x128xf32>
    %86 = math.tanh %85 : vector<8x128xf32>
    %c0_36 = arith.constant 0 : index
    %c0_37 = arith.constant 0 : index
    %87 = vector.load %arg7[%c0_36, %c0_37] : memref<8x128xf32, #tpu.memory_space<vmem>>, vector<8x128xf32>
    %88 = arith.mulf %83, %87 : vector<8x128xf32>
    %89 = arith.mulf %82, %86 : vector<8x128xf32>
    %90 = arith.addf %88, %89 : vector<8x128xf32>
    %91 = math.tanh %90 : vector<8x128xf32>
    %92 = arith.mulf %84, %91 : vector<8x128xf32>
    %c0_38 = arith.constant 0 : index
    %c0_39 = arith.constant 0 : index
    %93 = vector.load %arg7[%c0_38, %c0_39] : memref<8x128xf32, #tpu.memory_space<vmem>>, vector<8x128xf32>
    tpu.vector_store %arg7[%c0_38, %c0_39], %90 {strides = array<i32>} : memref<8x128xf32, #tpu.memory_space<vmem>>, vector<8x128xf32>,
    %c0_40 = arith.constant 0 : index
    %c0_41 = arith.constant 0 : index
    %94 = vector.load %arg6[%c0_40, %c0_41] : memref<8x128xf32, #tpu.memory_space<vmem>>, vector<8x128xf32>
    tpu.vector_store %arg6[%c0_40, %c0_41], %92 {strides = array<i32>} : memref<8x128xf32, #tpu.memory_space<vmem>>, vector<8x128xf32>,
    %95 = arith.truncf %92 : vector<8x128xf32> to vector<8x128xbf16>
    %96 = arith.index_cast %c2_i32 : i32 to index
    %c0_42 = arith.constant 0 : index
    %c0_43 = arith.constant 0 : index
    %97 = vector.load %arg3[%96, %c0_42, %c0_43] : memref<8x8x128xbf16, #tpu.memory_space<vmem>>, vector<1x8x128xbf16>
    %98 = vector.shape_cast %97 : vector<1x8x128xbf16> to vector<8x128xbf16>
    %99 = vector.shape_cast %95 : vector<8x128xbf16> to vector<1x8x128xbf16>
    tpu.vector_store %arg3[%96, %c0_42, %c0_43], %99 {strides = array<i32>} : memref<8x8x128xbf16, #tpu.memory_space<vmem>>, vector<1x8x128xbf16>,
    %c3_i32 = arith.constant 3 : i32
    %100 = arith.index_cast %c3_i32 : i32 to index
    %c0_44 = arith.constant 0 : index
    %c0_45 = arith.constant 0 : index
    %101 = vector.load %arg1[%100, %c0_44, %c0_45] : memref<8x8x512xbf16, #tpu.memory_space<vmem>>, vector<1x8x512xbf16>
    %102 = vector.shape_cast %101 : vector<1x8x512xbf16> to vector<8x512xbf16>
    %103 = arith.extf %102 : vector<8x512xbf16> to vector<8x512xf32>
    %c0_46 = arith.constant 0 : index
    %c0_47 = arith.constant 0 : index
    %104 = vector.load %arg6[%c0_46, %c0_47] : memref<8x128xf32, #tpu.memory_space<vmem>>, vector<8x128xf32>
    %105 = arith.truncf %104 : vector<8x128xf32> to vector<8x128xbf16>
    %cst_48 = arith.constant dense<0.000000e+00> : vector<8x512xf32>
    %106 = tpu.matmul %105, %3, %cst_48 {dimension_numbers = #tpu.dot_dimension_numbers<[1], [0], [0], [1], [0, 0, 1, 1], [], []>} : vector<8x128xbf16>, vector<128x512xbf16>, vector<8x512xf32> -> vector<8x512xf32>
    %107 = arith.addf %103, %106 : vector<8x512xf32>
    %108 = vector.extract_strided_slice %107 {offsets = [0, 0], sizes = [8, 384], strides = [1, 1]} : vector<8x512xf32> to vector<8x384xf32>
    %109 = arith.negf %108 : vector<8x384xf32>
    %110 = math.exp %109 : vector<8x384xf32>
    %cst_49 = arith.constant 1.000000e+00 : f32
    %111 = vector.broadcast %cst_49 : f32 to vector<8x384xf32>
    %112 = arith.addf %111, %110 : vector<8x384xf32>
    %113 = arith.divf %111, %112 : vector<8x384xf32>
    %114 = vector.extract_strided_slice %113 {offsets = [0, 0], sizes = [8, 128], strides = [1, 1]} : vector<8x384xf32> to vector<8x128xf32>
    %115 = vector.extract_strided_slice %113 {offsets = [0, 128], sizes = [8, 128], strides = [1, 1]} : vector<8x384xf32> to vector<8x128xf32>
    %116 = vector.extract_strided_slice %113 {offsets = [0, 256], sizes = [8, 128], strides = [1, 1]} : vector<8x384xf32> to vector<8x128xf32>
    %117 = vector.extract_strided_slice %107 {offsets = [0, 384], sizes = [8, 128], strides = [1, 1]} : vector<8x512xf32> to vector<8x128xf32>
    %118 = math.tanh %117 : vector<8x128xf32>
    %c0_50 = arith.constant 0 : index
    %c0_51 = arith.constant 0 : index
    %119 = vector.load %arg7[%c0_50, %c0_51] : memref<8x128xf32, #tpu.memory_space<vmem>>, vector<8x128xf32>
    %120 = arith.mulf %115, %119 : vector<8x128xf32>
    %121 = arith.mulf %114, %118 : vector<8x128xf32>
    %122 = arith.addf %120, %121 : vector<8x128xf32>
    %123 = math.tanh %122 : vector<8x128xf32>
    %124 = arith.mulf %116, %123 : vector<8x128xf32>
    %c0_52 = arith.constant 0 : index
    %c0_53 = arith.constant 0 : index
    %125 = vector.load %arg7[%c0_52, %c0_53] : memref<8x128xf32, #tpu.memory_space<vmem>>, vector<8x128xf32>
    tpu.vector_store %arg7[%c0_52, %c0_53], %122 {strides = array<i32>} : memref<8x128xf32, #tpu.memory_space<vmem>>, vector<8x128xf32>,
    %c0_54 = arith.constant 0 : index
    %c0_55 = arith.constant 0 : index
    %126 = vector.load %arg6[%c0_54, %c0_55] : memref<8x128xf32, #tpu.memory_space<vmem>>, vector<8x128xf32>
    tpu.vector_store %arg6[%c0_54, %c0_55], %124 {strides = array<i32>} : memref<8x128xf32, #tpu.memory_space<vmem>>, vector<8x128xf32>,
    %127 = arith.truncf %124 : vector<8x128xf32> to vector<8x128xbf16>
    %128 = arith.index_cast %c3_i32 : i32 to index
    %c0_56 = arith.constant 0 : index
    %c0_57 = arith.constant 0 : index
    %129 = vector.load %arg3[%128, %c0_56, %c0_57] : memref<8x8x128xbf16, #tpu.memory_space<vmem>>, vector<1x8x128xbf16>
    %130 = vector.shape_cast %129 : vector<1x8x128xbf16> to vector<8x128xbf16>
    %131 = vector.shape_cast %127 : vector<8x128xbf16> to vector<1x8x128xbf16>
    tpu.vector_store %arg3[%128, %c0_56, %c0_57], %131 {strides = array<i32>} : memref<8x8x128xbf16, #tpu.memory_space<vmem>>, vector<1x8x128xbf16>,
    %c4_i32 = arith.constant 4 : i32
    %132 = arith.index_cast %c4_i32 : i32 to index
    %c0_58 = arith.constant 0 : index
    %c0_59 = arith.constant 0 : index
    %133 = vector.load %arg1[%132, %c0_58, %c0_59] : memref<8x8x512xbf16, #tpu.memory_space<vmem>>, vector<1x8x512xbf16>
    %134 = vector.shape_cast %133 : vector<1x8x512xbf16> to vector<8x512xbf16>
    %135 = arith.extf %134 : vector<8x512xbf16> to vector<8x512xf32>
    %c0_60 = arith.constant 0 : index
    %c0_61 = arith.constant 0 : index
    %136 = vector.load %arg6[%c0_60, %c0_61] : memref<8x128xf32, #tpu.memory_space<vmem>>, vector<8x128xf32>
    %137 = arith.truncf %136 : vector<8x128xf32> to vector<8x128xbf16>
    %cst_62 = arith.constant dense<0.000000e+00> : vector<8x512xf32>
    %138 = tpu.matmul %137, %3, %cst_62 {dimension_numbers = #tpu.dot_dimension_numbers<[1], [0], [0], [1], [0, 0, 1, 1], [], []>} : vector<8x128xbf16>, vector<128x512xbf16>, vector<8x512xf32> -> vector<8x512xf32>
    %139 = arith.addf %135, %138 : vector<8x512xf32>
    %140 = vector.extract_strided_slice %139 {offsets = [0, 0], sizes = [8, 384], strides = [1, 1]} : vector<8x512xf32> to vector<8x384xf32>
    %141 = arith.negf %140 : vector<8x384xf32>
    %142 = math.exp %141 : vector<8x384xf32>
    %cst_63 = arith.constant 1.000000e+00 : f32
    %143 = vector.broadcast %cst_63 : f32 to vector<8x384xf32>
    %144 = arith.addf %143, %142 : vector<8x384xf32>
    %145 = arith.divf %143, %144 : vector<8x384xf32>
    %146 = vector.extract_strided_slice %145 {offsets = [0, 0], sizes = [8, 128], strides = [1, 1]} : vector<8x384xf32> to vector<8x128xf32>
    %147 = vector.extract_strided_slice %145 {offsets = [0, 128], sizes = [8, 128], strides = [1, 1]} : vector<8x384xf32> to vector<8x128xf32>
    %148 = vector.extract_strided_slice %145 {offsets = [0, 256], sizes = [8, 128], strides = [1, 1]} : vector<8x384xf32> to vector<8x128xf32>
    %149 = vector.extract_strided_slice %139 {offsets = [0, 384], sizes = [8, 128], strides = [1, 1]} : vector<8x512xf32> to vector<8x128xf32>
    %150 = math.tanh %149 : vector<8x128xf32>
    %c0_64 = arith.constant 0 : index
    %c0_65 = arith.constant 0 : index
    %151 = vector.load %arg7[%c0_64, %c0_65] : memref<8x128xf32, #tpu.memory_space<vmem>>, vector<8x128xf32>
    %152 = arith.mulf %147, %151 : vector<8x128xf32>
    %153 = arith.mulf %146, %150 : vector<8x128xf32>
    %154 = arith.addf %152, %153 : vector<8x128xf32>
    %155 = math.tanh %154 : vector<8x128xf32>
    %156 = arith.mulf %148, %155 : vector<8x128xf32>
    %c0_66 = arith.constant 0 : index
    %c0_67 = arith.constant 0 : index
    %157 = vector.load %arg7[%c0_66, %c0_67] : memref<8x128xf32, #tpu.memory_space<vmem>>, vector<8x128xf32>
    tpu.vector_store %arg7[%c0_66, %c0_67], %154 {strides = array<i32>} : memref<8x128xf32, #tpu.memory_space<vmem>>, vector<8x128xf32>,
    %c0_68 = arith.constant 0 : index
    %c0_69 = arith.constant 0 : index
    %158 = vector.load %arg6[%c0_68, %c0_69] : memref<8x128xf32, #tpu.memory_space<vmem>>, vector<8x128xf32>
    tpu.vector_store %arg6[%c0_68, %c0_69], %156 {strides = array<i32>} : memref<8x128xf32, #tpu.memory_space<vmem>>, vector<8x128xf32>,
    %159 = arith.truncf %156 : vector<8x128xf32> to vector<8x128xbf16>
    %160 = arith.index_cast %c4_i32 : i32 to index
    %c0_70 = arith.constant 0 : index
    %c0_71 = arith.constant 0 : index
    %161 = vector.load %arg3[%160, %c0_70, %c0_71] : memref<8x8x128xbf16, #tpu.memory_space<vmem>>, vector<1x8x128xbf16>
    %162 = vector.shape_cast %161 : vector<1x8x128xbf16> to vector<8x128xbf16>
    %163 = vector.shape_cast %159 : vector<8x128xbf16> to vector<1x8x128xbf16>
    tpu.vector_store %arg3[%160, %c0_70, %c0_71], %163 {strides = array<i32>} : memref<8x8x128xbf16, #tpu.memory_space<vmem>>, vector<1x8x128xbf16>,
    %c5_i32 = arith.constant 5 : i32
    %164 = arith.index_cast %c5_i32 : i32 to index
    %c0_72 = arith.constant 0 : index
    %c0_73 = arith.constant 0 : index
    %165 = vector.load %arg1[%164, %c0_72, %c0_73] : memref<8x8x512xbf16, #tpu.memory_space<vmem>>, vector<1x8x512xbf16>
    %166 = vector.shape_cast %165 : vector<1x8x512xbf16> to vector<8x512xbf16>
    %167 = arith.extf %166 : vector<8x512xbf16> to vector<8x512xf32>
    %c0_74 = arith.constant 0 : index
    %c0_75 = arith.constant 0 : index
    %168 = vector.load %arg6[%c0_74, %c0_75] : memref<8x128xf32, #tpu.memory_space<vmem>>, vector<8x128xf32>
    %169 = arith.truncf %168 : vector<8x128xf32> to vector<8x128xbf16>
    %cst_76 = arith.constant dense<0.000000e+00> : vector<8x512xf32>
    %170 = tpu.matmul %169, %3, %cst_76 {dimension_numbers = #tpu.dot_dimension_numbers<[1], [0], [0], [1], [0, 0, 1, 1], [], []>} : vector<8x128xbf16>, vector<128x512xbf16>, vector<8x512xf32> -> vector<8x512xf32>
    %171 = arith.addf %167, %170 : vector<8x512xf32>
    %172 = vector.extract_strided_slice %171 {offsets = [0, 0], sizes = [8, 384], strides = [1, 1]} : vector<8x512xf32> to vector<8x384xf32>
    %173 = arith.negf %172 : vector<8x384xf32>
    %174 = math.exp %173 : vector<8x384xf32>
    %cst_77 = arith.constant 1.000000e+00 : f32
    %175 = vector.broadcast %cst_77 : f32 to vector<8x384xf32>
    %176 = arith.addf %175, %174 : vector<8x384xf32>
    %177 = arith.divf %175, %176 : vector<8x384xf32>
    %178 = vector.extract_strided_slice %177 {offsets = [0, 0], sizes = [8, 128], strides = [1, 1]} : vector<8x384xf32> to vector<8x128xf32>
    %179 = vector.extract_strided_slice %177 {offsets = [0, 128], sizes = [8, 128], strides = [1, 1]} : vector<8x384xf32> to vector<8x128xf32>
    %180 = vector.extract_strided_slice %177 {offsets = [0, 256], sizes = [8, 128], strides = [1, 1]} : vector<8x384xf32> to vector<8x128xf32>
    %181 = vector.extract_strided_slice %171 {offsets = [0, 384], sizes = [8, 128], strides = [1, 1]} : vector<8x512xf32> to vector<8x128xf32>
    %182 = math.tanh %181 : vector<8x128xf32>
    %c0_78 = arith.constant 0 : index
    %c0_79 = arith.constant 0 : index
    %183 = vector.load %arg7[%c0_78, %c0_79] : memref<8x128xf32, #tpu.memory_space<vmem>>, vector<8x128xf32>
    %184 = arith.mulf %179, %183 : vector<8x128xf32>
    %185 = arith.mulf %178, %182 : vector<8x128xf32>
    %186 = arith.addf %184, %185 : vector<8x128xf32>
    %187 = math.tanh %186 : vector<8x128xf32>
    %188 = arith.mulf %180, %187 : vector<8x128xf32>
    %c0_80 = arith.constant 0 : index
    %c0_81 = arith.constant 0 : index
    %189 = vector.load %arg7[%c0_80, %c0_81] : memref<8x128xf32, #tpu.memory_space<vmem>>, vector<8x128xf32>
    tpu.vector_store %arg7[%c0_80, %c0_81], %186 {strides = array<i32>} : memref<8x128xf32, #tpu.memory_space<vmem>>, vector<8x128xf32>,
    %c0_82 = arith.constant 0 : index
    %c0_83 = arith.constant 0 : index
    %190 = vector.load %arg6[%c0_82, %c0_83] : memref<8x128xf32, #tpu.memory_space<vmem>>, vector<8x128xf32>
    tpu.vector_store %arg6[%c0_82, %c0_83], %188 {strides = array<i32>} : memref<8x128xf32, #tpu.memory_space<vmem>>, vector<8x128xf32>,
    %191 = arith.truncf %188 : vector<8x128xf32> to vector<8x128xbf16>
    %192 = arith.index_cast %c5_i32 : i32 to index
    %c0_84 = arith.constant 0 : index
    %c0_85 = arith.constant 0 : index
    %193 = vector.load %arg3[%192, %c0_84, %c0_85] : memref<8x8x128xbf16, #tpu.memory_space<vmem>>, vector<1x8x128xbf16>
    %194 = vector.shape_cast %193 : vector<1x8x128xbf16> to vector<8x128xbf16>
    %195 = vector.shape_cast %191 : vector<8x128xbf16> to vector<1x8x128xbf16>
    tpu.vector_store %arg3[%192, %c0_84, %c0_85], %195 {strides = array<i32>} : memref<8x8x128xbf16, #tpu.memory_space<vmem>>, vector<1x8x128xbf16>,
    %c6_i32 = arith.constant 6 : i32
    %196 = arith.index_cast %c6_i32 : i32 to index
    %c0_86 = arith.constant 0 : index
    %c0_87 = arith.constant 0 : index
    %197 = vector.load %arg1[%196, %c0_86, %c0_87] : memref<8x8x512xbf16, #tpu.memory_space<vmem>>, vector<1x8x512xbf16>
    %198 = vector.shape_cast %197 : vector<1x8x512xbf16> to vector<8x512xbf16>
    %199 = arith.extf %198 : vector<8x512xbf16> to vector<8x512xf32>
    %c0_88 = arith.constant 0 : index
    %c0_89 = arith.constant 0 : index
    %200 = vector.load %arg6[%c0_88, %c0_89] : memref<8x128xf32, #tpu.memory_space<vmem>>, vector<8x128xf32>
    %201 = arith.truncf %200 : vector<8x128xf32> to vector<8x128xbf16>
    %cst_90 = arith.constant dense<0.000000e+00> : vector<8x512xf32>
    %202 = tpu.matmul %201, %3, %cst_90 {dimension_numbers = #tpu.dot_dimension_numbers<[1], [0], [0], [1], [0, 0, 1, 1], [], []>} : vector<8x128xbf16>, vector<128x512xbf16>, vector<8x512xf32> -> vector<8x512xf32>
    %203 = arith.addf %199, %202 : vector<8x512xf32>
    %204 = vector.extract_strided_slice %203 {offsets = [0, 0], sizes = [8, 384], strides = [1, 1]} : vector<8x512xf32> to vector<8x384xf32>
    %205 = arith.negf %204 : vector<8x384xf32>
    %206 = math.exp %205 : vector<8x384xf32>
    %cst_91 = arith.constant 1.000000e+00 : f32
    %207 = vector.broadcast %cst_91 : f32 to vector<8x384xf32>
    %208 = arith.addf %207, %206 : vector<8x384xf32>
    %209 = arith.divf %207, %208 : vector<8x384xf32>
    %210 = vector.extract_strided_slice %209 {offsets = [0, 0], sizes = [8, 128], strides = [1, 1]} : vector<8x384xf32> to vector<8x128xf32>
    %211 = vector.extract_strided_slice %209 {offsets = [0, 128], sizes = [8, 128], strides = [1, 1]} : vector<8x384xf32> to vector<8x128xf32>
    %212 = vector.extract_strided_slice %209 {offsets = [0, 256], sizes = [8, 128], strides = [1, 1]} : vector<8x384xf32> to vector<8x128xf32>
    %213 = vector.extract_strided_slice %203 {offsets = [0, 384], sizes = [8, 128], strides = [1, 1]} : vector<8x512xf32> to vector<8x128xf32>
    %214 = math.tanh %213 : vector<8x128xf32>
    %c0_92 = arith.constant 0 : index
    %c0_93 = arith.constant 0 : index
    %215 = vector.load %arg7[%c0_92, %c0_93] : memref<8x128xf32, #tpu.memory_space<vmem>>, vector<8x128xf32>
    %216 = arith.mulf %211, %215 : vector<8x128xf32>
    %217 = arith.mulf %210, %214 : vector<8x128xf32>
    %218 = arith.addf %216, %217 : vector<8x128xf32>
    %219 = math.tanh %218 : vector<8x128xf32>
    %220 = arith.mulf %212, %219 : vector<8x128xf32>
    %c0_94 = arith.constant 0 : index
    %c0_95 = arith.constant 0 : index
    %221 = vector.load %arg7[%c0_94, %c0_95] : memref<8x128xf32, #tpu.memory_space<vmem>>, vector<8x128xf32>
    tpu.vector_store %arg7[%c0_94, %c0_95], %218 {strides = array<i32>} : memref<8x128xf32, #tpu.memory_space<vmem>>, vector<8x128xf32>,
    %c0_96 = arith.constant 0 : index
    %c0_97 = arith.constant 0 : index
    %222 = vector.load %arg6[%c0_96, %c0_97] : memref<8x128xf32, #tpu.memory_space<vmem>>, vector<8x128xf32>
    tpu.vector_store %arg6[%c0_96, %c0_97], %220 {strides = array<i32>} : memref<8x128xf32, #tpu.memory_space<vmem>>, vector<8x128xf32>,
    %223 = arith.truncf %220 : vector<8x128xf32> to vector<8x128xbf16>
    %224 = arith.index_cast %c6_i32 : i32 to index
    %c0_98 = arith.constant 0 : index
    %c0_99 = arith.constant 0 : index
    %225 = vector.load %arg3[%224, %c0_98, %c0_99] : memref<8x8x128xbf16, #tpu.memory_space<vmem>>, vector<1x8x128xbf16>
    %226 = vector.shape_cast %225 : vector<1x8x128xbf16> to vector<8x128xbf16>
    %227 = vector.shape_cast %223 : vector<8x128xbf16> to vector<1x8x128xbf16>
    tpu.vector_store %arg3[%224, %c0_98, %c0_99], %227 {strides = array<i32>} : memref<8x8x128xbf16, #tpu.memory_space<vmem>>, vector<1x8x128xbf16>,
    %c7_i32 = arith.constant 7 : i32
    %228 = arith.index_cast %c7_i32 : i32 to index
    %c0_100 = arith.constant 0 : index
    %c0_101 = arith.constant 0 : index
    %229 = vector.load %arg1[%228, %c0_100, %c0_101] : memref<8x8x512xbf16, #tpu.memory_space<vmem>>, vector<1x8x512xbf16>
    %230 = vector.shape_cast %229 : vector<1x8x512xbf16> to vector<8x512xbf16>
    %231 = arith.extf %230 : vector<8x512xbf16> to vector<8x512xf32>
    %c0_102 = arith.constant 0 : index
    %c0_103 = arith.constant 0 : index
    %232 = vector.load %arg6[%c0_102, %c0_103] : memref<8x128xf32, #tpu.memory_space<vmem>>, vector<8x128xf32>
    %233 = arith.truncf %232 : vector<8x128xf32> to vector<8x128xbf16>
    %cst_104 = arith.constant dense<0.000000e+00> : vector<8x512xf32>
    %234 = tpu.matmul %233, %3, %cst_104 {dimension_numbers = #tpu.dot_dimension_numbers<[1], [0], [0], [1], [0, 0, 1, 1], [], []>} : vector<8x128xbf16>, vector<128x512xbf16>, vector<8x512xf32> -> vector<8x512xf32>
    %235 = arith.addf %231, %234 : vector<8x512xf32>
    %236 = vector.extract_strided_slice %235 {offsets = [0, 0], sizes = [8, 384], strides = [1, 1]} : vector<8x512xf32> to vector<8x384xf32>
    %237 = arith.negf %236 : vector<8x384xf32>
    %238 = math.exp %237 : vector<8x384xf32>
    %cst_105 = arith.constant 1.000000e+00 : f32
    %239 = vector.broadcast %cst_105 : f32 to vector<8x384xf32>
    %240 = arith.addf %239, %238 : vector<8x384xf32>
    %241 = arith.divf %239, %240 : vector<8x384xf32>
    %242 = vector.extract_strided_slice %241 {offsets = [0, 0], sizes = [8, 128], strides = [1, 1]} : vector<8x384xf32> to vector<8x128xf32>
    %243 = vector.extract_strided_slice %241 {offsets = [0, 128], sizes = [8, 128], strides = [1, 1]} : vector<8x384xf32> to vector<8x128xf32>
    %244 = vector.extract_strided_slice %241 {offsets = [0, 256], sizes = [8, 128], strides = [1, 1]} : vector<8x384xf32> to vector<8x128xf32>
    %245 = vector.extract_strided_slice %235 {offsets = [0, 384], sizes = [8, 128], strides = [1, 1]} : vector<8x512xf32> to vector<8x128xf32>
    %246 = math.tanh %245 : vector<8x128xf32>
    %c0_106 = arith.constant 0 : index
    %c0_107 = arith.constant 0 : index
    %247 = vector.load %arg7[%c0_106, %c0_107] : memref<8x128xf32, #tpu.memory_space<vmem>>, vector<8x128xf32>
    %248 = arith.mulf %243, %247 : vector<8x128xf32>
    %249 = arith.mulf %242, %246 : vector<8x128xf32>
    %250 = arith.addf %248, %249 : vector<8x128xf32>
    %251 = math.tanh %250 : vector<8x128xf32>
    %252 = arith.mulf %244, %251 : vector<8x128xf32>
    %c0_108 = arith.constant 0 : index
    %c0_109 = arith.constant 0 : index
    %253 = vector.load %arg7[%c0_108, %c0_109] : memref<8x128xf32, #tpu.memory_space<vmem>>, vector<8x128xf32>
    tpu.vector_store %arg7[%c0_108, %c0_109], %250 {strides = array<i32>} : memref<8x128xf32, #tpu.memory_space<vmem>>, vector<8x128xf32>,
    %c0_110 = arith.constant 0 : index
    %c0_111 = arith.constant 0 : index
    %254 = vector.load %arg6[%c0_110, %c0_111] : memref<8x128xf32, #tpu.memory_space<vmem>>, vector<8x128xf32>
    tpu.vector_store %arg6[%c0_110, %c0_111], %252 {strides = array<i32>} : memref<8x128xf32, #tpu.memory_space<vmem>>, vector<8x128xf32>,
    %255 = arith.truncf %252 : vector<8x128xf32> to vector<8x128xbf16>
    %256 = arith.index_cast %c7_i32 : i32 to index
    %c0_112 = arith.constant 0 : index
    %c0_113 = arith.constant 0 : index
    %257 = vector.load %arg3[%256, %c0_112, %c0_113] : memref<8x8x128xbf16, #tpu.memory_space<vmem>>, vector<1x8x128xbf16>
    %258 = vector.shape_cast %257 : vector<1x8x128xbf16> to vector<8x128xbf16>
    %259 = vector.shape_cast %255 : vector<8x128xbf16> to vector<1x8x128xbf16>
    tpu.vector_store %arg3[%256, %c0_112, %c0_113], %259 {strides = array<i32>} : memref<8x8x128xbf16, #tpu.memory_space<vmem>>, vector<1x8x128xbf16>,
    %c8_i32 = arith.constant 8 : i32
    %c0_i32_114 = arith.constant 0 : i32
    %260 = arith.cmpi eq, %arg0, %c0_i32_114 : i32
    %261 = arith.extui %260 : i1 to i32
    %c0_i32_115 = arith.constant 0 : i32
    %262 = arith.cmpi ne, %261, %c0_i32_115 : i32
    scf.if %262 {
      %c0_116 = arith.constant 0 : index
      %c0_117 = arith.constant 0 : index
      %263 = vector.load %arg6[%c0_116, %c0_117] : memref<8x128xf32, #tpu.memory_space<vmem>>, vector<8x128xf32>
      %c0_118 = arith.constant 0 : index
      %c0_119 = arith.constant 0 : index
      %264 = vector.load %arg4[%c0_118, %c0_119] : memref<8x128xf32, #tpu.memory_space<vmem>>, vector<8x128xf32>
      tpu.vector_store %arg4[%c0_118, %c0_119], %263 {strides = array<i32>} : memref<8x128xf32, #tpu.memory_space<vmem>>, vector<8x128xf32>,
      %c0_120 = arith.constant 0 : index
      %c0_121 = arith.constant 0 : index
      %265 = vector.load %arg7[%c0_120, %c0_121] : memref<8x128xf32, #tpu.memory_space<vmem>>, vector<8x128xf32>
      %c0_122 = arith.constant 0 : index
      %c0_123 = arith.constant 0 : index
      %266 = vector.load %arg5[%c0_122, %c0_123] : memref<8x128xf32, #tpu.memory_space<vmem>>, vector<8x128xf32>
      tpu.vector_store %arg5[%c0_122, %c0_123], %265 {strides = array<i32>} : memref<8x128xf32, #tpu.memory_space<vmem>>, vector<8x128xf32>,
    } else {
    }
    return
  }
  func.func @transform_0(%arg0: i32) -> (i32, i32, i32) {
    %c0_i32 = arith.constant 0 : i32
    %c0_i32_0 = arith.constant 0 : i32
    %c0_i32_1 = arith.constant 0 : i32
    return %arg0, %c0_i32, %c0_i32_0 : i32, i32, i32
  }
  func.func @transform_1(%arg0: i32) -> (i32, i32) {
    %c0_i32 = arith.constant 0 : i32
    %c0_i32_0 = arith.constant 0 : i32
    %c0_i32_1 = arith.constant 0 : i32
    return %c0_i32, %c0_i32_0 : i32, i32
  }
  func.func @transform_2(%arg0: i32) -> (i32, i32, i32) {
    %c0_i32 = arith.constant 0 : i32
    %c0_i32_0 = arith.constant 0 : i32
    %c0_i32_1 = arith.constant 0 : i32
    return %arg0, %c0_i32, %c0_i32_0 : i32, i32, i32
  }
  func.func @transform_3(%arg0: i32) -> (i32, i32) {
    %c0_i32 = arith.constant 0 : i32
    %c0_i32_0 = arith.constant 0 : i32
    %c0_i32_1 = arith.constant 0 : i32
    return %c0_i32, %c0_i32_0 : i32, i32
  }
  func.func @transform_4(%arg0: i32) -> (i32, i32) {
    %c0_i32 = arith.constant 0 : i32
    %c0_i32_0 = arith.constant 0 : i32
    %c0_i32_1 = arith.constant 0 : i32
    return %c0_i32, %c0_i32_0 : i32, i32
  }
}

module attributes {stable_mosaic.version = 11 : i64} {
  func.func @_decoder_kernel(%arg0: i32, %arg1: i32, %arg2: memref<64x128xbf16, #tpu.memory_space<vmem>>, %arg3: memref<256x128xbf16, #tpu.memory_space<vmem>>, %arg4: memref<64x256xf32, #tpu.memory_space<vmem>>) attributes {dimension_semantics = [#tpu.dimension_semantics<parallel>, #tpu.dimension_semantics<parallel>], iteration_bounds = array<i64: 1, 1>, scalar_prefetch = 0 : i64, scratch_operands = 0 : i64, tpu.core_type = #tpu.core_type<tc>, window_params = [{transform_indices = @transform_0, window_bounds = array<i64: 64, 128>}, {transform_indices = @transform_1, window_bounds = array<i64: 256, 128>}, {transform_indices = @transform_2, window_bounds = array<i64: 64, 256>}]} {
    %c0 = arith.constant 0 : index
    %c0_0 = arith.constant 0 : index
    %0 = vector.load %arg2[%c0, %c0_0] : memref<64x128xbf16, #tpu.memory_space<vmem>>, vector<64x128xbf16>
    %c0_1 = arith.constant 0 : index
    %c0_2 = arith.constant 0 : index
    %1 = vector.load %arg3[%c0_1, %c0_2] : memref<256x128xbf16, #tpu.memory_space<vmem>>, vector<256x128xbf16>
    %cst = arith.constant dense<0.000000e+00> : vector<64x256xf32>
    %2 = tpu.matmul %0, %1, %cst {dimension_numbers = #tpu.dot_dimension_numbers<[1], [1], [0], [0], [0, 0, 1, 0], [], []>} : vector<64x128xbf16>, vector<256x128xbf16>, vector<64x256xf32> -> vector<64x256xf32>
    %c0_3 = arith.constant 0 : index
    %c0_4 = arith.constant 0 : index
    %3 = vector.load %arg4[%c0_3, %c0_4] : memref<64x256xf32, #tpu.memory_space<vmem>>, vector<64x256xf32>
    tpu.vector_store %arg4[%c0_3, %c0_4], %2 {strides = array<i32>} : memref<64x256xf32, #tpu.memory_space<vmem>>, vector<64x256xf32>,
    return
  }
  func.func @transform_0(%arg0: i32, %arg1: i32) -> (i32, i32) {
    %c0_i32 = arith.constant 0 : i32
    %c0_i32_0 = arith.constant 0 : i32
    return %arg0, %c0_i32 : i32, i32
  }
  func.func @transform_1(%arg0: i32, %arg1: i32) -> (i32, i32) {
    %c0_i32 = arith.constant 0 : i32
    %c0_i32_0 = arith.constant 0 : i32
    return %arg1, %c0_i32 : i32, i32
  }
  func.func @transform_2(%arg0: i32, %arg1: i32) -> (i32, i32) {
    %c0_i32 = arith.constant 0 : i32
    return %arg0, %arg1 : i32, i32
  }
}

</mosaic_0001>

<bundles_post_ra>
// kernel: rnn_language_model_forward.5
= control target key start
LH: loop header
LB: loop body
LE: loop exit
PB: predicated region body
PF: predicated region fallthrough
CT: control target
= control target key end

     0   :  { %s895_s1 = inlined_call_operand.vmem [shape: bf16[128,512], index: 1, kind: input, shape index: {}]   ;;  %s896_s0 = inlined_call_operand.vmem [shape: bf16[64,128], index: 0, kind: input, shape index: {}]   ;;  %s897_s2 = inlined_call_operand.vmem [shape: f32[1,512], index: 2, kind: input, shape index: {}]   ;;  %s898_s3 = inlined_call_operand.vmem [shape: bf16[64,512], index: 3, kind: output, shape index: {}]  }
   0x1   :  { %v530_v0 = vld [vmem:[%s895_s1 + $0xe0] sm:$0xf]  ;;  %v578_v1 = vld [vmem:[%s895_s1 + $0xec] sm:$0xf0]  ;;  %v576_v2 = vld [vmem:[%s895_s1 + $0xe4] sm:$0xf] }
   0x2   :  { %v531_v3 = vor.u32 %v578_v1, %v530_v0  ;;  %v532_v4 = vld [vmem:[%s895_s1 + $0xf0] sm:$0xf0]  ;;  %v538_v5 = vld [vmem:[%s895_s1 + $0xe8] sm:$0xf]  ;;  %v579_v6 = vld [vmem:[%s895_s1 + $0xf4] sm:$0xf0] }
   0x3   :  { %v535_v7 = vor.u32 %v576_v2, %v532_v4  ;;  %v539_v8 = vor.u32 %v579_v6, %v538_v5  ;;  %v577_v9 = vld [vmem:[%s895_s1 + $0xec] sm:$0xf]  ;;  %v540_v10 = vld [vmem:[%s895_s1 + $0xf8] sm:$0xf0]  ;;  %v514_v11 = vld [vmem:[%s895_s1 + $0xc0] sm:$0xf] }
   0x4   :  { %248 = vmatpush.bf16.msra.mxu0 %v531_v3  ;;  %v543_v12 = vor.u32 %v577_v9, %v540_v10  ;;  %v574_v13 = vld [vmem:[%s895_s1 + $0xcc] sm:$0xf0]  ;;  %v572_v14 = vld [vmem:[%s895_s1 + $0xc4] sm:$0xf]  ;;  %v516_v15 = vld [vmem:[%s895_s1 + $0xd0] sm:$0xf0] }
   0x5   :  { %277 = vmatpush.bf16.msra.mxu1 %v535_v7  ;;  %306 = vmatpush.bf16.msra.mxu2 %v539_v8  ;;  %v515_v16 = vor.u32 %v574_v13, %v514_v11  ;;  %v519_v17 = vor.u32 %v572_v14, %v516_v15  ;;  %v522_v18 = vld [vmem:[%s895_s1 + $0xc8] sm:$0xf]  ;;  %v575_v19 = vld [vmem:[%s895_s1 + $0xd4] sm:$0xf0]  ;;  %v573_v20 = vld [vmem:[%s895_s1 + $0xcc] sm:$0xf] }
   0x6   :  { %335 = vmatpush.bf16.msra.mxu3 %v543_v12  ;;  %v523_v21 = vor.u32 %v575_v19, %v522_v18  ;;  %v524_v22 = vld [vmem:[%s895_s1 + $0xd8] sm:$0xf0]  ;;  %v498_v23 = vld [vmem:[%s895_s1 + $0xa0] sm:$0xf]  ;;  %v570_v24 = vld [vmem:[%s895_s1 + $0xac] sm:$0xf0] }
   0x7   :  { %v527_v25 = vor.u32 %v573_v20, %v524_v22  ;;  %v568_v26 = vld [vmem:[%s895_s1 + $0xa4] sm:$0xf]  ;;  %v500_v27 = vld [vmem:[%s895_s1 + $0xb0] sm:$0xf0]  ;;  %v506_v28 = vld [vmem:[%s895_s1 + $0xa8] sm:$0xf]  ;;  %v499_v29 = vor.u32 %v570_v24, %v498_v23 }
   0x8   :  { %249 = vmatpush.bf16.msra.mxu0 %v515_v16  ;;  %v571_v30 = vld [vmem:[%s895_s1 + $0xb4] sm:$0xf0]  ;;  %v569_v31 = vld [vmem:[%s895_s1 + $0xac] sm:$0xf]  ;;  %v508_v32 = vld [vmem:[%s895_s1 + $0xb8] sm:$0xf0]  ;;  %v503_v33 = vor.u32 %v568_v26, %v500_v27 }
   0x9   :  { %278 = vmatpush.bf16.msra.mxu1 %v519_v17  ;;  %307 = vmatpush.bf16.msra.mxu2 %v523_v21  ;;  %v507_v34 = vor.u32 %v571_v30, %v506_v28  ;;  %v482_v35 = vld [vmem:[%s895_s1 + $0x80] sm:$0xf]  ;;  %v566_v36 = vld [vmem:[%s895_s1 + $0x8c] sm:$0xf0]  ;;  %v564_v37 = vld [vmem:[%s895_s1 + $0x84] sm:$0xf]  ;;  %v511_v38 = vor.u32 %v569_v31, %v508_v32 }
   0xa   :  { %336 = vmatpush.bf16.msra.mxu3 %v527_v25  ;;  %v484_v39 = vld [vmem:[%s895_s1 + $0x90] sm:$0xf0]  ;;  %v490_v40 = vld [vmem:[%s895_s1 + $0x88] sm:$0xf]  ;;  %v567_v41 = vld [vmem:[%s895_s1 + $0x94] sm:$0xf0]  ;;  %v483_v44 = vor.u32 %v566_v36, %v482_v35 }
   0xb   :  { %v565_v42 = vld [vmem:[%s895_s1 + $0x8c] sm:$0xf]  ;;  %v492_v43 = vld [vmem:[%s895_s1 + $0x98] sm:$0xf0]  ;;  %v487_v45 = vor.u32 %v564_v37, %v484_v39  ;;  %v491_v46 = vor.u32 %v567_v41, %v490_v40  ;;  %v466_v47 = vld [vmem:[%s895_s1 + $0x60] sm:$0xf] }
   0xc   :  { %250 = vmatpush.bf16.msra.mxu0 %v499_v29  ;;  %v562_v48 = vld [vmem:[%s895_s1 + $0x6c] sm:$0xf0]  ;;  %v560_v49 = vld [vmem:[%s895_s1 + $0x64] sm:$0xf]  ;;  %v495_v50 = vor.u32 %v565_v42, %v492_v43  ;;  %v468_v51 = vld [vmem:[%s895_s1 + $0x70] sm:$0xf0] }
   0xd   :  { %279 = vmatpush.bf16.msra.mxu1 %v503_v33  ;;  %308 = vmatpush.bf16.msra.mxu2 %v507_v34  ;;  %v474_v52 = vld [vmem:[%s895_s1 + $0x68] sm:$0xf]  ;;  %v563_v53 = vld [vmem:[%s895_s1 + $0x74] sm:$0xf0]  ;;  %v561_v54 = vld [vmem:[%s895_s1 + $0x6c] sm:$0xf]  ;;  %v467_v56 = vor.u32 %v562_v48, %v466_v47  ;;  %v471_v57 = vor.u32 %v560_v49, %v468_v51 }
   0xe   :  { %337 = vmatpush.bf16.msra.mxu3 %v511_v38  ;;  %v476_v55 = vld [vmem:[%s895_s1 + $0x78] sm:$0xf0]  ;;  %v475_v58 = vor.u32 %v563_v53, %v474_v52  ;;  %v450_v59 = vld [vmem:[%s895_s1 + $0x40] sm:$0xf]  ;;  %v558_v60 = vld [vmem:[%s895_s1 + $0x4c] sm:$0xf0] }
   0xf   :  { %v556_v61 = vld [vmem:[%s895_s1 + $0x44] sm:$0xf]  ;;  %v479_v62 = vor.u32 %v561_v54, %v476_v55  ;;  %v452_v63 = vld [vmem:[%s895_s1 + $0x50] sm:$0xf0]  ;;  %v458_v0 = vld [vmem:[%s895_s1 + $0x48] sm:$0xf]  ;;  %v451_v4 = vor.u32 %v558_v60, %v450_v59 }
  0x10   :  { %251 = vmatpush.bf16.msra.mxu0 %v483_v44  ;;  %v559_v1 = vld [vmem:[%s895_s1 + $0x54] sm:$0xf0]  ;;  %v557_v2 = vld [vmem:[%s895_s1 + $0x4c] sm:$0xf]  ;;  %v460_v3 = vld [vmem:[%s895_s1 + $0x58] sm:$0xf0]  ;;  %v455_v5 = vor.u32 %v556_v61, %v452_v63 }
  0x11   :  { %280 = vmatpush.bf16.msra.mxu1 %v487_v45  ;;  %309 = vmatpush.bf16.msra.mxu2 %v491_v46  ;;  %v459_v6 = vor.u32 %v559_v1, %v458_v0  ;;  %v434_v7 = vld [vmem:[%s895_s1 + $0x20] sm:$0xf]  ;;  %v554_v8 = vld [vmem:[%s895_s1 + $0x2c] sm:$0xf0]  ;;  %v552_v9 = vld [vmem:[%s895_s1 + $0x24] sm:$0xf]  ;;  %v463_v10 = vor.u32 %v557_v2, %v460_v3 }
  0x12   :  { %338 = vmatpush.bf16.msra.mxu3 %v495_v50  ;;  %v436_v11 = vld [vmem:[%s895_s1 + $0x30] sm:$0xf0]  ;;  %v442_v12 = vld [vmem:[%s895_s1 + $0x28] sm:$0xf]  ;;  %v555_v13 = vld [vmem:[%s895_s1 + $0x34] sm:$0xf0]  ;;  %v435_v16 = vor.u32 %v554_v8, %v434_v7 }
  0x13   :  { %v553_v14 = vld [vmem:[%s895_s1 + $0x2c] sm:$0xf]  ;;  %v444_v15 = vld [vmem:[%s895_s1 + $0x38] sm:$0xf0]  ;;  %v439_v17 = vor.u32 %v552_v9, %v436_v11  ;;  %v443_v18 = vor.u32 %v555_v13, %v442_v12  ;;  %v418_v19 = vld [vmem:[%s895_s1] sm:$0xf] }
  0x14   :  { %252 = vmatpush.bf16.msra.mxu0 %v467_v56  ;;  %v550_v20 = vld [vmem:[%s895_s1 + $0xc] sm:$0xf0]  ;;  %v548_v21 = vld [vmem:[%s895_s1 + $0x4] sm:$0xf]  ;;  %v447_v22 = vor.u32 %v553_v14, %v444_v15  ;;  %v420_v23 = vld [vmem:[%s895_s1 + $0x10] sm:$0xf0] }
  0x15   :  { %281 = vmatpush.bf16.msra.mxu1 %v471_v57  ;;  %310 = vmatpush.bf16.msra.mxu2 %v475_v58  ;;  %v426_v24 = vld [vmem:[%s895_s1 + $0x8] sm:$0xf]  ;;  %v551_v25 = vld [vmem:[%s895_s1 + $0x14] sm:$0xf0]  ;;  %v549_v26 = vld [vmem:[%s895_s1 + $0xc] sm:$0xf]  ;;  %v419_v28 = vor.u32 %v550_v20, %v418_v19  ;;  %v423_v29 = vor.u32 %v548_v21, %v420_v23 }
  0x16   :  { %339 = vmatpush.bf16.msra.mxu3 %v479_v62  ;;  %v428_v27 = vld [vmem:[%s895_s1 + $0x18] sm:$0xf0]  ;;  %v427_v30 = vor.u32 %v551_v25, %v426_v24  ;;  %v544_v32 = vld [vmem:[%s896_s0] sm:$0xff]  ;;  %v545_v33 = vld [vmem:[%s896_s0 + $0x8] sm:$0xff] }
  0x17   :  { %v431_v31 = vor.u32 %v549_v26, %v428_v27  ;;  %v546_v34 = vld [vmem:[%s896_s0 + $0x10] sm:$0xff]  ;;  %v547_v35 = vld [vmem:[%s896_s0 + $0x18] sm:$0xff]  ;;  %v54_v36 = vld [vmem:[%s897_s2] sm:$0xf] }
  0x18   :  { %253 = vmatpush.bf16.msra.mxu0 %v451_v4  ;;  %v807_v37 = vperm.slane %v54_v36, 0  ;;  %v809_v38 = vperm.slane %v54_v36, 1  ;;  %v813_v44 = vperm.slane %v54_v36, 2  ;;  %v815_v45 = vperm.slane %v54_v36, 3 }
  0x19   :  { %282 = vmatpush.bf16.msra.mxu1 %v455_v5  ;;  %311 = vmatpush.bf16.msra.mxu2 %v459_v6 }
  0x1a   :  { %340 = vmatpush.bf16.msra.mxu3 %v463_v10 }
  0x1c   :  { %254 = vmatpush.bf16.msra.mxu0 %v435_v16 }
  0x1d   :  { %283 = vmatpush.bf16.msra.mxu1 %v439_v17  ;;  %312 = vmatpush.bf16.msra.mxu2 %v443_v18 }
  0x1e   :  { %341 = vmatpush.bf16.msra.mxu3 %v447_v22 }
  0x20   :  { %255 = vmatpush.bf16.msra.mxu0 %v419_v28 }
  0x21   :  { %284 = vmatpush.bf16.msra.mxu1 %v423_v29  ;;  %313 = vmatpush.bf16.msra.mxu2 %v427_v30 }
  0x22   :  { %342 = vmatpush.bf16.msra.mxu3 %v431_v31 }
  0x23   :  { %256 = vmatmul.bf16.vlgmr.msra.gmra.mxu0 %v544_v32 }
  0x24   :  { %285 = vmatmul.bf16.vlgmr.msra.gmra.mxu1 %v544_v32  ;;  %314 = vmatmul.bf16.vlgmr.msra.gmra.mxu2 %v544_v32 }
  0x25   :  { %343 = vmatmul.bf16.vlgmr.msra.gmra.mxu3 %v544_v32 }
  0x33   :  { %261 = vmatmul.bf16.gmra.mxu0 %v545_v33 }
  0x34   :  { %290 = vmatmul.bf16.gmra.mxu1 %v545_v33  ;;  %319 = vmatmul.bf16.gmra.mxu2 %v545_v33 }
  0x35   :  { %348 = vmatmul.bf16.gmra.mxu3 %v545_v33 }
  0x43   :  { %266 = vmatmul.bf16.gmra.mxu0 %v546_v34 }
  0x44   :  { %295 = vmatmul.bf16.gmra.mxu1 %v546_v34  ;;  %324 = vmatmul.bf16.gmra.mxu2 %v546_v34 }
  0x45   :  { %353 = vmatmul.bf16.gmra.mxu3 %v546_v34 }
  0x53   :  { %271 = vmatmul.bf16.gmra.mxu0 %v547_v35 }
  0x54   :  { %300 = vmatmul.bf16.gmra.mxu1 %v547_v35  ;;  %329 = vmatmul.bf16.gmra.mxu2 %v547_v35 }
  0x55   :  { %358 = vmatmul.bf16.gmra.mxu3 %v547_v35 }
  0xa0   :  { %v257_v39 = vpop.f32.mrf.mxu0 }
  0xa1   :  { %v258_v40 = vadd.f32 %v257_v39, %v807_v37  ;;  %v286_v41 = vpop.f32.mrf.mxu1 }
  0xa2   :  { %v287_v42 = vadd.f32 %v286_v41, %v809_v38 }
  0xa4   :  { %v364_v43 = vpack.c.bf16 %v287_v42, %v258_v40 }
  0xa6   :  { %380 = vst [vmem:[%s898_s3] sm:$0xff] %v364_v43 }
  0xa7   :  { %v315_v46 = vpop.f32.mrf.mxu2 }
  0xa8   :  { %v316_v47 = vadd.f32 %v315_v46, %v813_v44  ;;  %v344_v48 = vpop.f32.mrf.mxu3  ;;  %v259_v49 = vpop.f32.mrf.mxu0 }
  0xa9   :  { %v345_v50 = vadd.f32 %v344_v48, %v815_v45  ;;  %v260_v51 = vadd.f32 %v259_v49, %v807_v37  ;;  %v288_v52 = vpop.f32.mrf.mxu1 }
  0xaa   :  { %v289_v53 = vadd.f32 %v288_v52, %v809_v38 }
  0xab   :  { %v365_v54 = vpack.c.bf16 %v345_v50, %v316_v47 }
  0xac   :  { %v366_v55 = vpack.c.bf16 %v289_v53, %v260_v51 }
  0xad   :  { %381 = vst [vmem:[%s898_s3 + $0x8] sm:$0xff] %v365_v54 }
  0xae   :  { %382 = vst [vmem:[%s898_s3 + $0x10] sm:$0xff] %v366_v55 }
  0xaf   :  { %v317_v56 = vpop.f32.mrf.mxu2 }
  0xb0   :  { %v318_v57 = vadd.f32 %v317_v56, %v813_v44  ;;  %v346_v58 = vpop.f32.mrf.mxu3  ;;  %v262_v59 = vpop.f32.mrf.mxu0 }
  0xb1   :  { %v347_v60 = vadd.f32 %v346_v58, %v815_v45  ;;  %v263_v61 = vadd.f32 %v262_v59, %v807_v37  ;;  %v291_v62 = vpop.f32.mrf.mxu1 }
  0xb2   :  { %v292_v63 = vadd.f32 %v291_v62, %v809_v38 }
  0xb3   :  { %v367_v0 = vpack.c.bf16 %v347_v60, %v318_v57 }
  0xb4   :  { %v368_v1 = vpack.c.bf16 %v292_v63, %v263_v61 }
  0xb5   :  { %383 = vst [vmem:[%s898_s3 + $0x18] sm:$0xff] %v367_v0 }
  0xb6   :  { %384 = vst [vmem:[%s898_s3 + $0x20] sm:$0xff] %v368_v1 }
  0xb7   :  { %v320_v2 = vpop.f32.mrf.mxu2 }
  0xb8   :  { %v321_v3 = vadd.f32 %v320_v2, %v813_v44  ;;  %v349_v4 = vpop.f32.mrf.mxu3  ;;  %v264_v5 = vpop.f32.mrf.mxu0 }
  0xb9   :  { %v350_v6 = vadd.f32 %v349_v4, %v815_v45  ;;  %v265_v7 = vadd.f32 %v264_v5, %v807_v37  ;;  %v293_v8 = vpop.f32.mrf.mxu1 }
  0xba   :  { %v294_v9 = vadd.f32 %v293_v8, %v809_v38 }
  0xbb   :  { %v369_v10 = vpack.c.bf16 %v350_v6, %v321_v3 }
  0xbc   :  { %v370_v11 = vpack.c.bf16 %v294_v9, %v265_v7 }
  0xbd   :  { %385 = vst [vmem:[%s898_s3 + $0x28] sm:$0xff] %v369_v10 }
  0xbe   :  { %386 = vst [vmem:[%s898_s3 + $0x30] sm:$0xff] %v370_v11 }
  0xbf   :  { %v322_v12 = vpop.f32.mrf.mxu2 }
  0xc0   :  { %v323_v13 = vadd.f32 %v322_v12, %v813_v44  ;;  %v351_v14 = vpop.f32.mrf.mxu3  ;;  %v267_v15 = vpop.f32.mrf.mxu0 }
  0xc1   :  { %v352_v16 = vadd.f32 %v351_v14, %v815_v45  ;;  %v268_v17 = vadd.f32 %v267_v15, %v807_v37  ;;  %v296_v18 = vpop.f32.mrf.mxu1 }
  0xc2   :  { %v297_v19 = vadd.f32 %v296_v18, %v809_v38 }
  0xc3   :  { %v371_v20 = vpack.c.bf16 %v352_v16, %v323_v13 }
  0xc4   :  { %v372_v21 = vpack.c.bf16 %v297_v19, %v268_v17 }
  0xc5   :  { %387 = vst [vmem:[%s898_s3 + $0x38] sm:$0xff] %v371_v20 }
  0xc6   :  { %388 = vst [vmem:[%s898_s3 + $0x40] sm:$0xff] %v372_v21 }
  0xc7   :  { %v325_v22 = vpop.f32.mrf.mxu2 }
  0xc8   :  { %v326_v23 = vadd.f32 %v325_v22, %v813_v44  ;;  %v354_v24 = vpop.f32.mrf.mxu3  ;;  %v269_v25 = vpop.f32.mrf.mxu0 }
  0xc9   :  { %v355_v26 = vadd.f32 %v354_v24, %v815_v45  ;;  %v270_v27 = vadd.f32 %v269_v25, %v807_v37  ;;  %v298_v28 = vpop.f32.mrf.mxu1 }
  0xca   :  { %v299_v29 = vadd.f32 %v298_v28, %v809_v38 }
  0xcb   :  { %v373_v30 = vpack.c.bf16 %v355_v26, %v326_v23 }
  0xcc   :  { %v374_v31 = vpack.c.bf16 %v299_v29, %v270_v27 }
  0xcd   :  { %389 = vst [vmem:[%s898_s3 + $0x48] sm:$0xff] %v373_v30 }
  0xce   :  { %390 = vst [vmem:[%s898_s3 + $0x50] sm:$0xff] %v374_v31 }
  0xcf   :  { %v327_v32 = vpop.f32.mrf.mxu2 }
  0xd0   :  { %v328_v33 = vadd.f32 %v327_v32, %v813_v44  ;;  %v356_v34 = vpop.f32.mrf.mxu3  ;;  %v272_v35 = vpop.f32.mrf.mxu0 }
  0xd1   :  { %v357_v36 = vadd.f32 %v356_v34, %v815_v45  ;;  %v273_v39 = vadd.f32 %v272_v35, %v807_v37  ;;  %v301_v40 = vpop.f32.mrf.mxu1 }
  0xd2   :  { %v302_v41 = vadd.f32 %v301_v40, %v809_v38 }
  0xd3   :  { %v375_v42 = vpack.c.bf16 %v357_v36, %v328_v33 }
  0xd4   :  { %v376_v43 = vpack.c.bf16 %v302_v41, %v273_v39 }
  0xd5   :  { %391 = vst [vmem:[%s898_s3 + $0x58] sm:$0xff] %v375_v42 }
  0xd6   :  { %392 = vst [vmem:[%s898_s3 + $0x60] sm:$0xff] %v376_v43 }
  0xd7   :  { %v330_v46 = vpop.f32.mrf.mxu2 }
  0xd8   :  { %v331_v47 = vadd.f32 %v330_v46, %v813_v44  ;;  %v359_v48 = vpop.f32.mrf.mxu3  ;;  %v274_v49 = vpop.f32.mrf.mxu0 }
  0xd9   :  { %v360_v50 = vadd.f32 %v359_v48, %v815_v45  ;;  %v275_v51 = vadd.f32 %v274_v49, %v807_v37  ;;  %v303_v52 = vpop.f32.mrf.mxu1 }
  0xda   :  { %v304_v53 = vadd.f32 %v303_v52, %v809_v38 }
  0xdb   :  { %v377_v54 = vpack.c.bf16 %v360_v50, %v331_v47 }
  0xdc   :  { %v378_v55 = vpack.c.bf16 %v304_v53, %v275_v51 }
  0xdd   :  { %393 = vst [vmem:[%s898_s3 + $0x68] sm:$0xff] %v377_v54 }
  0xde   :  { %394 = vst [vmem:[%s898_s3 + $0x70] sm:$0xff] %v378_v55 }
  0xdf   :  { %v332_v56 = vpop.f32.mrf.mxu2 }
  0xe0   :  { %v333_v57 = vadd.f32 %v332_v56, %v813_v44  ;;  %v361_v58 = vpop.f32.mrf.mxu3 }
  0xe1   :  { %v362_v59 = vadd.f32 %v361_v58, %v815_v45 }
  0xe3   :  { %v379_v37 = vpack.c.bf16 %v362_v59, %v333_v57 }
  0xe5   :  { %395 = vst [vmem:[%s898_s3 + $0x78] sm:$0xff] %v379_v37 }

// kernel: rnn_language_model_forward.9
= control target key start
LH: loop header
LB: loop body
LE: loop exit
PB: predicated region body
PF: predicated region fallthrough
CT: control target
= control target key end

     0   :  { %s490_s0 = inlined_call_operand.vmem [shape: bf16[64,128], index: 0, kind: input, shape index: {}]   ;;  %s491_s1 = inlined_call_operand.vmem [shape: bf16[256,128], index: 1, kind: input, shape index: {}]   ;;  %s492_s2 = inlined_call_operand.hbm [shape: f32[64,256], index: 2, kind: output, shape index: {}]  }
   0x1   :  { %v355_v0 = vld [vmem:[%s491_s1 + $0x38] sm:$0xff] }
   0x2   :  { %v363_v1 = vld [vmem:[%s491_s1 + $0x78] sm:$0xff]  ;;  %172 = vmatpush.bf16.xpose.msra.mxu0 %v355_v0  ;;  %364 = vmatpush.bf16.xpose.msra.mxu2 %v355_v0 }
   0x3   :  { %201 = vmatpush.bf16.xpose.msra.mxu1 %v363_v1  ;;  %372 = vmatpush.bf16.xpose.msra.mxu3 %v363_v1 }
   0x4   :  { %7 = vsyncpa [#allocation3], 0  ;;  %v354_v2 = vld [vmem:[%s491_s1 + $0x30] sm:$0xff]  ;;  %v353_v4 = vld [vmem:[%s491_s1 + $0x28] sm:$0xff]  ;;  %s252_s23 = sshll.u32 %s492_s2, 4  ;;  %s410_s24 = smov 256   ;;  %s253_s23 = int_to_ptr.hbm [resolvable:$true] %s252_s23 }
   0x5   :  { %v362_v3 = vld [vmem:[%s491_s1 + $0x70] sm:$0xff]  ;;  %v361_v5 = vld [vmem:[%s491_s1 + $0x68] sm:$0xff]  ;;  %v352_v6 = vld [vmem:[%s491_s1 + $0x20] sm:$0xff]  ;;  %s411_s25 = smov 16  }
   0x6   :  { %v360_v7 = vld [vmem:[%s491_s1 + $0x60] sm:$0xff]  ;;  %v351_v8 = vld [vmem:[%s491_s1 + $0x18] sm:$0xff]  ;;  %v350_v10 = vld [vmem:[%s491_s1 + $0x10] sm:$0xff] }
   0x7   :  { %v359_v9 = vld [vmem:[%s491_s1 + $0x58] sm:$0xff]  ;;  %v358_v11 = vld [vmem:[%s491_s1 + $0x50] sm:$0xff]  ;;  %v349_v12 = vld [vmem:[%s491_s1 + $0x8] sm:$0xff] }
   0x8   :  { %v357_v13 = vld [vmem:[%s491_s1 + $0x48] sm:$0xff]  ;;  %v348_v14 = vld [vmem:[%s491_s1] sm:$0xff]  ;;  %v346_v17 = vld [vmem:[%s490_s0 + $0x10] sm:$0xff] }
   0x9   :  { %v356_v15 = vld [vmem:[%s491_s1 + $0x40] sm:$0xff]  ;;  %v345_v18 = vld [vmem:[%s490_s0 + $0x8] sm:$0xff]  ;;  %v347_v19 = vld [vmem:[%s490_s0 + $0x18] sm:$0xff] }
   0xa   :  { %173 = vmatpush.bf16.xpose.msra.mxu0 %v354_v2  ;;  %365 = vmatpush.bf16.xpose.msra.mxu2 %v354_v2  ;;  %v344_v16 = vld [vmem:[%s490_s0] sm:$0xff]  ;;  %s409_s0 = smov [#allocation2]  }
   0xb   :  { %202 = vmatpush.bf16.xpose.msra.mxu1 %v362_v3  ;;  %373 = vmatpush.bf16.xpose.msra.mxu3 %v362_v3  ;;  %s250_s20 = sshll.u32 %s409_s0, 4  ;;  %s251_s20 = int_to_ptr.vmem [resolvable:$true] %s250_s20 }
  0x12   :  { %174 = vmatpush.bf16.xpose.msra.mxu0 %v353_v4  ;;  %366 = vmatpush.bf16.xpose.msra.mxu2 %v353_v4 }
  0x13   :  { %203 = vmatpush.bf16.xpose.msra.mxu1 %v361_v5  ;;  %374 = vmatpush.bf16.xpose.msra.mxu3 %v361_v5 }
  0x1a   :  { %175 = vmatpush.bf16.xpose.msra.mxu0 %v352_v6  ;;  %367 = vmatpush.bf16.xpose.msra.mxu2 %v352_v6 }
  0x1b   :  { %204 = vmatpush.bf16.xpose.msra.mxu1 %v360_v7  ;;  %375 = vmatpush.bf16.xpose.msra.mxu3 %v360_v7 }
  0x22   :  { %176 = vmatpush.bf16.xpose.msra.mxu0 %v351_v8  ;;  %368 = vmatpush.bf16.xpose.msra.mxu2 %v351_v8 }
  0x23   :  { %205 = vmatpush.bf16.xpose.msra.mxu1 %v359_v9  ;;  %376 = vmatpush.bf16.xpose.msra.mxu3 %v359_v9 }
  0x2a   :  { %177 = vmatpush.bf16.xpose.msra.mxu0 %v350_v10  ;;  %369 = vmatpush.bf16.xpose.msra.mxu2 %v350_v10 }
  0x2b   :  { %206 = vmatpush.bf16.xpose.msra.mxu1 %v358_v11  ;;  %377 = vmatpush.bf16.xpose.msra.mxu3 %v358_v11 }
  0x32   :  { %178 = vmatpush.bf16.xpose.msra.mxu0 %v349_v12  ;;  %370 = vmatpush.bf16.xpose.msra.mxu2 %v349_v12 }
  0x33   :  { %207 = vmatpush.bf16.xpose.msra.mxu1 %v357_v13  ;;  %378 = vmatpush.bf16.xpose.msra.mxu3 %v357_v13 }
  0x3a   :  { %179 = vmatpush.bf16.xpose.msra.mxu0 %v348_v14  ;;  %371 = vmatpush.bf16.xpose.msra.mxu2 %v348_v14 }
  0x3b   :  { %208 = vmatpush.bf16.xpose.msra.mxu1 %v356_v15  ;;  %379 = vmatpush.bf16.xpose.msra.mxu3 %v356_v15 }
  0x41   :  { %180 = vmatmul.bf16.vlgmr.msra.gmra.mxu0 %v344_v16  ;;  %190 = vmatmul.bf16.vlgmr.msra.gmra.mxu2 %v346_v17 }
  0x42   :  { %209 = vmatmul.bf16.vlgmr.msra.gmra.mxu1 %v344_v16  ;;  %219 = vmatmul.bf16.vlgmr.msra.gmra.mxu3 %v346_v17 }
  0x51   :  { %185 = vmatmul.bf16.gmra.mxu0 %v345_v18  ;;  %195 = vmatmul.bf16.gmra.mxu2 %v347_v19 }
  0x52   :  { %214 = vmatmul.bf16.gmra.mxu1 %v345_v18  ;;  %224 = vmatmul.bf16.gmra.mxu3 %v347_v19 }
  0xbe   :  { %v181_v20 = vpop.f32.mrf.mxu0 }
  0xbf   :  { %230 = vst [vmem:[#allocation2] sm:$0xff] %v181_v20  ;;  %v210_v21 = vpop.f32.mrf.mxu1 }
  0xc0   :  { %231 = vst [vmem:[#allocation2 + $0x8] sm:$0xff] %v210_v21 }
  0xc4   :  { %v191_v22 = vpop.f32.mrf.mxu2 }
  0xc5   :  { %238 = vst [vmem:[#allocation2 + $0x40] sm:$0xff] %v191_v22  ;;  %v220_v23 = vpop.f32.mrf.mxu3 }
  0xc6   :  { %239 = vst [vmem:[#allocation2 + $0x48] sm:$0xff] %v220_v23  ;;  %v183_v24 = vpop.f32.mrf.mxu0 }
  0xc7   :  { %232 = vst [vmem:[#allocation2 + $0x10] sm:$0xff] %v183_v24  ;;  %v212_v25 = vpop.f32.mrf.mxu1 }
  0xc8   :  { %233 = vst [vmem:[#allocation2 + $0x18] sm:$0xff] %v212_v25 }
  0xcc   :  { %v193_v26 = vpop.f32.mrf.mxu2 }
  0xcd   :  { %240 = vst [vmem:[#allocation2 + $0x50] sm:$0xff] %v193_v26  ;;  %v222_v27 = vpop.f32.mrf.mxu3 }
  0xce   :  { %241 = vst [vmem:[#allocation2 + $0x58] sm:$0xff] %v222_v27  ;;  %v186_v28 = vpop.f32.mrf.mxu0 }
  0xcf   :  { %234 = vst [vmem:[#allocation2 + $0x20] sm:$0xff] %v186_v28  ;;  %v215_v29 = vpop.f32.mrf.mxu1 }
  0xd0   :  { %235 = vst [vmem:[#allocation2 + $0x28] sm:$0xff] %v215_v29 }
  0xd4   :  { %v196_v30 = vpop.f32.mrf.mxu2 }
  0xd5   :  { %242 = vst [vmem:[#allocation2 + $0x60] sm:$0xff] %v196_v30  ;;  %v225_v31 = vpop.f32.mrf.mxu3 }
  0xd6   :  { %243 = vst [vmem:[#allocation2 + $0x68] sm:$0xff] %v225_v31  ;;  %v188_v32 = vpop.f32.mrf.mxu0 }
  0xd7   :  { %236 = vst [vmem:[#allocation2 + $0x30] sm:$0xff] %v188_v32  ;;  %v217_v33 = vpop.f32.mrf.mxu1 }
  0xd8   :  { %237 = vst [vmem:[#allocation2 + $0x38] sm:$0xff] %v217_v33 }
  0xdc   :  { %v198_v34 = vpop.f32.mrf.mxu2 }
  0xdd   :  { %244 = vst [vmem:[#allocation2 + $0x70] sm:$0xff] %v198_v34  ;;  %v227_v35 = vpop.f32.mrf.mxu3 }
  0xde   :  { %245 = vst [vmem:[#allocation2 + $0x78] sm:$0xff] %v227_v35 }
  0xdf   :  { %258 = dma.vmem_to_hbm [thread:$0]  %s251_s20, 2048, %s253_s23, [#allocation3], %s410_s24, %s410_s24, %s411_s25  }
  0xe0   :  { %407 = dma.done.wait [#allocation3], 2048  }
  0xe1   :  { %408 = vsyncadd [#allocation3], 4294965248 }
  0xe2   :  { %263 = vsyncpa [#allocation3], 1 }

// kernel: rnn_language_model_forward.7
= control target key start
LH: loop header
LB: loop body
LE: loop exit
PB: predicated region body
PF: predicated region fallthrough
CT: control target
= control target key end

     0   :  { %8 = vsyncpa [#allocation3], 0  ;;  %s626_s15 = smov [#allocation2]   ;;  %s627_s17 = smov 256   ;;  %s755_s0 = inlined_call_operand.vmem [shape: bf16[64,128], index: 0, kind: input, shape index: {}]   ;;  %s756_s1 = inlined_call_operand.hbm [shape: bf16[128,512], index: 1, kind: input, shape index: {}]   ;;  %s757_s2 = inlined_call_operand.vmem [shape: f32[1,512], index: 2, kind: input, shape index: {}]   ;;  %s758_s3 = inlined_call_operand.vmem [shape: bf16[64,512], index: 3, kind: output, shape index: {}]  }
   0x1   :  { %s15_s14 = sshll.u32 %s756_s1, 4  ;;  %s17_s16 = sshll.u32 %s626_s15, 4  ;;  %s16_s14 = int_to_ptr.hbm [resolvable:$true] %s15_s14  ;;  %s18_s16 = int_to_ptr.vmem [resolvable:$true] %s17_s16 }
   0x2   :  { %s628_s18 = smov 16  }
   0x3   :  { %23 = dma.hbm_to_vmem [thread:$0]  %s16_s14, 4096, %s18_s16, [#allocation3], %s627_s17, %s627_s17, %s628_s18  }
   0x4   :  { %624 = dma.done.wait [#allocation3], 4096  }
   0x5   :  { %625 = vsyncadd [#allocation3], 4294963200  ;;  %v547_v0 = vld [vmem:[#allocation2 + $0xe0] sm:$0xf]  ;;  %v595_v1 = vld [vmem:[#allocation2 + $0xec] sm:$0xf0] }
   0x6   :  { %v593_v2 = vld [vmem:[#allocation2 + $0xe4] sm:$0xf]  ;;  %v548_v3 = vor.u32 %v595_v1, %v547_v0  ;;  %v549_v4 = vld [vmem:[#allocation2 + $0xf0] sm:$0xf0]  ;;  %v555_v5 = vld [vmem:[#allocation2 + $0xe8] sm:$0xf] }
   0x7   :  { %v596_v6 = vld [vmem:[#allocation2 + $0xf4] sm:$0xf0]  ;;  %v552_v7 = vor.u32 %v593_v2, %v549_v4  ;;  %v594_v9 = vld [vmem:[#allocation2 + $0xec] sm:$0xf]  ;;  %v557_v10 = vld [vmem:[#allocation2 + $0xf8] sm:$0xf0] }
   0x8   :  { %v556_v8 = vor.u32 %v596_v6, %v555_v5  ;;  %v531_v11 = vld [vmem:[#allocation2 + $0xc0] sm:$0xf]  ;;  %264 = vmatpush.bf16.msra.mxu0 %v548_v3  ;;  %v560_v12 = vor.u32 %v594_v9, %v557_v10  ;;  %v591_v13 = vld [vmem:[#allocation2 + $0xcc] sm:$0xf0]  ;;  %v589_v14 = vld [vmem:[#allocation2 + $0xc4] sm:$0xf] }
   0x9   :  { %v533_v15 = vld [vmem:[#allocation2 + $0xd0] sm:$0xf0]  ;;  %293 = vmatpush.bf16.msra.mxu1 %v552_v7  ;;  %v532_v16 = vor.u32 %v591_v13, %v531_v11  ;;  %v539_v18 = vld [vmem:[#allocation2 + $0xc8] sm:$0xf]  ;;  %v592_v19 = vld [vmem:[#allocation2 + $0xd4] sm:$0xf0] }
   0xa   :  { %322 = vmatpush.bf16.msra.mxu2 %v556_v8  ;;  %v536_v17 = vor.u32 %v589_v14, %v533_v15  ;;  %v590_v20 = vld [vmem:[#allocation2 + $0xcc] sm:$0xf]  ;;  %351 = vmatpush.bf16.msra.mxu3 %v560_v12  ;;  %v540_v21 = vor.u32 %v592_v19, %v539_v18  ;;  %v541_v22 = vld [vmem:[#allocation2 + $0xd8] sm:$0xf0]  ;;  %v515_v23 = vld [vmem:[#allocation2 + $0xa0] sm:$0xf] }
   0xb   :  { %v587_v24 = vld [vmem:[#allocation2 + $0xac] sm:$0xf0]  ;;  %v544_v25 = vor.u32 %v590_v20, %v541_v22  ;;  %v585_v26 = vld [vmem:[#allocation2 + $0xa4] sm:$0xf]  ;;  %v517_v27 = vld [vmem:[#allocation2 + $0xb0] sm:$0xf0] }
   0xc   :  { %v523_v28 = vld [vmem:[#allocation2 + $0xa8] sm:$0xf]  ;;  %265 = vmatpush.bf16.msra.mxu0 %v532_v16  ;;  %v516_v29 = vor.u32 %v587_v24, %v515_v23  ;;  %v588_v30 = vld [vmem:[#allocation2 + $0xb4] sm:$0xf0]  ;;  %v586_v31 = vld [vmem:[#allocation2 + $0xac] sm:$0xf]  ;;  %v520_v33 = vor.u32 %v585_v26, %v517_v27 }
   0xd   :  { %v525_v32 = vld [vmem:[#allocation2 + $0xb8] sm:$0xf0]  ;;  %294 = vmatpush.bf16.msra.mxu1 %v536_v17  ;;  %v524_v34 = vor.u32 %v588_v30, %v523_v28  ;;  %v499_v35 = vld [vmem:[#allocation2 + $0x80] sm:$0xf]  ;;  %v583_v36 = vld [vmem:[#allocation2 + $0x8c] sm:$0xf0] }
   0xe   :  { %323 = vmatpush.bf16.msra.mxu2 %v540_v21  ;;  %v581_v37 = vld [vmem:[#allocation2 + $0x84] sm:$0xf]  ;;  %352 = vmatpush.bf16.msra.mxu3 %v544_v25  ;;  %v528_v38 = vor.u32 %v586_v31, %v525_v32  ;;  %v501_v39 = vld [vmem:[#allocation2 + $0x90] sm:$0xf0]  ;;  %v507_v40 = vld [vmem:[#allocation2 + $0x88] sm:$0xf]  ;;  %v500_v44 = vor.u32 %v583_v36, %v499_v35 }
   0xf   :  { %v584_v41 = vld [vmem:[#allocation2 + $0x94] sm:$0xf0]  ;;  %v582_v42 = vld [vmem:[#allocation2 + $0x8c] sm:$0xf]  ;;  %v509_v43 = vld [vmem:[#allocation2 + $0x98] sm:$0xf0]  ;;  %v504_v45 = vor.u32 %v581_v37, %v501_v39 }
  0x10   :  { %266 = vmatpush.bf16.msra.mxu0 %v516_v29  ;;  %v508_v46 = vor.u32 %v584_v41, %v507_v40  ;;  %v483_v47 = vld [vmem:[#allocation2 + $0x60] sm:$0xf]  ;;  %v579_v48 = vld [vmem:[#allocation2 + $0x6c] sm:$0xf0]  ;;  %v577_v49 = vld [vmem:[#allocation2 + $0x64] sm:$0xf]  ;;  %v512_v50 = vor.u32 %v582_v42, %v509_v43 }
  0x11   :  { %295 = vmatpush.bf16.msra.mxu1 %v520_v33  ;;  %v485_v51 = vld [vmem:[#allocation2 + $0x70] sm:$0xf0]  ;;  %v491_v52 = vld [vmem:[#allocation2 + $0x68] sm:$0xf]  ;;  %v580_v53 = vld [vmem:[#allocation2 + $0x74] sm:$0xf0]  ;;  %v484_v56 = vor.u32 %v579_v48, %v483_v47 }
  0x12   :  { %324 = vmatpush.bf16.msra.mxu2 %v524_v34  ;;  %353 = vmatpush.bf16.msra.mxu3 %v528_v38  ;;  %v578_v54 = vld [vmem:[#allocation2 + $0x6c] sm:$0xf]  ;;  %v493_v55 = vld [vmem:[#allocation2 + $0x78] sm:$0xf0]  ;;  %v488_v57 = vor.u32 %v577_v49, %v485_v51  ;;  %v492_v58 = vor.u32 %v580_v53, %v491_v52  ;;  %v467_v59 = vld [vmem:[#allocation2 + $0x40] sm:$0xf] }
  0x13   :  { %v575_v60 = vld [vmem:[#allocation2 + $0x4c] sm:$0xf0]  ;;  %v573_v61 = vld [vmem:[#allocation2 + $0x44] sm:$0xf]  ;;  %v496_v62 = vor.u32 %v578_v54, %v493_v55  ;;  %v469_v63 = vld [vmem:[#allocation2 + $0x50] sm:$0xf0] }
  0x14   :  { %267 = vmatpush.bf16.msra.mxu0 %v500_v44  ;;  %v475_v0 = vld [vmem:[#allocation2 + $0x48] sm:$0xf]  ;;  %v576_v1 = vld [vmem:[#allocation2 + $0x54] sm:$0xf0]  ;;  %v574_v2 = vld [vmem:[#allocation2 + $0x4c] sm:$0xf]  ;;  %v468_v4 = vor.u32 %v575_v60, %v467_v59  ;;  %v472_v5 = vor.u32 %v573_v61, %v469_v63 }
  0x15   :  { %296 = vmatpush.bf16.msra.mxu1 %v504_v45  ;;  %v477_v3 = vld [vmem:[#allocation2 + $0x58] sm:$0xf0]  ;;  %v476_v6 = vor.u32 %v576_v1, %v475_v0  ;;  %v451_v7 = vld [vmem:[#allocation2 + $0x20] sm:$0xf]  ;;  %v571_v8 = vld [vmem:[#allocation2 + $0x2c] sm:$0xf0] }
  0x16   :  { %325 = vmatpush.bf16.msra.mxu2 %v508_v46  ;;  %354 = vmatpush.bf16.msra.mxu3 %v512_v50  ;;  %v569_v9 = vld [vmem:[#allocation2 + $0x24] sm:$0xf]  ;;  %v480_v10 = vor.u32 %v574_v2, %v477_v3  ;;  %v453_v11 = vld [vmem:[#allocation2 + $0x30] sm:$0xf0]  ;;  %v459_v12 = vld [vmem:[#allocation2 + $0x28] sm:$0xf]  ;;  %v452_v16 = vor.u32 %v571_v8, %v451_v7 }
  0x17   :  { %v572_v13 = vld [vmem:[#allocation2 + $0x34] sm:$0xf0]  ;;  %v570_v14 = vld [vmem:[#allocation2 + $0x2c] sm:$0xf]  ;;  %v461_v15 = vld [vmem:[#allocation2 + $0x38] sm:$0xf0]  ;;  %v456_v17 = vor.u32 %v569_v9, %v453_v11 }
  0x18   :  { %268 = vmatpush.bf16.msra.mxu0 %v484_v56  ;;  %v460_v18 = vor.u32 %v572_v13, %v459_v12  ;;  %v435_v19 = vld [vmem:[#allocation2] sm:$0xf]  ;;  %v567_v20 = vld [vmem:[#allocation2 + $0xc] sm:$0xf0]  ;;  %v565_v21 = vld [vmem:[#allocation2 + $0x4] sm:$0xf]  ;;  %v464_v22 = vor.u32 %v570_v14, %v461_v15 }
  0x19   :  { %297 = vmatpush.bf16.msra.mxu1 %v488_v57  ;;  %v437_v23 = vld [vmem:[#allocation2 + $0x10] sm:$0xf0]  ;;  %v443_v24 = vld [vmem:[#allocation2 + $0x8] sm:$0xf]  ;;  %v568_v25 = vld [vmem:[#allocation2 + $0x14] sm:$0xf0]  ;;  %v436_v28 = vor.u32 %v567_v20, %v435_v19 }
  0x1a   :  { %326 = vmatpush.bf16.msra.mxu2 %v492_v58  ;;  %355 = vmatpush.bf16.msra.mxu3 %v496_v62  ;;  %v566_v26 = vld [vmem:[#allocation2 + $0xc] sm:$0xf]  ;;  %v445_v27 = vld [vmem:[#allocation2 + $0x18] sm:$0xf0]  ;;  %v440_v29 = vor.u32 %v565_v21, %v437_v23  ;;  %v444_v30 = vor.u32 %v568_v25, %v443_v24  ;;  %v561_v32 = vld [vmem:[%s755_s0] sm:$0xff] }
  0x1b   :  { %v448_v31 = vor.u32 %v566_v26, %v445_v27  ;;  %v562_v33 = vld [vmem:[%s755_s0 + $0x8] sm:$0xff]  ;;  %v563_v34 = vld [vmem:[%s755_s0 + $0x10] sm:$0xff]  ;;  %v564_v35 = vld [vmem:[%s755_s0 + $0x18] sm:$0xff] }
  0x1c   :  { %269 = vmatpush.bf16.msra.mxu0 %v468_v4  ;;  %v70_v36 = vld [vmem:[%s757_s2] sm:$0xf] }
  0x1d   :  { %298 = vmatpush.bf16.msra.mxu1 %v472_v5  ;;  %v667_v37 = vperm.slane %v70_v36, 0  ;;  %v669_v38 = vperm.slane %v70_v36, 1  ;;  %v673_v44 = vperm.slane %v70_v36, 2  ;;  %v675_v45 = vperm.slane %v70_v36, 3 }
  0x1e   :  { %327 = vmatpush.bf16.msra.mxu2 %v476_v6  ;;  %356 = vmatpush.bf16.msra.mxu3 %v480_v10 }
  0x20   :  { %270 = vmatpush.bf16.msra.mxu0 %v452_v16 }
  0x21   :  { %299 = vmatpush.bf16.msra.mxu1 %v456_v17 }
  0x22   :  { %328 = vmatpush.bf16.msra.mxu2 %v460_v18  ;;  %357 = vmatpush.bf16.msra.mxu3 %v464_v22 }
  0x24   :  { %271 = vmatpush.bf16.msra.mxu0 %v436_v28 }
  0x25   :  { %300 = vmatpush.bf16.msra.mxu1 %v440_v29 }
  0x26   :  { %329 = vmatpush.bf16.msra.mxu2 %v444_v30  ;;  %358 = vmatpush.bf16.msra.mxu3 %v448_v31 }
  0x27   :  { %272 = vmatmul.bf16.vlgmr.msra.gmra.mxu0 %v561_v32 }
  0x28   :  { %301 = vmatmul.bf16.vlgmr.msra.gmra.mxu1 %v561_v32 }
  0x29   :  { %330 = vmatmul.bf16.vlgmr.msra.gmra.mxu2 %v561_v32  ;;  %359 = vmatmul.bf16.vlgmr.msra.gmra.mxu3 %v561_v32 }
  0x37   :  { %277 = vmatmul.bf16.gmra.mxu0 %v562_v33 }
  0x38   :  { %306 = vmatmul.bf16.gmra.mxu1 %v562_v33 }
  0x39   :  { %335 = vmatmul.bf16.gmra.mxu2 %v562_v33  ;;  %364 = vmatmul.bf16.gmra.mxu3 %v562_v33 }
  0x47   :  { %282 = vmatmul.bf16.gmra.mxu0 %v563_v34 }
  0x48   :  { %311 = vmatmul.bf16.gmra.mxu1 %v563_v34 }
  0x49   :  { %340 = vmatmul.bf16.gmra.mxu2 %v563_v34  ;;  %369 = vmatmul.bf16.gmra.mxu3 %v563_v34 }
  0x57   :  { %287 = vmatmul.bf16.gmra.mxu0 %v564_v35 }
  0x58   :  { %316 = vmatmul.bf16.gmra.mxu1 %v564_v35 }
  0x59   :  { %345 = vmatmul.bf16.gmra.mxu2 %v564_v35  ;;  %374 = vmatmul.bf16.gmra.mxu3 %v564_v35 }
  0xa4   :  { %v273_v39 = vpop.f32.mrf.mxu0 }
  0xa5   :  { %v274_v40 = vadd.f32 %v273_v39, %v667_v37  ;;  %v302_v41 = vpop.f32.mrf.mxu1 }
  0xa6   :  { %v303_v42 = vadd.f32 %v302_v41, %v669_v38 }
  0xa8   :  { %v380_v43 = vpack.c.bf16 %v303_v42, %v274_v40 }
  0xaa   :  { %396 = vst [vmem:[%s758_s3] sm:$0xff] %v380_v43 }
  0xac   :  { %v331_v46 = vpop.f32.mrf.mxu2  ;;  %v360_v48 = vpop.f32.mrf.mxu3 }
  0xad   :  { %v332_v47 = vadd.f32 %v331_v46, %v673_v44  ;;  %v275_v49 = vpop.f32.mrf.mxu0  ;;  %v361_v50 = vadd.f32 %v360_v48, %v675_v45  ;;  %v304_v52 = vpop.f32.mrf.mxu1 }
  0xae   :  { %v276_v51 = vadd.f32 %v275_v49, %v667_v37  ;;  %v305_v53 = vadd.f32 %v304_v52, %v669_v38 }
  0xaf   :  { %v381_v54 = vpack.c.bf16 %v361_v50, %v332_v47 }
  0xb0   :  { %v382_v55 = vpack.c.bf16 %v305_v53, %v276_v51 }
  0xb1   :  { %397 = vst [vmem:[%s758_s3 + $0x8] sm:$0xff] %v381_v54 }
  0xb2   :  { %398 = vst [vmem:[%s758_s3 + $0x10] sm:$0xff] %v382_v55 }
  0xb4   :  { %v333_v56 = vpop.f32.mrf.mxu2  ;;  %v362_v58 = vpop.f32.mrf.mxu3 }
  0xb5   :  { %v334_v57 = vadd.f32 %v333_v56, %v673_v44  ;;  %v278_v59 = vpop.f32.mrf.mxu0  ;;  %v363_v60 = vadd.f32 %v362_v58, %v675_v45  ;;  %v307_v62 = vpop.f32.mrf.mxu1 }
  0xb6   :  { %v279_v61 = vadd.f32 %v278_v59, %v667_v37  ;;  %v308_v63 = vadd.f32 %v307_v62, %v669_v38 }
  0xb7   :  { %v383_v0 = vpack.c.bf16 %v363_v60, %v334_v57 }
  0xb8   :  { %v384_v1 = vpack.c.bf16 %v308_v63, %v279_v61 }
  0xb9   :  { %399 = vst [vmem:[%s758_s3 + $0x18] sm:$0xff] %v383_v0 }
  0xba   :  { %400 = vst [vmem:[%s758_s3 + $0x20] sm:$0xff] %v384_v1 }
  0xbc   :  { %v336_v2 = vpop.f32.mrf.mxu2  ;;  %v365_v4 = vpop.f32.mrf.mxu3 }
  0xbd   :  { %v337_v3 = vadd.f32 %v336_v2, %v673_v44  ;;  %v280_v5 = vpop.f32.mrf.mxu0  ;;  %v366_v6 = vadd.f32 %v365_v4, %v675_v45  ;;  %v309_v8 = vpop.f32.mrf.mxu1 }
  0xbe   :  { %v281_v7 = vadd.f32 %v280_v5, %v667_v37  ;;  %v310_v9 = vadd.f32 %v309_v8, %v669_v38 }
  0xbf   :  { %v385_v10 = vpack.c.bf16 %v366_v6, %v337_v3 }
  0xc0   :  { %v386_v11 = vpack.c.bf16 %v310_v9, %v281_v7 }
  0xc1   :  { %401 = vst [vmem:[%s758_s3 + $0x28] sm:$0xff] %v385_v10 }
  0xc2   :  { %402 = vst [vmem:[%s758_s3 + $0x30] sm:$0xff] %v386_v11 }
  0xc4   :  { %v338_v12 = vpop.f32.mrf.mxu2  ;;  %v367_v14 = vpop.f32.mrf.mxu3 }
  0xc5   :  { %v339_v13 = vadd.f32 %v338_v12, %v673_v44  ;;  %v283_v15 = vpop.f32.mrf.mxu0  ;;  %v368_v16 = vadd.f32 %v367_v14, %v675_v45  ;;  %v312_v18 = vpop.f32.mrf.mxu1 }
  0xc6   :  { %v284_v17 = vadd.f32 %v283_v15, %v667_v37  ;;  %v313_v19 = vadd.f32 %v312_v18, %v669_v38 }
  0xc7   :  { %v387_v20 = vpack.c.bf16 %v368_v16, %v339_v13 }
  0xc8   :  { %v388_v21 = vpack.c.bf16 %v313_v19, %v284_v17 }
  0xc9   :  { %403 = vst [vmem:[%s758_s3 + $0x38] sm:$0xff] %v387_v20 }
  0xca   :  { %404 = vst [vmem:[%s758_s3 + $0x40] sm:$0xff] %v388_v21 }
  0xcc   :  { %v341_v22 = vpop.f32.mrf.mxu2  ;;  %v370_v24 = vpop.f32.mrf.mxu3 }
  0xcd   :  { %v342_v23 = vadd.f32 %v341_v22, %v673_v44  ;;  %v285_v25 = vpop.f32.mrf.mxu0  ;;  %v371_v26 = vadd.f32 %v370_v24, %v675_v45  ;;  %v314_v28 = vpop.f32.mrf.mxu1 }
  0xce   :  { %v286_v27 = vadd.f32 %v285_v25, %v667_v37  ;;  %v315_v29 = vadd.f32 %v314_v28, %v669_v38 }
  0xcf   :  { %v389_v30 = vpack.c.bf16 %v371_v26, %v342_v23 }
  0xd0   :  { %v390_v31 = vpack.c.bf16 %v315_v29, %v286_v27 }
  0xd1   :  { %405 = vst [vmem:[%s758_s3 + $0x48] sm:$0xff] %v389_v30 }
  0xd2   :  { %406 = vst [vmem:[%s758_s3 + $0x50] sm:$0xff] %v390_v31 }
  0xd4   :  { %v343_v32 = vpop.f32.mrf.mxu2  ;;  %v372_v34 = vpop.f32.mrf.mxu3 }
  0xd5   :  { %v344_v33 = vadd.f32 %v343_v32, %v673_v44  ;;  %v288_v35 = vpop.f32.mrf.mxu0  ;;  %v373_v36 = vadd.f32 %v372_v34, %v675_v45  ;;  %v317_v40 = vpop.f32.mrf.mxu1 }
  0xd6   :  { %v289_v39 = vadd.f32 %v288_v35, %v667_v37  ;;  %v318_v41 = vadd.f32 %v317_v40, %v669_v38 }
  0xd7   :  { %v391_v42 = vpack.c.bf16 %v373_v36, %v344_v33 }
  0xd8   :  { %v392_v43 = vpack.c.bf16 %v318_v41, %v289_v39 }
  0xd9   :  { %407 = vst [vmem:[%s758_s3 + $0x58] sm:$0xff] %v391_v42 }
  0xda   :  { %408 = vst [vmem:[%s758_s3 + $0x60] sm:$0xff] %v392_v43 }
  0xdc   :  { %v346_v46 = vpop.f32.mrf.mxu2  ;;  %v375_v48 = vpop.f32.mrf.mxu3 }
  0xdd   :  { %v347_v47 = vadd.f32 %v346_v46, %v673_v44  ;;  %v290_v49 = vpop.f32.mrf.mxu0  ;;  %v376_v50 = vadd.f32 %v375_v48, %v675_v45  ;;  %v319_v52 = vpop.f32.mrf.mxu1 }
  0xde   :  { %v291_v51 = vadd.f32 %v290_v49, %v667_v37  ;;  %v320_v53 = vadd.f32 %v319_v52, %v669_v38 }
  0xdf   :  { %v393_v54 = vpack.c.bf16 %v376_v50, %v347_v47 }
  0xe0   :  { %v394_v55 = vpack.c.bf16 %v320_v53, %v291_v51 }
  0xe1   :  { %409 = vst [vmem:[%s758_s3 + $0x68] sm:$0xff] %v393_v54 }
  0xe2   :  { %410 = vst [vmem:[%s758_s3 + $0x70] sm:$0xff] %v394_v55 }
  0xe4   :  { %v348_v56 = vpop.f32.mrf.mxu2  ;;  %v377_v58 = vpop.f32.mrf.mxu3 }
  0xe5   :  { %v349_v57 = vadd.f32 %v348_v56, %v673_v44  ;;  %v378_v59 = vadd.f32 %v377_v58, %v675_v45 }
  0xe7   :  { %v395_v37 = vpack.c.bf16 %v378_v59, %v349_v57 }
  0xe9   :  { %411 = vst [vmem:[%s758_s3 + $0x78] sm:$0xff] %v395_v37 }
  0xea   :  { %416 = vsyncpa [#allocation3], 1 }

// kernel: rnn_language_model_forward.6
= control target key start
LH: loop header
LB: loop body
LE: loop exit
PB: predicated region body
PF: predicated region fallthrough
CT: control target
= control target key end

     0   :  { %10 = vsyncpa [#allocation5], 0  ;;  %s2221_s0 = inlined_call_operand.vmem [shape: bf16[8,8,512], index: 0, kind: input, shape index: {}]   ;;  %s2222_s1 = inlined_call_operand.hbm [shape: bf16[128,512], index: 1, kind: input, shape index: {}]   ;;  %s2223_s2 = inlined_call_operand.vmem [shape: bf16[8,8,128], index: 2, kind: output, shape index: {0}]   ;;  %s2224_s3 = inlined_call_operand.hbm [shape: f32[8,128], index: 3, kind: output, shape index: {1}]   ;;  %s2225_s4 = inlined_call_operand.hbm [shape: f32[8,128], index: 4, kind: output, shape index: {2}]  }
   0x1   :  { %11 = vsyncpa [#allocation6], 0 }
   0x2   :  { %12 = vsyncpa [#allocation9], 0  ;;  %s19_s17 = sshll.u32 %s2222_s1, 4  ;;  %s1761_s18 = smov [#allocation4]   ;;  %s20_s17 = int_to_ptr.hbm [resolvable:$true] %s19_s17 }
   0x3   :  { %s21_s19 = sshll.u32 %s1761_s18, 4  ;;  %s1762_s20 = smov 256   ;;  %s22_s19 = int_to_ptr.vmem [resolvable:$true] %s21_s19 }
   0x4   :  { %s1763_s21 = smov 16  }
   0x5   :  { %27 = dma.hbm_to_vmem [thread:$0]  %s20_s17, 4096, %s22_s19, [#allocation5], %s1762_s20, %s1762_s20, %s1763_s21  }
   0x6   :  { %1755 = dma.done.wait [#allocation5], 4096  }
   0x7   :  { %1756 = vsyncadd [#allocation5], 4294963200  ;;  %v1458_v0 = vld [vmem:[#allocation4 + $0xe0] sm:$0xf]  ;;  %v1547_v1 = vld [vmem:[#allocation4 + $0xec] sm:$0xf0] }
   0x8   :  { %v1545_v2 = vld [vmem:[#allocation4 + $0xe4] sm:$0xf]  ;;  %v1795_v3 = vor.u32 %v1547_v1, %v1458_v0  ;;  %v1460_v4 = vld [vmem:[#allocation4 + $0xf0] sm:$0xf0]  ;;  %v1466_v5 = vld [vmem:[#allocation4 + $0xe8] sm:$0xf] }
   0x9   :  { %v1548_v6 = vld [vmem:[#allocation4 + $0xf4] sm:$0xf0]  ;;  %v1797_v7 = vor.u32 %v1545_v2, %v1460_v4  ;;  %v1442_v9 = vld [vmem:[#allocation4 + $0xc0] sm:$0xf]  ;;  %v1543_v10 = vld [vmem:[#allocation4 + $0xcc] sm:$0xf0] }
   0xa   :  { %v1799_v8 = vor.u32 %v1548_v6, %v1466_v5  ;;  %v1541_v11 = vld [vmem:[#allocation4 + $0xc4] sm:$0xf]  ;;  %238 = vmatpush.bf16.msra.mxu0 %v1795_v3  ;;  %v1802_v12 = vor.u32 %v1543_v10, %v1442_v9  ;;  %v1444_v13 = vld [vmem:[#allocation4 + $0xd0] sm:$0xf0]  ;;  %v1450_v14 = vld [vmem:[#allocation4 + $0xc8] sm:$0xf] }
   0xb   :  { %v1544_v15 = vld [vmem:[#allocation4 + $0xd4] sm:$0xf0]  ;;  %251 = vmatpush.bf16.msra.mxu1 %v1797_v7  ;;  %v1806_v16 = vor.u32 %v1541_v11, %v1444_v13  ;;  %v1546_v18 = vld [vmem:[#allocation4 + $0xec] sm:$0xf]  ;;  %v1468_v19 = vld [vmem:[#allocation4 + $0xf8] sm:$0xf0] }
   0xc   :  { %264 = vmatpush.bf16.msra.mxu2 %v1799_v8  ;;  %v1808_v17 = vor.u32 %v1544_v15, %v1450_v14  ;;  %v1426_v20 = vld [vmem:[#allocation4 + $0xa0] sm:$0xf]  ;;  %v1810_v21 = vor.u32 %v1546_v18, %v1468_v19  ;;  %v1539_v22 = vld [vmem:[#allocation4 + $0xac] sm:$0xf0]  ;;  %v1537_v23 = vld [vmem:[#allocation4 + $0xa4] sm:$0xf] }
   0xd   :  { %v1428_v24 = vld [vmem:[#allocation4 + $0xb0] sm:$0xf0]  ;;  %v1434_v25 = vld [vmem:[#allocation4 + $0xa8] sm:$0xf]  ;;  %v1540_v26 = vld [vmem:[#allocation4 + $0xb4] sm:$0xf0]  ;;  %v1814_v28 = vor.u32 %v1539_v22, %v1426_v20 }
   0xe   :  { %v1542_v27 = vld [vmem:[#allocation4 + $0xcc] sm:$0xf]  ;;  %239 = vmatpush.bf16.msra.mxu0 %v1802_v12  ;;  %277 = vmatpush.bf16.msra.mxu3 %v1810_v21  ;;  %v1452_v29 = vld [vmem:[#allocation4 + $0xd8] sm:$0xf0]  ;;  %v1410_v30 = vld [vmem:[#allocation4 + $0x80] sm:$0xf]  ;;  %v1818_v32 = vor.u32 %v1537_v23, %v1428_v24  ;;  %v1820_v33 = vor.u32 %v1540_v26, %v1434_v25 }
   0xf   :  { %v1535_v31 = vld [vmem:[#allocation4 + $0x8c] sm:$0xf0]  ;;  %252 = vmatpush.bf16.msra.mxu1 %v1806_v16  ;;  %v1822_v34 = vor.u32 %v1542_v27, %v1452_v29  ;;  %v1533_v35 = vld [vmem:[#allocation4 + $0x84] sm:$0xf]  ;;  %v1412_v36 = vld [vmem:[#allocation4 + $0x90] sm:$0xf0] }
  0x10   :  { %265 = vmatpush.bf16.msra.mxu2 %v1808_v17  ;;  %v1418_v37 = vld [vmem:[#allocation4 + $0x88] sm:$0xf]  ;;  %v1536_v38 = vld [vmem:[#allocation4 + $0x94] sm:$0xf0]  ;;  %v1538_v39 = vld [vmem:[#allocation4 + $0xac] sm:$0xf]  ;;  %v1826_v41 = vor.u32 %v1535_v31, %v1410_v30  ;;  %v1832_v45 = vor.u32 %v1533_v35, %v1412_v36 }
  0x11   :  { %v1436_v40 = vld [vmem:[#allocation4 + $0xb8] sm:$0xf0]  ;;  %v1394_v43 = vld [vmem:[#allocation4 + $0x60] sm:$0xf]  ;;  %v1531_v44 = vld [vmem:[#allocation4 + $0x6c] sm:$0xf0]  ;;  %v1834_v46 = vor.u32 %v1536_v38, %v1418_v37 }
  0x12   :  { %240 = vmatpush.bf16.msra.mxu0 %v1814_v28  ;;  %278 = vmatpush.bf16.msra.mxu3 %v1822_v34  ;;  %v1828_v42 = vor.u32 %v1538_v39, %v1436_v40  ;;  %v1529_v47 = vld [vmem:[#allocation4 + $0x64] sm:$0xf]  ;;  %v1534_v48 = vld [vmem:[#allocation4 + $0x8c] sm:$0xf]  ;;  %v1420_v49 = vld [vmem:[#allocation4 + $0x98] sm:$0xf0]  ;;  %v1838_v53 = vor.u32 %v1531_v44, %v1394_v43 }
  0x13   :  { %253 = vmatpush.bf16.msra.mxu1 %v1818_v32  ;;  %v1396_v50 = vld [vmem:[#allocation4 + $0x70] sm:$0xf0]  ;;  %v1402_v51 = vld [vmem:[#allocation4 + $0x68] sm:$0xf]  ;;  %v1532_v52 = vld [vmem:[#allocation4 + $0x74] sm:$0xf0]  ;;  %v1840_v54 = vor.u32 %v1534_v48, %v1420_v49 }
  0x14   :  { %266 = vmatpush.bf16.msra.mxu2 %v1820_v33  ;;  %v1378_v55 = vld [vmem:[#allocation4 + $0x40] sm:$0xf]  ;;  %v1527_v56 = vld [vmem:[#allocation4 + $0x4c] sm:$0xf0]  ;;  %v1844_v57 = vor.u32 %v1529_v47, %v1396_v50  ;;  %v1846_v58 = vor.u32 %v1532_v52, %v1402_v51  ;;  %v1525_v59 = vld [vmem:[#allocation4 + $0x44] sm:$0xf] }
  0x15   :  { %v1530_v60 = vld [vmem:[#allocation4 + $0x6c] sm:$0xf]  ;;  %v1404_v61 = vld [vmem:[#allocation4 + $0x78] sm:$0xf0]  ;;  %v1380_v62 = vld [vmem:[#allocation4 + $0x50] sm:$0xf0]  ;;  %v1850_v1 = vor.u32 %v1527_v56, %v1378_v55 }
  0x16   :  { %241 = vmatpush.bf16.msra.mxu0 %v1826_v41  ;;  %279 = vmatpush.bf16.msra.mxu3 %v1828_v42  ;;  %v1386_v63 = vld [vmem:[#allocation4 + $0x48] sm:$0xf]  ;;  %v1528_v0 = vld [vmem:[#allocation4 + $0x54] sm:$0xf0]  ;;  %v1852_v2 = vor.u32 %v1530_v60, %v1404_v61  ;;  %v1362_v4 = vld [vmem:[#allocation4 + $0x20] sm:$0xf]  ;;  %v1856_v6 = vor.u32 %v1525_v59, %v1380_v62 }
  0x17   :  { %254 = vmatpush.bf16.msra.mxu1 %v1832_v45  ;;  %v1523_v5 = vld [vmem:[#allocation4 + $0x2c] sm:$0xf0]  ;;  %v1858_v9 = vor.u32 %v1528_v0, %v1386_v63  ;;  %v1521_v10 = vld [vmem:[#allocation4 + $0x24] sm:$0xf]  ;;  %v1526_v11 = vld [vmem:[#allocation4 + $0x4c] sm:$0xf] }
  0x18   :  { %267 = vmatpush.bf16.msra.mxu2 %v1834_v46  ;;  %v1388_v13 = vld [vmem:[#allocation4 + $0x58] sm:$0xf0]  ;;  %v1364_v14 = vld [vmem:[#allocation4 + $0x30] sm:$0xf0]  ;;  %v1370_v15 = vld [vmem:[#allocation4 + $0x28] sm:$0xf]  ;;  %v1862_v19 = vor.u32 %v1523_v5, %v1362_v4 }
  0x19   :  { %v1524_v18 = vld [vmem:[#allocation4 + $0x34] sm:$0xf0]  ;;  %v1864_v20 = vor.u32 %v1526_v11, %v1388_v13  ;;  %v1346_v22 = vld [vmem:[#allocation4] sm:$0xf]  ;;  %v1519_v23 = vld [vmem:[#allocation4 + $0xc] sm:$0xf0]  ;;  %v1868_v24 = vor.u32 %v1521_v10, %v1364_v14 }
  0x1a   :  { %242 = vmatpush.bf16.msra.mxu0 %v1838_v53  ;;  %280 = vmatpush.bf16.msra.mxu3 %v1840_v54  ;;  %v1870_v25 = vor.u32 %v1524_v18, %v1370_v15  ;;  %v1517_v26 = vld [vmem:[#allocation4 + $0x4] sm:$0xf]  ;;  %v1522_v27 = vld [vmem:[#allocation4 + $0x2c] sm:$0xf]  ;;  %v1372_v29 = vld [vmem:[#allocation4 + $0x38] sm:$0xf0]  ;;  %v1874_v36 = vor.u32 %v1519_v23, %v1346_v22 }
  0x1b   :  { %255 = vmatpush.bf16.msra.mxu1 %v1844_v57  ;;  %v1348_v30 = vld [vmem:[#allocation4 + $0x10] sm:$0xf0]  ;;  %v1354_v31 = vld [vmem:[#allocation4 + $0x8] sm:$0xf]  ;;  %v1520_v35 = vld [vmem:[#allocation4 + $0x14] sm:$0xf0]  ;;  %v1876_v37 = vor.u32 %v1522_v27, %v1372_v29 }
  0x1c   :  { %268 = vmatpush.bf16.msra.mxu2 %v1846_v58  ;;  %v1880_v38 = vor.u32 %v1517_v26, %v1348_v30  ;;  %v1882_v39 = vor.u32 %v1520_v35, %v1354_v31  ;;  %v1518_v40 = vld [vmem:[#allocation4 + $0xc] sm:$0xf]  ;;  %v1356_v43 = vld [vmem:[#allocation4 + $0x18] sm:$0xf0]  ;;  %v1764_v47 = vmov 0.0|0.0   ;;  %v70_v48 = vld [vmem:[%s2221_s0] sm:$0xff] }
  0x1d   :  { %v1888_v44 = vor.u32 %v1518_v40, %v1356_v43  ;;  %v72_v49 = vunpack.c.l.bf16 %v70_v48  ;;  %v73_v50 = vunpack.c.h.bf16 %v70_v48  ;;  %v71_v56 = vld [vmem:[%s2221_s0 + $0x8] sm:$0xff]  ;;  %s1327_s17 = sshll.u32 %s2225_s4, 4  ;;  %s1766_s18 = smov [#allocation7]   ;;  %s1328_s17 = int_to_ptr.hbm [resolvable:$true] %s1327_s17 }
  0x1e   :  { %243 = vmatpush.bf16.msra.mxu0 %v1850_v1  ;;  %281 = vmatpush.bf16.msra.mxu3 %v1852_v2  ;;  %v74_v62 = vunpack.c.l.bf16 %v71_v56  ;;  %v75_v22 = vunpack.c.h.bf16 %v71_v56  ;;  %s1314_s19 = sshll.u32 %s1766_s18, 4  ;;  %s1316_s21 = sshll.u32 %s2224_s3, 4  ;;  %s1315_s19 = int_to_ptr.vmem [resolvable:$true] %s1314_s19  ;;  %s1317_s21 = int_to_ptr.hbm [resolvable:$true] %s1316_s21 }
  0x1f   :  { %256 = vmatpush.bf16.msra.mxu1 %v1856_v6 }
  0x20   :  { %269 = vmatpush.bf16.msra.mxu2 %v1858_v9 }
  0x22   :  { %244 = vmatpush.bf16.msra.mxu0 %v1862_v19  ;;  %282 = vmatpush.bf16.msra.mxu3 %v1864_v20 }
  0x23   :  { %257 = vmatpush.bf16.msra.mxu1 %v1868_v24 }
  0x24   :  { %270 = vmatpush.bf16.msra.mxu2 %v1870_v25 }
  0x26   :  { %245 = vmatpush.bf16.msra.mxu0 %v1874_v36  ;;  %283 = vmatpush.bf16.msra.mxu3 %v1876_v37 }
  0x27   :  { %258 = vmatpush.bf16.msra.mxu1 %v1880_v38 }
  0x28   :  { %271 = vmatpush.bf16.msra.mxu2 %v1882_v39 }
  0x29   :  { %246 = vmatmul.bf16.vlgmr.msra.gmra.mxu0 %v1764_v47 }
  0x2a   :  { %371 = vmatpush.bf16.msrb.mxu0 %v1795_v3  ;;  %259 = vmatmul.bf16.vlgmr.msra.gmra.mxu1 %v1764_v47 }
  0x2b   :  { %384 = vmatpush.bf16.msrb.mxu1 %v1797_v7  ;;  %272 = vmatmul.bf16.vlgmr.msra.gmra.mxu2 %v1764_v47 }
  0x2c   :  { %397 = vmatpush.bf16.msrb.mxu2 %v1799_v8  ;;  %284 = vmatpush.bf16.msra.mxu3 %v1888_v44 }
  0x2e   :  { %372 = vmatpush.bf16.msrb.mxu0 %v1802_v12 }
  0x2f   :  { %385 = vmatpush.bf16.msrb.mxu1 %v1806_v16  ;;  %285 = vmatmul.bf16.vlgmr.msra.gmra.mxu3 %v1764_v47 }
  0x30   :  { %410 = vmatpush.bf16.msrb.mxu3 %v1810_v21  ;;  %398 = vmatpush.bf16.msrb.mxu2 %v1808_v17 }
  0x32   :  { %373 = vmatpush.bf16.msrb.mxu0 %v1814_v28 }
  0x33   :  { %386 = vmatpush.bf16.msrb.mxu1 %v1818_v32 }
  0x34   :  { %411 = vmatpush.bf16.msrb.mxu3 %v1822_v34  ;;  %399 = vmatpush.bf16.msrb.mxu2 %v1820_v33 }
  0x36   :  { %374 = vmatpush.bf16.msrb.mxu0 %v1826_v41 }
  0x37   :  { %387 = vmatpush.bf16.msrb.mxu1 %v1832_v45 }
  0x38   :  { %412 = vmatpush.bf16.msrb.mxu3 %v1828_v42  ;;  %400 = vmatpush.bf16.msrb.mxu2 %v1834_v46 }
  0x3a   :  { %375 = vmatpush.bf16.msrb.mxu0 %v1838_v53 }
  0x3b   :  { %388 = vmatpush.bf16.msrb.mxu1 %v1844_v57 }
  0x3c   :  { %413 = vmatpush.bf16.msrb.mxu3 %v1840_v54  ;;  %401 = vmatpush.bf16.msrb.mxu2 %v1846_v58 }
  0x3e   :  { %376 = vmatpush.bf16.msrb.mxu0 %v1850_v1 }
  0x3f   :  { %389 = vmatpush.bf16.msrb.mxu1 %v1856_v6 }
  0x40   :  { %414 = vmatpush.bf16.msrb.mxu3 %v1852_v2  ;;  %402 = vmatpush.bf16.msrb.mxu2 %v1858_v9 }
  0x42   :  { %377 = vmatpush.bf16.msrb.mxu0 %v1862_v19 }
  0x43   :  { %390 = vmatpush.bf16.msrb.mxu1 %v1868_v24 }
  0x44   :  { %415 = vmatpush.bf16.msrb.mxu3 %v1864_v20  ;;  %403 = vmatpush.bf16.msrb.mxu2 %v1870_v25 }
  0x46   :  { %378 = vmatpush.bf16.msrb.mxu0 %v1874_v36 }
  0x47   :  { %391 = vmatpush.bf16.msrb.mxu1 %v1880_v38 }
  0x48   :  { %416 = vmatpush.bf16.msrb.mxu3 %v1876_v37  ;;  %404 = vmatpush.bf16.msrb.mxu2 %v1882_v39 }
  0x4a   :  { %505 = vmatpush.bf16.msra.mxu0 %v1795_v3 }
  0x4b   :  { %518 = vmatpush.bf16.msra.mxu1 %v1797_v7 }
  0x4c   :  { %531 = vmatpush.bf16.msra.mxu2 %v1799_v8  ;;  %417 = vmatpush.bf16.msrb.mxu3 %v1888_v44 }
  0x4e   :  { %506 = vmatpush.bf16.msra.mxu0 %v1802_v12 }
  0x4f   :  { %519 = vmatpush.bf16.msra.mxu1 %v1806_v16 }
  0x50   :  { %544 = vmatpush.bf16.msra.mxu3 %v1810_v21  ;;  %532 = vmatpush.bf16.msra.mxu2 %v1808_v17 }
  0x52   :  { %507 = vmatpush.bf16.msra.mxu0 %v1814_v28 }
  0x53   :  { %520 = vmatpush.bf16.msra.mxu1 %v1818_v32 }
  0x54   :  { %545 = vmatpush.bf16.msra.mxu3 %v1822_v34  ;;  %533 = vmatpush.bf16.msra.mxu2 %v1820_v33 }
  0x56   :  { %508 = vmatpush.bf16.msra.mxu0 %v1826_v41 }
  0x57   :  { %521 = vmatpush.bf16.msra.mxu1 %v1832_v45 }
  0x58   :  { %546 = vmatpush.bf16.msra.mxu3 %v1828_v42  ;;  %534 = vmatpush.bf16.msra.mxu2 %v1834_v46 }
  0x5a   :  { %509 = vmatpush.bf16.msra.mxu0 %v1838_v53 }
  0x5b   :  { %522 = vmatpush.bf16.msra.mxu1 %v1844_v57 }
  0x5c   :  { %547 = vmatpush.bf16.msra.mxu3 %v1840_v54  ;;  %535 = vmatpush.bf16.msra.mxu2 %v1846_v58 }
  0x5e   :  { %510 = vmatpush.bf16.msra.mxu0 %v1850_v1 }
  0x5f   :  { %523 = vmatpush.bf16.msra.mxu1 %v1856_v6 }
  0x60   :  { %548 = vmatpush.bf16.msra.mxu3 %v1852_v2  ;;  %536 = vmatpush.bf16.msra.mxu2 %v1858_v9 }
  0x62   :  { %511 = vmatpush.bf16.msra.mxu0 %v1862_v19 }
  0x63   :  { %524 = vmatpush.bf16.msra.mxu1 %v1868_v24 }
  0x64   :  { %549 = vmatpush.bf16.msra.mxu3 %v1864_v20  ;;  %537 = vmatpush.bf16.msra.mxu2 %v1870_v25 }
  0x66   :  { %512 = vmatpush.bf16.msra.mxu0 %v1874_v36 }
  0x67   :  { %525 = vmatpush.bf16.msra.mxu1 %v1880_v38 }
  0x68   :  { %550 = vmatpush.bf16.msra.mxu3 %v1876_v37  ;;  %538 = vmatpush.bf16.msra.mxu2 %v1882_v39 }
  0x6c   :  { %551 = vmatpush.bf16.msra.mxu3 %v1888_v44 }
  0xa6   :  { %v247_v51 = vpop.f32.mrf.mxu0 }
  0xa7   :  { %v290_v52 = vadd.f32 %v247_v51, %v72_v49  ;;  %v260_v55 = vpop.f32.mrf.mxu1 }
  0xa8   :  { %v291_v59 = vadd.f32 %v260_v55, %v73_v50 }
  0xa9   :  { %v1472_v60 = vmul.f32 -1.442695, %v290_v52 }
  0xaa   :  { %v1473_v61 = vmul.f32 -1.442695, %v291_v59 }
  0xab   :  { %1555 = vpow2.f32 %v1472_v60 }
  0xac   :  { %1557 = vpow2.f32 %v1473_v61 }
  0xae   :  { %v273_v63 = vpop.f32.mrf.mxu2  ;;  %v249_v4 = vpop.f32.mrf.mxu0 }
  0xaf   :  { %v292_v0 = vadd.f32 %v273_v63, %v74_v62  ;;  %v262_v5 = vpop.f32.mrf.mxu1 }
  0xb1   :  { %v1474_v10 = vmul.f32 -1.442695, %v292_v0  ;;  %v1556_v11 = vpop.eup %1555 }
  0xb2   :  { %v286_v13 = vpop.f32.mrf.mxu3  ;;  %v1558_v14 = vpop.eup %1557  ;;  %v303_v15 = vadd.f32 1.0, %v1556_v11 }
  0xb3   :  { %1559 = vpow2.f32 %v1474_v10  ;;  %v304_v18 = vadd.f32 1.0, %v1558_v14  ;;  %v293_v27 = vadd.f32 %v286_v13, %v75_v22 }
  0xb4   :  { %1561 = vrcp.f32 %v303_v15  ;;  %v317_v49 = vand.u32 2147483648, %v303_v15  ;;  %v315_v52 = vand.u32 2147483647, %v303_v15  ;;  %vm311_vm2 = vweird.f32 %v303_v15 }
  0xb5   :  { %1563 = vrcp.f32 %v304_v18  ;;  %v332_v50 = vand.u32 2147483648, %v304_v18  ;;  %v330_v56 = vand.u32 2147483647, %v304_v18  ;;  %vm326_vm3 = vweird.f32 %v304_v18 }
  0xb6   :  { %v275_v23 = vpop.f32.mrf.mxu2  ;;  %v318_v63 = vor.u32 1.1754944e-38, %v317_v49  ;;  %vm316_vm5 = vcmp.eq.f32.partialorder %v315_v52, 8.507059e+37 }
  0xb7   :  { %v333_v4 = vor.u32 1.1754944e-38, %v332_v50  ;;  %vm331_vm7 = vcmp.eq.f32.partialorder %v330_v56, 8.507059e+37 }
  0xb9   :  { %v1560_v26 = vpop.eup %1559 }
  0xba   :  { %v305_v29 = vadd.f32 1.0, %v1560_v26  ;;  %v288_v30 = vpop.f32.mrf.mxu3  ;;  %v1562_v31 = vpop.eup %1561 }
  0xbb   :  { %v1564_v35 = vpop.eup %1563  ;;  %v307_v40 = vmul.f32 %v1562_v31, %v303_v15  ;;  %vm312_vm0 = vweird.f32 %v1562_v31 }
  0xbc   :  { %1565 = vrcp.f32 %v305_v29  ;;  %v322_v43 = vmul.f32 %v1564_v35, %v304_v18  ;;  %vm327_vm1 = vweird.f32 %v1564_v35  ;;  %vm313_vm4 = vmor %vm311_vm2, %vm312_vm0  ;;  %v347_v18 = vand.u32 2147483648, %v305_v29 }
  0xbd   :  { %1567 = vtanh.f32 %v293_v27  ;;  %v308_v47 = vsub.f32 1.0, %v307_v40  ;;  %vm328_vm6 = vmor %vm326_vm3, %vm327_vm1  ;;  %vm341_vm9 = vweird.f32 %v305_v29  ;;  %v345_v30 = vand.u32 2147483647, %v305_v29 }
  0xbe   :  { %v323_v48 = vsub.f32 1.0, %v322_v43  ;;  %v348_v40 = vor.u32 1.1754944e-38, %v347_v18 }
  0xbf   :  { %v309_v51 = vmul.f32 %v1562_v31, %v308_v47  ;;  %vm346_vm11 = vcmp.eq.f32.partialorder %v345_v30, 8.507059e+37 }
  0xc0   :  { %v324_v55 = vmul.f32 %v1564_v35, %v323_v48 }
  0xc1   :  { %v310_v60 = vadd.f32 %v1562_v31, %v309_v51 }
  0xc2   :  { %v1566_v59 = vpop.eup %1565  ;;  %v325_v0 = vadd.f32 %v1564_v35, %v324_v55 }
  0xc3   :  { %v1568_v61 = vpop.eup %1567  ;;  %v337_v62 = vmul.f32 %v1566_v59, %v305_v29  ;;  %v314_v5 = vsel %vm313_vm4, %v1562_v31, %v310_v60  ;;  %vm342_vm8 = vweird.f32 %v1566_v59  ;;  %v1475_v29 = vld [vmem:[%s2221_s0 + $0x10] sm:$0xff] }
  0xc4   :  { %v319_v11 = vsel %vm316_vm5, %v318_v63, %v314_v5  ;;  %v329_v13 = vsel %vm328_vm6, %v1564_v35, %v325_v0  ;;  %vm343_vm10 = vmor %vm341_vm9, %vm342_vm8  ;;  %v365_v49 = vunpack.c.l.bf16 %v1475_v29  ;;  %v366_v50 = vunpack.c.h.bf16 %v1475_v29 }
  0xc5   :  { %v338_v10 = vsub.f32 1.0, %v337_v62  ;;  %v334_v14 = vsel %vm331_vm7, %v333_v4, %v329_v13  ;;  %v354_v22 = vmul.f32 %v1568_v61, %v319_v11 }
  0xc6   :  { %v353_v26 = vmul.f32 0.0, %v334_v14 }
  0xc7   :  { %v339_v23 = vmul.f32 %v1566_v59, %v338_v10 }
  0xc8   :  { %v1961_v27 = vadd.f32 %v354_v22, %v353_v26 }
  0xc9   :  { %v340_v15 = vadd.f32 %v1566_v59, %v339_v23 }
  0xca   :  { %1569 = vtanh.f32 %v1961_v27 }
  0xcb   :  { %v344_v31 = vsel %vm343_vm10, %v1566_v59, %v340_v15  ;;  %v1476_v59 = vld [vmem:[%s2221_s0 + $0x18] sm:$0xff] }
  0xcc   :  { %v349_v35 = vsel %vm346_vm11, %v348_v40, %v344_v31  ;;  %v367_v62 = vunpack.c.l.bf16 %v1476_v59  ;;  %v368_v18 = vunpack.c.h.bf16 %v1476_v59 }
  0xd0   :  { %v1570_v43 = vpop.eup %1569 }
  0xd1   :  { %v357_v47 = vmul.f32 %v1570_v43, %v349_v35 }
  0xd3   :  { %v360_v48 = vpack.c.bf16 %v357_v47, %v357_v47 }
  0xd5   :  { %361 = vst [vmem:[%s2223_s2] sm:$0xf] %v360_v48  ;;  %379 = vmatmul.bf16.vlgmr.msrb.gmra.mxu0 %v360_v48  ;;  %392 = vmatmul.bf16.vlgmr.msrb.gmra.mxu1 %v360_v48 }
  0xd6   :  { %405 = vmatmul.bf16.vlgmr.msrb.gmra.mxu2 %v360_v48  ;;  %418 = vmatmul.bf16.vlgmr.msrb.gmra.mxu3 %v360_v48 }
  0xd7   :  { %639 = vmatpush.bf16.msrb.mxu0 %v1795_v3  ;;  %652 = vmatpush.bf16.msrb.mxu1 %v1797_v7 }
  0xd8   :  { %665 = vmatpush.bf16.msrb.mxu2 %v1799_v8  ;;  %678 = vmatpush.bf16.msrb.mxu3 %v1810_v21 }
  0xdb   :  { %640 = vmatpush.bf16.msrb.mxu0 %v1802_v12  ;;  %653 = vmatpush.bf16.msrb.mxu1 %v1806_v16 }
  0xdc   :  { %666 = vmatpush.bf16.msrb.mxu2 %v1808_v17  ;;  %679 = vmatpush.bf16.msrb.mxu3 %v1822_v34 }
  0xdf   :  { %641 = vmatpush.bf16.msrb.mxu0 %v1814_v28  ;;  %654 = vmatpush.bf16.msrb.mxu1 %v1818_v32 }
  0xe0   :  { %667 = vmatpush.bf16.msrb.mxu2 %v1820_v33  ;;  %680 = vmatpush.bf16.msrb.mxu3 %v1828_v42 }
  0xe3   :  { %642 = vmatpush.bf16.msrb.mxu0 %v1826_v41  ;;  %655 = vmatpush.bf16.msrb.mxu1 %v1832_v45 }
  0xe4   :  { %668 = vmatpush.bf16.msrb.mxu2 %v1834_v46  ;;  %681 = vmatpush.bf16.msrb.mxu3 %v1840_v54 }
  0xe7   :  { %643 = vmatpush.bf16.msrb.mxu0 %v1838_v53  ;;  %656 = vmatpush.bf16.msrb.mxu1 %v1844_v57 }
  0xe8   :  { %669 = vmatpush.bf16.msrb.mxu2 %v1846_v58  ;;  %682 = vmatpush.bf16.msrb.mxu3 %v1852_v2 }
  0xeb   :  { %644 = vmatpush.bf16.msrb.mxu0 %v1850_v1  ;;  %657 = vmatpush.bf16.msrb.mxu1 %v1856_v6 }
  0xec   :  { %670 = vmatpush.bf16.msrb.mxu2 %v1858_v9  ;;  %683 = vmatpush.bf16.msrb.mxu3 %v1864_v20 }
  0xef   :  { %645 = vmatpush.bf16.msrb.mxu0 %v1862_v19  ;;  %658 = vmatpush.bf16.msrb.mxu1 %v1868_v24 }
  0xf0   :  { %671 = vmatpush.bf16.msrb.mxu2 %v1870_v25  ;;  %684 = vmatpush.bf16.msrb.mxu3 %v1876_v37 }
  0xf3   :  { %646 = vmatpush.bf16.msrb.mxu0 %v1874_v36  ;;  %659 = vmatpush.bf16.msrb.mxu1 %v1880_v38 }
  0xf4   :  { %672 = vmatpush.bf16.msrb.mxu2 %v1882_v39  ;;  %685 = vmatpush.bf16.msrb.mxu3 %v1888_v44 }
 0x152   :  { %v380_v51 = vpop.f32.mrf.mxu0  ;;  %v393_v52 = vpop.f32.mrf.mxu1 }
 0x153   :  { %v423_v55 = vadd.f32 %v380_v51, %v365_v49  ;;  %v424_v56 = vadd.f32 %v393_v52, %v366_v50 }
 0x155   :  { %v1477_v60 = vmul.f32 -1.442695, %v423_v55  ;;  %v1478_v61 = vmul.f32 -1.442695, %v424_v56 }
 0x157   :  { %1571 = vpow2.f32 %v1477_v60 }
 0x158   :  { %1573 = vpow2.f32 %v1478_v61 }
 0x159   :  { %v406_v63 = vpop.f32.mrf.mxu2  ;;  %v419_v0 = vpop.f32.mrf.mxu3 }
 0x15a   :  { %v425_v4 = vadd.f32 %v406_v63, %v367_v62  ;;  %v382_v5 = vpop.f32.mrf.mxu0  ;;  %v395_v10 = vpop.f32.mrf.mxu1  ;;  %v426_v43 = vadd.f32 %v419_v0, %v368_v18 }
 0x15c   :  { %v1479_v11 = vmul.f32 -1.442695, %v425_v4 }
 0x15d   :  { %v1572_v13 = vpop.eup %1571 }
 0x15e   :  { %v1574_v14 = vpop.eup %1573  ;;  %v436_v22 = vadd.f32 1.0, %v1572_v13  ;;  %1575 = vpow2.f32 %v1479_v11 }
 0x15f   :  { %v437_v23 = vadd.f32 1.0, %v1574_v14 }
 0x160   :  { %1577 = vrcp.f32 %v436_v22  ;;  %v450_v50 = vand.u32 2147483648, %v436_v22  ;;  %v448_v55 = vand.u32 2147483647, %v436_v22  ;;  %vm444_vm14 = vweird.f32 %v436_v22 }
 0x161   :  { %1579 = vrcp.f32 %v437_v23  ;;  %v408_v26 = vpop.f32.mrf.mxu2  ;;  %v421_v15 = vpop.f32.mrf.mxu3  ;;  %v465_v51 = vand.u32 2147483648, %v437_v23  ;;  %v463_v60 = vand.u32 2147483647, %v437_v23  ;;  %vm459_vm15 = vweird.f32 %v437_v23 }
 0x162   :  { %v451_v63 = vor.u32 1.1754944e-38, %v450_v50  ;;  %vm449_vm2 = vcmp.eq.f32.partialorder %v448_v55, 8.507059e+37 }
 0x163   :  { %v466_v4 = vor.u32 1.1754944e-38, %v465_v51  ;;  %vm464_vm3 = vcmp.eq.f32.partialorder %v463_v60, 8.507059e+37 }
 0x164   :  { %v1576_v30 = vpop.eup %1575 }
 0x165   :  { %v438_v31 = vadd.f32 1.0, %v1576_v30 }
 0x166   :  { %v1578_v40 = vpop.eup %1577 }
 0x167   :  { %v1580_v35 = vpop.eup %1579  ;;  %v440_v47 = vmul.f32 %v1578_v40, %v436_v22  ;;  %1581 = vrcp.f32 %v438_v31  ;;  %vm445_vm12 = vweird.f32 %v1578_v40  ;;  %vm474_vm5 = vweird.f32 %v438_v31 }
 0x168   :  { %v455_v48 = vmul.f32 %v1580_v35, %v437_v23  ;;  %1583 = vtanh.f32 %v426_v43  ;;  %vm460_vm13 = vweird.f32 %v1580_v35  ;;  %vm446_vm0 = vmor %vm444_vm14, %vm445_vm12  ;;  %v480_v43 = vand.u32 2147483648, %v438_v31 }
 0x169   :  { %v441_v29 = vsub.f32 1.0, %v440_v47  ;;  %vm461_vm1 = vmor %vm459_vm15, %vm460_vm13 }
 0x16a   :  { %v456_v49 = vsub.f32 1.0, %v455_v48  ;;  %v481_v48 = vor.u32 1.1754944e-38, %v480_v43 }
 0x16b   :  { %v442_v52 = vmul.f32 %v1578_v40, %v441_v29 }
 0x16c   :  { %v457_v56 = vmul.f32 %v1580_v35, %v456_v49 }
 0x16d   :  { %v1582_v59 = vpop.eup %1581  ;;  %v443_v61 = vadd.f32 %v1578_v40, %v442_v52 }
 0x16e   :  { %v470_v62 = vmul.f32 %v1582_v59, %v438_v31  ;;  %v458_v0 = vadd.f32 %v1580_v35, %v457_v56  ;;  %v1584_v10 = vpop.eup %1583  ;;  %vm475_vm4 = vweird.f32 %v1582_v59 }
 0x16f   :  { %v447_v5 = vsel %vm446_vm0, %v1578_v40, %v443_v61  ;;  %v478_v40 = vand.u32 2147483647, %v438_v31  ;;  %vm476_vm6 = vmor %vm474_vm5, %vm475_vm4 }
 0x170   :  { %v471_v11 = vsub.f32 1.0, %v470_v62  ;;  %v452_v13 = vsel %vm449_vm2, %v451_v63, %v447_v5  ;;  %v462_v14 = vsel %vm461_vm1, %v1580_v35, %v458_v0 }
 0x171   :  { %v467_v26 = vsel %vm464_vm3, %v466_v4, %v462_v14  ;;  %v487_v15 = vmul.f32 %v1584_v10, %v452_v13  ;;  %vm479_vm7 = vcmp.eq.f32.partialorder %v478_v40, 8.507059e+37 }
 0x172   :  { %v472_v18 = vmul.f32 %v1582_v59, %v471_v11  ;;  %v486_v30 = vmul.f32 %v467_v26, %v1961_v27  ;;  %v1481_v27 = vld [vmem:[%s2221_s0 + $0x20] sm:$0xff] }
 0x173   :  { %v499_v31 = vunpack.c.l.bf16 %v1481_v27  ;;  %v500_v51 = vunpack.c.h.bf16 %v1481_v27 }
 0x174   :  { %v2006_v22 = vadd.f32 %v487_v15, %v486_v30  ;;  %v473_v23 = vadd.f32 %v1582_v59, %v472_v18 }
 0x176   :  { %1585 = vtanh.f32 %v2006_v22  ;;  %v477_v47 = vsel %vm476_vm6, %v1582_v59, %v473_v23  ;;  %v1482_v59 = vld [vmem:[%s2221_s0 + $0x28] sm:$0xff] }
 0x177   :  { %v482_v29 = vsel %vm479_vm7, %v481_v48, %v477_v47  ;;  %v501_v63 = vunpack.c.l.bf16 %v1482_v59  ;;  %v502_v43 = vunpack.c.h.bf16 %v1482_v59 }
 0x17c   :  { %v1586_v35 = vpop.eup %1585 }
 0x17d   :  { %v490_v49 = vmul.f32 %v1586_v35, %v482_v29 }
 0x17f   :  { %v493_v50 = vpack.c.bf16 %v490_v49, %v490_v49 }
 0x181   :  { %1480 = vst [vmem:[%s2223_s2 + $0x4] sm:$0xf] %v493_v50  ;;  %513 = vmatmul.bf16.vlgmr.msra.gmra.mxu0 %v493_v50  ;;  %526 = vmatmul.bf16.vlgmr.msra.gmra.mxu1 %v493_v50 }
 0x182   :  { %539 = vmatmul.bf16.vlgmr.msra.gmra.mxu2 %v493_v50  ;;  %552 = vmatmul.bf16.vlgmr.msra.gmra.mxu3 %v493_v50 }
 0x183   :  { %773 = vmatpush.bf16.msra.mxu0 %v1795_v3  ;;  %786 = vmatpush.bf16.msra.mxu1 %v1797_v7 }
 0x184   :  { %799 = vmatpush.bf16.msra.mxu2 %v1799_v8  ;;  %812 = vmatpush.bf16.msra.mxu3 %v1810_v21 }
 0x187   :  { %774 = vmatpush.bf16.msra.mxu0 %v1802_v12  ;;  %787 = vmatpush.bf16.msra.mxu1 %v1806_v16 }
 0x188   :  { %800 = vmatpush.bf16.msra.mxu2 %v1808_v17  ;;  %813 = vmatpush.bf16.msra.mxu3 %v1822_v34 }
 0x18b   :  { %775 = vmatpush.bf16.msra.mxu0 %v1814_v28  ;;  %788 = vmatpush.bf16.msra.mxu1 %v1818_v32 }
 0x18c   :  { %801 = vmatpush.bf16.msra.mxu2 %v1820_v33  ;;  %814 = vmatpush.bf16.msra.mxu3 %v1828_v42 }
 0x18f   :  { %776 = vmatpush.bf16.msra.mxu0 %v1826_v41  ;;  %789 = vmatpush.bf16.msra.mxu1 %v1832_v45 }
 0x190   :  { %802 = vmatpush.bf16.msra.mxu2 %v1834_v46  ;;  %815 = vmatpush.bf16.msra.mxu3 %v1840_v54 }
 0x193   :  { %777 = vmatpush.bf16.msra.mxu0 %v1838_v53  ;;  %790 = vmatpush.bf16.msra.mxu1 %v1844_v57 }
 0x194   :  { %803 = vmatpush.bf16.msra.mxu2 %v1846_v58  ;;  %816 = vmatpush.bf16.msra.mxu3 %v1852_v2 }
 0x197   :  { %778 = vmatpush.bf16.msra.mxu0 %v1850_v1  ;;  %791 = vmatpush.bf16.msra.mxu1 %v1856_v6 }
 0x198   :  { %804 = vmatpush.bf16.msra.mxu2 %v1858_v9  ;;  %817 = vmatpush.bf16.msra.mxu3 %v1864_v20 }
 0x19b   :  { %779 = vmatpush.bf16.msra.mxu0 %v1862_v19  ;;  %792 = vmatpush.bf16.msra.mxu1 %v1868_v24 }
 0x19c   :  { %805 = vmatpush.bf16.msra.mxu2 %v1870_v25  ;;  %818 = vmatpush.bf16.msra.mxu3 %v1876_v37 }
 0x19f   :  { %780 = vmatpush.bf16.msra.mxu0 %v1874_v36  ;;  %793 = vmatpush.bf16.msra.mxu1 %v1880_v38 }
 0x1a0   :  { %806 = vmatpush.bf16.msra.mxu2 %v1882_v39  ;;  %819 = vmatpush.bf16.msra.mxu3 %v1888_v44 }
 0x1fe   :  { %v514_v52 = vpop.f32.mrf.mxu0  ;;  %v527_v55 = vpop.f32.mrf.mxu1 }
 0x1ff   :  { %v557_v56 = vadd.f32 %v514_v52, %v499_v31  ;;  %v558_v60 = vadd.f32 %v527_v55, %v500_v51 }
 0x201   :  { %v1483_v61 = vmul.f32 -1.442695, %v557_v56  ;;  %v1484_v62 = vmul.f32 -1.442695, %v558_v60 }
 0x203   :  { %1587 = vpow2.f32 %v1483_v61 }
 0x204   :  { %1589 = vpow2.f32 %v1484_v62 }
 0x205   :  { %v540_v0 = vpop.f32.mrf.mxu2  ;;  %v553_v4 = vpop.f32.mrf.mxu3 }
 0x206   :  { %v559_v5 = vadd.f32 %v540_v0, %v501_v63  ;;  %v516_v10 = vpop.f32.mrf.mxu0  ;;  %v529_v11 = vpop.f32.mrf.mxu1  ;;  %v560_v35 = vadd.f32 %v553_v4, %v502_v43 }
 0x208   :  { %v1485_v13 = vmul.f32 -1.442695, %v559_v5 }
 0x209   :  { %v1588_v14 = vpop.eup %1587 }
 0x20a   :  { %v1590_v26 = vpop.eup %1589  ;;  %v570_v15 = vadd.f32 1.0, %v1588_v14  ;;  %1591 = vpow2.f32 %v1485_v13 }
 0x20b   :  { %v571_v18 = vadd.f32 1.0, %v1590_v26 }
 0x20c   :  { %1593 = vrcp.f32 %v570_v15  ;;  %v584_v51 = vand.u32 2147483648, %v570_v15  ;;  %v582_v56 = vand.u32 2147483647, %v570_v15  ;;  %vm578_vm10 = vweird.f32 %v570_v15 }
 0x20d   :  { %1595 = vrcp.f32 %v571_v18  ;;  %v542_v30 = vpop.f32.mrf.mxu2  ;;  %v555_v23 = vpop.f32.mrf.mxu3  ;;  %v599_v52 = vand.u32 2147483648, %v571_v18  ;;  %v597_v61 = vand.u32 2147483647, %v571_v18  ;;  %vm593_vm11 = vweird.f32 %v571_v18 }
 0x20e   :  { %v585_v0 = vor.u32 1.1754944e-38, %v584_v51  ;;  %vm583_vm14 = vcmp.eq.f32.partialorder %v582_v56, 8.507059e+37 }
 0x20f   :  { %v600_v5 = vor.u32 1.1754944e-38, %v599_v52  ;;  %vm598_vm15 = vcmp.eq.f32.partialorder %v597_v61, 8.507059e+37 }
 0x210   :  { %v1592_v40 = vpop.eup %1591 }
 0x211   :  { %v572_v47 = vadd.f32 1.0, %v1592_v40 }
 0x212   :  { %v1594_v48 = vpop.eup %1593 }
 0x213   :  { %v1596_v29 = vpop.eup %1595  ;;  %v574_v49 = vmul.f32 %v1594_v48, %v570_v15  ;;  %1597 = vrcp.f32 %v572_v47  ;;  %vm579_vm8 = vweird.f32 %v1594_v48  ;;  %vm608_vm1 = vweird.f32 %v572_v47 }
 0x214   :  { %v589_v50 = vmul.f32 %v1596_v29, %v571_v18  ;;  %1599 = vtanh.f32 %v560_v35  ;;  %vm594_vm9 = vweird.f32 %v1596_v29  ;;  %vm580_vm12 = vmor %vm578_vm10, %vm579_vm8  ;;  %v614_v35 = vand.u32 2147483648, %v572_v47 }
 0x215   :  { %v575_v27 = vsub.f32 1.0, %v574_v49  ;;  %vm595_vm13 = vmor %vm593_vm11, %vm594_vm9 }
 0x216   :  { %v590_v31 = vsub.f32 1.0, %v589_v50  ;;  %v615_v50 = vor.u32 1.1754944e-38, %v614_v35 }
 0x217   :  { %v576_v55 = vmul.f32 %v1594_v48, %v575_v27 }
 0x218   :  { %v591_v60 = vmul.f32 %v1596_v29, %v590_v31 }
 0x219   :  { %v1598_v59 = vpop.eup %1597  ;;  %v577_v62 = vadd.f32 %v1594_v48, %v576_v55 }
 0x21a   :  { %v604_v63 = vmul.f32 %v1598_v59, %v572_v47  ;;  %v592_v4 = vadd.f32 %v1596_v29, %v591_v60  ;;  %v1600_v11 = vpop.eup %1599  ;;  %vm609_vm0 = vweird.f32 %v1598_v59 }
 0x21b   :  { %v581_v10 = vsel %vm580_vm12, %v1594_v48, %v577_v62  ;;  %v612_v48 = vand.u32 2147483647, %v572_v47  ;;  %vm610_vm2 = vmor %vm608_vm1, %vm609_vm0 }
 0x21c   :  { %v605_v13 = vsub.f32 1.0, %v604_v63  ;;  %v586_v14 = vsel %vm583_vm14, %v585_v0, %v581_v10  ;;  %v596_v26 = vsel %vm595_vm13, %v1596_v29, %v592_v4 }
 0x21d   :  { %v601_v30 = vsel %vm598_vm15, %v600_v5, %v596_v26  ;;  %v621_v23 = vmul.f32 %v1600_v11, %v586_v14  ;;  %vm613_vm3 = vcmp.eq.f32.partialorder %v612_v48, 8.507059e+37 }
 0x21e   :  { %v606_v43 = vmul.f32 %v1598_v59, %v605_v13  ;;  %v620_v40 = vmul.f32 %v601_v30, %v2006_v22  ;;  %v1487_v22 = vld [vmem:[%s2221_s0 + $0x30] sm:$0xff] }
 0x21f   :  { %v633_v47 = vunpack.c.l.bf16 %v1487_v22  ;;  %v634_v52 = vunpack.c.h.bf16 %v1487_v22 }
 0x220   :  { %v2051_v15 = vadd.f32 %v621_v23, %v620_v40  ;;  %v607_v18 = vadd.f32 %v1598_v59, %v606_v43 }
 0x222   :  { %1601 = vtanh.f32 %v2051_v15  ;;  %v611_v49 = vsel %vm610_vm2, %v1598_v59, %v607_v18  ;;  %v1488_v59 = vld [vmem:[%s2221_s0 + $0x38] sm:$0xff] }
 0x223   :  { %v616_v27 = vsel %vm613_vm3, %v615_v50, %v611_v49  ;;  %v635_v0 = vunpack.c.l.bf16 %v1488_v59  ;;  %v636_v35 = vunpack.c.h.bf16 %v1488_v59 }
 0x228   :  { %v1602_v29 = vpop.eup %1601 }
 0x229   :  { %v624_v31 = vmul.f32 %v1602_v29, %v616_v27 }
 0x22b   :  { %v627_v51 = vpack.c.bf16 %v624_v31, %v624_v31 }
 0x22d   :  { %1486 = vst [vmem:[%s2223_s2 + $0x8] sm:$0xf] %v627_v51  ;;  %647 = vmatmul.bf16.vlgmr.msrb.gmra.mxu0 %v627_v51  ;;  %660 = vmatmul.bf16.vlgmr.msrb.gmra.mxu1 %v627_v51 }
 0x22e   :  { %673 = vmatmul.bf16.vlgmr.msrb.gmra.mxu2 %v627_v51  ;;  %686 = vmatmul.bf16.vlgmr.msrb.gmra.mxu3 %v627_v51 }
 0x22f   :  { %907 = vmatpush.bf16.msrb.mxu0 %v1795_v3  ;;  %920 = vmatpush.bf16.msrb.mxu1 %v1797_v7 }
 0x230   :  { %933 = vmatpush.bf16.msrb.mxu2 %v1799_v8  ;;  %946 = vmatpush.bf16.msrb.mxu3 %v1810_v21 }
 0x233   :  { %908 = vmatpush.bf16.msrb.mxu0 %v1802_v12  ;;  %921 = vmatpush.bf16.msrb.mxu1 %v1806_v16 }
 0x234   :  { %934 = vmatpush.bf16.msrb.mxu2 %v1808_v17  ;;  %947 = vmatpush.bf16.msrb.mxu3 %v1822_v34 }
 0x237   :  { %909 = vmatpush.bf16.msrb.mxu0 %v1814_v28  ;;  %922 = vmatpush.bf16.msrb.mxu1 %v1818_v32 }
 0x238   :  { %935 = vmatpush.bf16.msrb.mxu2 %v1820_v33  ;;  %948 = vmatpush.bf16.msrb.mxu3 %v1828_v42 }
 0x23b   :  { %910 = vmatpush.bf16.msrb.mxu0 %v1826_v41  ;;  %923 = vmatpush.bf16.msrb.mxu1 %v1832_v45 }
 0x23c   :  { %936 = vmatpush.bf16.msrb.mxu2 %v1834_v46  ;;  %949 = vmatpush.bf16.msrb.mxu3 %v1840_v54 }
 0x23f   :  { %911 = vmatpush.bf16.msrb.mxu0 %v1838_v53  ;;  %924 = vmatpush.bf16.msrb.mxu1 %v1844_v57 }
 0x240   :  { %937 = vmatpush.bf16.msrb.mxu2 %v1846_v58  ;;  %950 = vmatpush.bf16.msrb.mxu3 %v1852_v2 }
 0x243   :  { %912 = vmatpush.bf16.msrb.mxu0 %v1850_v1  ;;  %925 = vmatpush.bf16.msrb.mxu1 %v1856_v6 }
 0x244   :  { %938 = vmatpush.bf16.msrb.mxu2 %v1858_v9  ;;  %951 = vmatpush.bf16.msrb.mxu3 %v1864_v20 }
 0x247   :  { %913 = vmatpush.bf16.msrb.mxu0 %v1862_v19  ;;  %926 = vmatpush.bf16.msrb.mxu1 %v1868_v24 }
 0x248   :  { %939 = vmatpush.bf16.msrb.mxu2 %v1870_v25  ;;  %952 = vmatpush.bf16.msrb.mxu3 %v1876_v37 }
 0x24b   :  { %914 = vmatpush.bf16.msrb.mxu0 %v1874_v36  ;;  %927 = vmatpush.bf16.msrb.mxu1 %v1880_v38 }
 0x24c   :  { %940 = vmatpush.bf16.msrb.mxu2 %v1882_v39  ;;  %953 = vmatpush.bf16.msrb.mxu3 %v1888_v44 }
 0x2aa   :  { %v648_v55 = vpop.f32.mrf.mxu0  ;;  %v661_v56 = vpop.f32.mrf.mxu1 }
 0x2ab   :  { %v691_v60 = vadd.f32 %v648_v55, %v633_v47  ;;  %v692_v61 = vadd.f32 %v661_v56, %v634_v52 }
 0x2ad   :  { %v1489_v62 = vmul.f32 -1.442695, %v691_v60  ;;  %v1490_v63 = vmul.f32 -1.442695, %v692_v61 }
 0x2af   :  { %1603 = vpow2.f32 %v1489_v62 }
 0x2b0   :  { %1605 = vpow2.f32 %v1490_v63 }
 0x2b1   :  { %v674_v4 = vpop.f32.mrf.mxu2  ;;  %v687_v5 = vpop.f32.mrf.mxu3 }
 0x2b2   :  { %v693_v10 = vadd.f32 %v674_v4, %v635_v0  ;;  %v650_v11 = vpop.f32.mrf.mxu0  ;;  %v663_v13 = vpop.f32.mrf.mxu1  ;;  %v694_v29 = vadd.f32 %v687_v5, %v636_v35 }
 0x2b4   :  { %v1491_v14 = vmul.f32 -1.442695, %v693_v10 }
 0x2b5   :  { %v1604_v26 = vpop.eup %1603 }
 0x2b6   :  { %v1606_v30 = vpop.eup %1605  ;;  %v704_v23 = vadd.f32 1.0, %v1604_v26  ;;  %1607 = vpow2.f32 %v1491_v14 }
 0x2b7   :  { %v705_v43 = vadd.f32 1.0, %v1606_v30 }
 0x2b8   :  { %1609 = vrcp.f32 %v704_v23  ;;  %v718_v52 = vand.u32 2147483648, %v704_v23  ;;  %v716_v60 = vand.u32 2147483647, %v704_v23  ;;  %vm712_vm6 = vweird.f32 %v704_v23 }
 0x2b9   :  { %1611 = vrcp.f32 %v705_v43  ;;  %v676_v40 = vpop.f32.mrf.mxu2  ;;  %v689_v18 = vpop.f32.mrf.mxu3  ;;  %v733_v55 = vand.u32 2147483648, %v705_v43  ;;  %v731_v62 = vand.u32 2147483647, %v705_v43  ;;  %vm727_vm7 = vweird.f32 %v705_v43 }
 0x2ba   :  { %v719_v4 = vor.u32 1.1754944e-38, %v718_v52  ;;  %vm717_vm10 = vcmp.eq.f32.partialorder %v716_v60, 8.507059e+37 }
 0x2bb   :  { %v734_v10 = vor.u32 1.1754944e-38, %v733_v55  ;;  %vm732_vm11 = vcmp.eq.f32.partialorder %v731_v62, 8.507059e+37 }
 0x2bc   :  { %v1608_v48 = vpop.eup %1607 }
 0x2bd   :  { %v706_v49 = vadd.f32 1.0, %v1608_v48 }
 0x2be   :  { %v1610_v50 = vpop.eup %1609 }
 0x2bf   :  { %v1612_v27 = vpop.eup %1611  ;;  %v708_v31 = vmul.f32 %v1610_v50, %v704_v23  ;;  %1613 = vrcp.f32 %v706_v49  ;;  %vm713_vm4 = vweird.f32 %v1610_v50  ;;  %vm742_vm13 = vweird.f32 %v706_v49 }
 0x2c0   :  { %v723_v51 = vmul.f32 %v1612_v27, %v705_v43  ;;  %1615 = vtanh.f32 %v694_v29  ;;  %vm728_vm5 = vweird.f32 %v1612_v27  ;;  %vm714_vm8 = vmor %vm712_vm6, %vm713_vm4  ;;  %v748_v29 = vand.u32 2147483648, %v706_v49 }
 0x2c1   :  { %v709_v22 = vsub.f32 1.0, %v708_v31  ;;  %vm729_vm9 = vmor %vm727_vm7, %vm728_vm5 }
 0x2c2   :  { %v724_v47 = vsub.f32 1.0, %v723_v51  ;;  %v749_v51 = vor.u32 1.1754944e-38, %v748_v29 }
 0x2c3   :  { %v710_v56 = vmul.f32 %v1610_v50, %v709_v22 }
 0x2c4   :  { %v725_v61 = vmul.f32 %v1612_v27, %v724_v47 }
 0x2c5   :  { %v1614_v59 = vpop.eup %1613  ;;  %v711_v63 = vadd.f32 %v1610_v50, %v710_v56 }
 0x2c6   :  { %v738_v0 = vmul.f32 %v1614_v59, %v706_v49  ;;  %v726_v5 = vadd.f32 %v1612_v27, %v725_v61  ;;  %v1616_v13 = vpop.eup %1615  ;;  %vm743_vm12 = vweird.f32 %v1614_v59 }
 0x2c7   :  { %v715_v11 = vsel %vm714_vm8, %v1610_v50, %v711_v63  ;;  %v746_v50 = vand.u32 2147483647, %v706_v49  ;;  %vm744_vm14 = vmor %vm742_vm13, %vm743_vm12 }
 0x2c8   :  { %v739_v14 = vsub.f32 1.0, %v738_v0  ;;  %v720_v26 = vsel %vm717_vm10, %v719_v4, %v715_v11  ;;  %v730_v30 = vsel %vm729_vm9, %v1612_v27, %v726_v5 }
 0x2c9   :  { %v735_v40 = vsel %vm732_vm11, %v734_v10, %v730_v30  ;;  %v755_v18 = vmul.f32 %v1616_v13, %v720_v26  ;;  %vm747_vm15 = vcmp.eq.f32.partialorder %v746_v50, 8.507059e+37 }
 0x2ca   :  { %v740_v35 = vmul.f32 %v1614_v59, %v739_v14  ;;  %v754_v48 = vmul.f32 %v735_v40, %v2051_v15  ;;  %v1493_v15 = vld [vmem:[%s2221_s0 + $0x40] sm:$0xff] }
 0x2cb   :  { %v767_v49 = vunpack.c.l.bf16 %v1493_v15  ;;  %v768_v55 = vunpack.c.h.bf16 %v1493_v15 }
 0x2cc   :  { %v2096_v23 = vadd.f32 %v755_v18, %v754_v48  ;;  %v741_v43 = vadd.f32 %v1614_v59, %v740_v35 }
 0x2ce   :  { %1617 = vtanh.f32 %v2096_v23  ;;  %v745_v31 = vsel %vm744_vm14, %v1614_v59, %v741_v43  ;;  %v1494_v59 = vld [vmem:[%s2221_s0 + $0x48] sm:$0xff] }
 0x2cf   :  { %v750_v22 = vsel %vm747_vm15, %v749_v51, %v745_v31  ;;  %v769_v4 = vunpack.c.l.bf16 %v1494_v59  ;;  %v770_v29 = vunpack.c.h.bf16 %v1494_v59 }
 0x2d4   :  { %v1618_v27 = vpop.eup %1617 }
 0x2d5   :  { %v758_v47 = vmul.f32 %v1618_v27, %v750_v22 }
 0x2d7   :  { %v761_v52 = vpack.c.bf16 %v758_v47, %v758_v47 }
 0x2d9   :  { %1492 = vst [vmem:[%s2223_s2 + $0xc] sm:$0xf] %v761_v52  ;;  %781 = vmatmul.bf16.vlgmr.msra.gmra.mxu0 %v761_v52  ;;  %794 = vmatmul.bf16.vlgmr.msra.gmra.mxu1 %v761_v52 }
 0x2da   :  { %807 = vmatmul.bf16.vlgmr.msra.gmra.mxu2 %v761_v52  ;;  %820 = vmatmul.bf16.vlgmr.msra.gmra.mxu3 %v761_v52 }
 0x2db   :  { %1041 = vmatpush.bf16.msra.mxu0 %v1795_v3  ;;  %1054 = vmatpush.bf16.msra.mxu1 %v1797_v7 }
 0x2dc   :  { %1067 = vmatpush.bf16.msra.mxu2 %v1799_v8  ;;  %1080 = vmatpush.bf16.msra.mxu3 %v1810_v21 }
 0x2df   :  { %1042 = vmatpush.bf16.msra.mxu0 %v1802_v12  ;;  %1055 = vmatpush.bf16.msra.mxu1 %v1806_v16 }
 0x2e0   :  { %1068 = vmatpush.bf16.msra.mxu2 %v1808_v17  ;;  %1081 = vmatpush.bf16.msra.mxu3 %v1822_v34 }
 0x2e3   :  { %1043 = vmatpush.bf16.msra.mxu0 %v1814_v28  ;;  %1056 = vmatpush.bf16.msra.mxu1 %v1818_v32 }
 0x2e4   :  { %1069 = vmatpush.bf16.msra.mxu2 %v1820_v33  ;;  %1082 = vmatpush.bf16.msra.mxu3 %v1828_v42 }
 0x2e7   :  { %1044 = vmatpush.bf16.msra.mxu0 %v1826_v41  ;;  %1057 = vmatpush.bf16.msra.mxu1 %v1832_v45 }
 0x2e8   :  { %1070 = vmatpush.bf16.msra.mxu2 %v1834_v46  ;;  %1083 = vmatpush.bf16.msra.mxu3 %v1840_v54 }
 0x2eb   :  { %1045 = vmatpush.bf16.msra.mxu0 %v1838_v53  ;;  %1058 = vmatpush.bf16.msra.mxu1 %v1844_v57 }
 0x2ec   :  { %1071 = vmatpush.bf16.msra.mxu2 %v1846_v58  ;;  %1084 = vmatpush.bf16.msra.mxu3 %v1852_v2 }
 0x2ef   :  { %1046 = vmatpush.bf16.msra.mxu0 %v1850_v1  ;;  %1059 = vmatpush.bf16.msra.mxu1 %v1856_v6 }
 0x2f0   :  { %1072 = vmatpush.bf16.msra.mxu2 %v1858_v9  ;;  %1085 = vmatpush.bf16.msra.mxu3 %v1864_v20 }
 0x2f3   :  { %1047 = vmatpush.bf16.msra.mxu0 %v1862_v19  ;;  %1060 = vmatpush.bf16.msra.mxu1 %v1868_v24 }
 0x2f4   :  { %1073 = vmatpush.bf16.msra.mxu2 %v1870_v25  ;;  %1086 = vmatpush.bf16.msra.mxu3 %v1876_v37 }
 0x2f7   :  { %1048 = vmatpush.bf16.msra.mxu0 %v1874_v36  ;;  %1061 = vmatpush.bf16.msra.mxu1 %v1880_v38 }
 0x2f8   :  { %1074 = vmatpush.bf16.msra.mxu2 %v1882_v39  ;;  %1087 = vmatpush.bf16.msra.mxu3 %v1888_v44 }
 0x356   :  { %v782_v56 = vpop.f32.mrf.mxu0  ;;  %v795_v60 = vpop.f32.mrf.mxu1 }
 0x357   :  { %v825_v61 = vadd.f32 %v782_v56, %v767_v49  ;;  %v826_v62 = vadd.f32 %v795_v60, %v768_v55 }
 0x359   :  { %v1495_v63 = vmul.f32 -1.442695, %v825_v61  ;;  %v1496_v0 = vmul.f32 -1.442695, %v826_v62 }
 0x35b   :  { %1619 = vpow2.f32 %v1495_v63 }
 0x35c   :  { %1621 = vpow2.f32 %v1496_v0 }
 0x35d   :  { %v808_v5 = vpop.f32.mrf.mxu2  ;;  %v821_v10 = vpop.f32.mrf.mxu3 }
 0x35e   :  { %v827_v11 = vadd.f32 %v808_v5, %v769_v4  ;;  %v784_v13 = vpop.f32.mrf.mxu0  ;;  %v797_v14 = vpop.f32.mrf.mxu1  ;;  %v828_v27 = vadd.f32 %v821_v10, %v770_v29 }
 0x360   :  { %v1497_v26 = vmul.f32 -1.442695, %v827_v11 }
 0x361   :  { %v1620_v30 = vpop.eup %1619 }
 0x362   :  { %v1622_v40 = vpop.eup %1621  ;;  %v838_v18 = vadd.f32 1.0, %v1620_v30  ;;  %1623 = vpow2.f32 %v1497_v26 }
 0x363   :  { %v839_v35 = vadd.f32 1.0, %v1622_v40 }
 0x364   :  { %1625 = vrcp.f32 %v838_v18  ;;  %v852_v55 = vand.u32 2147483648, %v838_v18  ;;  %v850_v61 = vand.u32 2147483647, %v838_v18  ;;  %vm846_vm2 = vweird.f32 %v838_v18 }
 0x365   :  { %1627 = vrcp.f32 %v839_v35  ;;  %v810_v48 = vpop.f32.mrf.mxu2  ;;  %v823_v43 = vpop.f32.mrf.mxu3  ;;  %v867_v56 = vand.u32 2147483648, %v839_v35  ;;  %v865_v63 = vand.u32 2147483647, %v839_v35  ;;  %vm861_vm3 = vweird.f32 %v839_v35 }
 0x366   :  { %v853_v5 = vor.u32 1.1754944e-38, %v852_v55  ;;  %vm851_vm6 = vcmp.eq.f32.partialorder %v850_v61, 8.507059e+37 }
 0x367   :  { %v868_v11 = vor.u32 1.1754944e-38, %v867_v56  ;;  %vm866_vm7 = vcmp.eq.f32.partialorder %v865_v63, 8.507059e+37 }
 0x368   :  { %v1624_v50 = vpop.eup %1623 }
 0x369   :  { %v840_v31 = vadd.f32 1.0, %v1624_v50 }
 0x36a   :  { %v1626_v51 = vpop.eup %1625 }
 0x36b   :  { %v1628_v22 = vpop.eup %1627  ;;  %v842_v47 = vmul.f32 %v1626_v51, %v838_v18  ;;  %1629 = vrcp.f32 %v840_v31  ;;  %vm847_vm0 = vweird.f32 %v1626_v51  ;;  %vm876_vm9 = vweird.f32 %v840_v31 }
 0x36c   :  { %v857_v52 = vmul.f32 %v1628_v22, %v839_v35  ;;  %1631 = vtanh.f32 %v828_v27  ;;  %vm862_vm1 = vweird.f32 %v1628_v22  ;;  %vm848_vm4 = vmor %vm846_vm2, %vm847_vm0  ;;  %v882_v27 = vand.u32 2147483648, %v840_v31 }
 0x36d   :  { %v843_v15 = vsub.f32 1.0, %v842_v47  ;;  %vm863_vm5 = vmor %vm861_vm3, %vm862_vm1 }
 0x36e   :  { %v858_v49 = vsub.f32 1.0, %v857_v52  ;;  %v883_v52 = vor.u32 1.1754944e-38, %v882_v27 }
 0x36f   :  { %v844_v60 = vmul.f32 %v1626_v51, %v843_v15 }
 0x370   :  { %v859_v62 = vmul.f32 %v1628_v22, %v858_v49 }
 0x371   :  { %v1630_v59 = vpop.eup %1629  ;;  %v845_v0 = vadd.f32 %v1626_v51, %v844_v60 }
 0x372   :  { %v872_v4 = vmul.f32 %v1630_v59, %v840_v31  ;;  %v860_v10 = vadd.f32 %v1628_v22, %v859_v62  ;;  %v1632_v14 = vpop.eup %1631  ;;  %vm877_vm8 = vweird.f32 %v1630_v59 }
 0x373   :  { %v849_v13 = vsel %vm848_vm4, %v1626_v51, %v845_v0  ;;  %v880_v51 = vand.u32 2147483647, %v840_v31  ;;  %vm878_vm10 = vmor %vm876_vm9, %vm877_vm8 }
 0x374   :  { %v873_v26 = vsub.f32 1.0, %v872_v4  ;;  %v854_v30 = vsel %vm851_vm6, %v853_v5, %v849_v13  ;;  %v864_v40 = vsel %vm863_vm5, %v1628_v22, %v860_v10 }
 0x375   :  { %v869_v48 = vsel %vm866_vm7, %v868_v11, %v864_v40  ;;  %v889_v43 = vmul.f32 %v1632_v14, %v854_v30  ;;  %vm881_vm11 = vcmp.eq.f32.partialorder %v880_v51, 8.507059e+37 }
 0x376   :  { %v874_v29 = vmul.f32 %v1630_v59, %v873_v26  ;;  %v888_v50 = vmul.f32 %v869_v48, %v2096_v23 }
 0x378   :  { %v2141_v18 = vadd.f32 %v889_v43, %v888_v50  ;;  %v875_v35 = vadd.f32 %v1630_v59, %v874_v29 }
 0x37a   :  { %1633 = vtanh.f32 %v2141_v18  ;;  %v879_v47 = vsel %vm878_vm10, %v1630_v59, %v875_v35 }
 0x37b   :  { %v884_v15 = vsel %vm881_vm11, %v883_v52, %v879_v47 }
 0x380   :  { %v1634_v22 = vpop.eup %1633 }
 0x381   :  { %v892_v49 = vmul.f32 %v1634_v22, %v884_v15 }
 0x383   :  { %v895_v55 = vpack.c.bf16 %v892_v49, %v892_v49 }
 0x385   :  { %1498 = vst [vmem:[%s2223_s2 + $0x10] sm:$0xf] %v895_v55  ;;  %915 = vmatmul.bf16.vlgmr.msrb.gmra.mxu0 %v895_v55  ;;  %928 = vmatmul.bf16.vlgmr.msrb.gmra.mxu1 %v895_v55 }
 0x386   :  { %941 = vmatmul.bf16.vlgmr.msrb.gmra.mxu2 %v895_v55  ;;  %954 = vmatmul.bf16.vlgmr.msrb.gmra.mxu3 %v895_v55 }
 0x387   :  { %1175 = vmatpush.bf16.msrb.mxu0 %v1795_v3  ;;  %1188 = vmatpush.bf16.msrb.mxu1 %v1797_v7  ;;  %v1499_v3 = vld [vmem:[%s2221_s0 + $0x50] sm:$0xff] }
 0x388   :  { %1201 = vmatpush.bf16.msrb.mxu2 %v1799_v8  ;;  %1214 = vmatpush.bf16.msrb.mxu3 %v1810_v21  ;;  %v901_v7 = vunpack.c.l.bf16 %v1499_v3  ;;  %v902_v8 = vunpack.c.h.bf16 %v1499_v3 }
 0x38b   :  { %1176 = vmatpush.bf16.msrb.mxu0 %v1802_v12  ;;  %1189 = vmatpush.bf16.msrb.mxu1 %v1806_v16 }
 0x38c   :  { %1202 = vmatpush.bf16.msrb.mxu2 %v1808_v17  ;;  %1215 = vmatpush.bf16.msrb.mxu3 %v1822_v34 }
 0x38f   :  { %1177 = vmatpush.bf16.msrb.mxu0 %v1814_v28  ;;  %1190 = vmatpush.bf16.msrb.mxu1 %v1818_v32  ;;  %v1500_v28 = vld [vmem:[%s2221_s0 + $0x58] sm:$0xff] }
 0x390   :  { %1203 = vmatpush.bf16.msrb.mxu2 %v1820_v33  ;;  %1216 = vmatpush.bf16.msrb.mxu3 %v1828_v42  ;;  %v903_v34 = vunpack.c.l.bf16 %v1500_v28 }
 0x393   :  { %1178 = vmatpush.bf16.msrb.mxu0 %v1826_v41  ;;  %1191 = vmatpush.bf16.msrb.mxu1 %v1832_v45 }
 0x394   :  { %1204 = vmatpush.bf16.msrb.mxu2 %v1834_v46  ;;  %1217 = vmatpush.bf16.msrb.mxu3 %v1840_v54 }
 0x397   :  { %1179 = vmatpush.bf16.msrb.mxu0 %v1838_v53  ;;  %1192 = vmatpush.bf16.msrb.mxu1 %v1844_v57 }
 0x398   :  { %1205 = vmatpush.bf16.msrb.mxu2 %v1846_v58  ;;  %1218 = vmatpush.bf16.msrb.mxu3 %v1852_v2 }
 0x39b   :  { %1180 = vmatpush.bf16.msrb.mxu0 %v1850_v1  ;;  %1193 = vmatpush.bf16.msrb.mxu1 %v1856_v6 }
 0x39c   :  { %1206 = vmatpush.bf16.msrb.mxu2 %v1858_v9  ;;  %1219 = vmatpush.bf16.msrb.mxu3 %v1864_v20 }
 0x39f   :  { %1181 = vmatpush.bf16.msrb.mxu0 %v1862_v19  ;;  %1194 = vmatpush.bf16.msrb.mxu1 %v1868_v24  ;;  %v904_v19 = vunpack.c.h.bf16 %v1500_v28  ;;  %v1506_v28 = vld [vmem:[%s2221_s0 + $0x68] sm:$0xff] }
 0x3a0   :  { %1207 = vmatpush.bf16.msrb.mxu2 %v1870_v25  ;;  %1220 = vmatpush.bf16.msrb.mxu3 %v1876_v37 }
 0x3a3   :  { %1182 = vmatpush.bf16.msrb.mxu0 %v1874_v36  ;;  %1195 = vmatpush.bf16.msrb.mxu1 %v1880_v38 }
 0x3a4   :  { %1208 = vmatpush.bf16.msrb.mxu2 %v1882_v39  ;;  %1221 = vmatpush.bf16.msrb.mxu3 %v1888_v44 }
 0x402   :  { %v916_v12 = vpop.f32.mrf.mxu0  ;;  %v929_v16 = vpop.f32.mrf.mxu1 }
 0x403   :  { %v959_v17 = vadd.f32 %v916_v12, %v901_v7  ;;  %v960_v21 = vadd.f32 %v929_v16, %v902_v8 }
 0x405   :  { %v1501_v32 = vmul.f32 -1.442695, %v959_v17  ;;  %v1502_v33 = vmul.f32 -1.442695, %v960_v21 }
 0x407   :  { %1635 = vpow2.f32 %v1501_v32 }
 0x408   :  { %1637 = vpow2.f32 %v1502_v33 }
 0x409   :  { %v942_v41 = vpop.f32.mrf.mxu2  ;;  %v955_v42 = vpop.f32.mrf.mxu3 }
 0x40a   :  { %v961_v45 = vadd.f32 %v942_v41, %v903_v34  ;;  %v918_v46 = vpop.f32.mrf.mxu0  ;;  %v931_v53 = vpop.f32.mrf.mxu1  ;;  %v962_v36 = vadd.f32 %v955_v42, %v904_v19  ;;  %v1037_v34 = vunpack.c.l.bf16 %v1506_v28  ;;  %v1038_v19 = vunpack.c.h.bf16 %v1506_v28  ;;  %v1512_v28 = vld [vmem:[%s2221_s0 + $0x78] sm:$0xff] }
 0x40c   :  { %v1503_v54 = vmul.f32 -1.442695, %v961_v45 }
 0x40d   :  { %v1636_v57 = vpop.eup %1635 }
 0x40e   :  { %v1638_v58 = vpop.eup %1637  ;;  %v972_v1 = vadd.f32 1.0, %v1636_v57  ;;  %1639 = vpow2.f32 %v1503_v54 }
 0x40f   :  { %v973_v2 = vadd.f32 1.0, %v1638_v58 }
 0x410   :  { %1641 = vrcp.f32 %v972_v1  ;;  %v986_v31 = vand.u32 2147483648, %v972_v1  ;;  %v984_v61 = vand.u32 2147483647, %v972_v1  ;;  %vm980_vm14 = vweird.f32 %v972_v1 }
 0x411   :  { %1643 = vrcp.f32 %v973_v2  ;;  %v944_v6 = vpop.f32.mrf.mxu2  ;;  %v957_v9 = vpop.f32.mrf.mxu3  ;;  %v1001_v56 = vand.u32 2147483648, %v973_v2  ;;  %v999_v63 = vand.u32 2147483647, %v973_v2  ;;  %vm995_vm15 = vweird.f32 %v973_v2 }
 0x412   :  { %v987_v5 = vor.u32 1.1754944e-38, %v986_v31  ;;  %vm985_vm2 = vcmp.eq.f32.partialorder %v984_v61, 8.507059e+37 }
 0x413   :  { %v1002_v11 = vor.u32 1.1754944e-38, %v1001_v56  ;;  %vm1000_vm3 = vcmp.eq.f32.partialorder %v999_v63, 8.507059e+37 }
 0x414   :  { %v1640_v20 = vpop.eup %1639 }
 0x415   :  { %v974_v24 = vadd.f32 1.0, %v1640_v20 }
 0x416   :  { %v1642_v25 = vpop.eup %1641 }
 0x417   :  { %v1644_v37 = vpop.eup %1643  ;;  %v976_v38 = vmul.f32 %v1642_v25, %v972_v1  ;;  %1645 = vrcp.f32 %v974_v24  ;;  %vm981_vm12 = vweird.f32 %v1642_v25  ;;  %v1016_v51 = vand.u32 2147483648, %v974_v24 }
 0x418   :  { %v991_v39 = vmul.f32 %v1644_v37, %v973_v2  ;;  %1647 = vtanh.f32 %v962_v36  ;;  %vm996_vm13 = vweird.f32 %v1644_v37  ;;  %vm982_vm0 = vmor %vm980_vm14, %vm981_vm12  ;;  %vm1010_vm5 = vweird.f32 %v974_v24 }
 0x419   :  { %v977_v44 = vsub.f32 1.0, %v976_v38  ;;  %vm997_vm1 = vmor %vm995_vm15, %vm996_vm13  ;;  %v1014_v47 = vand.u32 2147483647, %v974_v24  ;;  %v1017_v22 = vor.u32 1.1754944e-38, %v1016_v51 }
 0x41a   :  { %v992_v23 = vsub.f32 1.0, %v991_v39 }
 0x41b   :  { %v978_v60 = vmul.f32 %v1642_v25, %v977_v44  ;;  %vm1015_vm7 = vcmp.eq.f32.partialorder %v1014_v47, 8.507059e+37 }
 0x41c   :  { %v993_v62 = vmul.f32 %v1644_v37, %v992_v23 }
 0x41d   :  { %v1646_v59 = vpop.eup %1645  ;;  %v979_v0 = vadd.f32 %v1642_v25, %v978_v60 }
 0x41e   :  { %v1006_v4 = vmul.f32 %v1646_v59, %v974_v24  ;;  %v994_v10 = vadd.f32 %v1644_v37, %v993_v62  ;;  %v1648_v14 = vpop.eup %1647  ;;  %vm1011_vm4 = vweird.f32 %v1646_v59 }
 0x41f   :  { %v983_v13 = vsel %vm982_vm0, %v1642_v25, %v979_v0  ;;  %vm1012_vm6 = vmor %vm1010_vm5, %vm1011_vm4 }
 0x420   :  { %v1007_v26 = vsub.f32 1.0, %v1006_v4  ;;  %v988_v30 = vsel %vm985_vm2, %v987_v5, %v983_v13  ;;  %v998_v40 = vsel %vm997_vm1, %v1644_v37, %v994_v10 }
 0x421   :  { %v1003_v48 = vsel %vm1000_vm3, %v1002_v11, %v998_v40  ;;  %v1023_v43 = vmul.f32 %v1648_v14, %v988_v30 }
 0x422   :  { %v1008_v29 = vmul.f32 %v1646_v59, %v1007_v26  ;;  %v1022_v50 = vmul.f32 %v1003_v48, %v2141_v18  ;;  %v1505_v18 = vld [vmem:[%s2221_s0 + $0x60] sm:$0xff] }
 0x423   :  { %v1035_v7 = vunpack.c.l.bf16 %v1505_v18  ;;  %v1036_v8 = vunpack.c.h.bf16 %v1505_v18 }
 0x424   :  { %v2186_v35 = vadd.f32 %v1023_v43, %v1022_v50  ;;  %v1009_v27 = vadd.f32 %v1646_v59, %v1008_v29 }
 0x426   :  { %1649 = vtanh.f32 %v2186_v35  ;;  %v1013_v52 = vsel %vm1012_vm6, %v1646_v59, %v1009_v27 }
 0x427   :  { %v1018_v49 = vsel %vm1015_vm7, %v1017_v22, %v1013_v52 }
 0x42c   :  { %v1650_v15 = vpop.eup %1649 }
 0x42d   :  { %v1026_v55 = vmul.f32 %v1650_v15, %v1018_v49 }
 0x42f   :  { %v1029_v3 = vpack.c.bf16 %v1026_v55, %v1026_v55 }
 0x431   :  { %1504 = vst [vmem:[%s2223_s2 + $0x14] sm:$0xf] %v1029_v3  ;;  %1049 = vmatmul.bf16.vlgmr.msra.gmra.mxu0 %v1029_v3  ;;  %1062 = vmatmul.bf16.vlgmr.msra.gmra.mxu1 %v1029_v3 }
 0x432   :  { %1075 = vmatmul.bf16.vlgmr.msra.gmra.mxu2 %v1029_v3  ;;  %1088 = vmatmul.bf16.vlgmr.msra.gmra.mxu3 %v1029_v3 }
 0x4ae   :  { %v1050_v12 = vpop.f32.mrf.mxu0  ;;  %v1063_v16 = vpop.f32.mrf.mxu1 }
 0x4af   :  { %v1093_v17 = vadd.f32 %v1050_v12, %v1035_v7  ;;  %v1094_v21 = vadd.f32 %v1063_v16, %v1036_v8 }
 0x4b1   :  { %v1507_v32 = vmul.f32 -1.442695, %v1093_v17  ;;  %v1508_v33 = vmul.f32 -1.442695, %v1094_v21 }
 0x4b3   :  { %1651 = vpow2.f32 %v1507_v32 }
 0x4b4   :  { %1653 = vpow2.f32 %v1508_v33 }
 0x4b5   :  { %v1076_v41 = vpop.f32.mrf.mxu2  ;;  %v1089_v42 = vpop.f32.mrf.mxu3 }
 0x4b6   :  { %v1095_v45 = vadd.f32 %v1076_v41, %v1037_v34  ;;  %v1052_v46 = vpop.f32.mrf.mxu0  ;;  %v1065_v53 = vpop.f32.mrf.mxu1  ;;  %v1096_v36 = vadd.f32 %v1089_v42, %v1038_v19  ;;  %v1171_v34 = vunpack.c.l.bf16 %v1512_v28  ;;  %v1172_v19 = vunpack.c.h.bf16 %v1512_v28 }
 0x4b8   :  { %v1509_v54 = vmul.f32 -1.442695, %v1095_v45 }
 0x4b9   :  { %v1652_v57 = vpop.eup %1651 }
 0x4ba   :  { %v1654_v58 = vpop.eup %1653  ;;  %v1106_v1 = vadd.f32 1.0, %v1652_v57  ;;  %1655 = vpow2.f32 %v1509_v54 }
 0x4bb   :  { %v1107_v2 = vadd.f32 1.0, %v1654_v58 }
 0x4bc   :  { %1657 = vrcp.f32 %v1106_v1  ;;  %v1120_v31 = vand.u32 2147483648, %v1106_v1  ;;  %v1118_v61 = vand.u32 2147483647, %v1106_v1  ;;  %vm1114_vm10 = vweird.f32 %v1106_v1 }
 0x4bd   :  { %1659 = vrcp.f32 %v1107_v2  ;;  %v1078_v6 = vpop.f32.mrf.mxu2  ;;  %v1091_v9 = vpop.f32.mrf.mxu3  ;;  %v1135_v56 = vand.u32 2147483648, %v1107_v2  ;;  %v1133_v63 = vand.u32 2147483647, %v1107_v2  ;;  %vm1129_vm11 = vweird.f32 %v1107_v2 }
 0x4be   :  { %v1121_v5 = vor.u32 1.1754944e-38, %v1120_v31  ;;  %vm1119_vm14 = vcmp.eq.f32.partialorder %v1118_v61, 8.507059e+37 }
 0x4bf   :  { %v1136_v11 = vor.u32 1.1754944e-38, %v1135_v56  ;;  %vm1134_vm15 = vcmp.eq.f32.partialorder %v1133_v63, 8.507059e+37 }
 0x4c0   :  { %v1656_v20 = vpop.eup %1655 }
 0x4c1   :  { %v1108_v24 = vadd.f32 1.0, %v1656_v20 }
 0x4c2   :  { %v1658_v25 = vpop.eup %1657 }
 0x4c3   :  { %v1660_v37 = vpop.eup %1659  ;;  %v1110_v38 = vmul.f32 %v1658_v25, %v1106_v1  ;;  %1661 = vrcp.f32 %v1108_v24  ;;  %vm1115_vm8 = vweird.f32 %v1658_v25  ;;  %v1150_v47 = vand.u32 2147483648, %v1108_v24 }
 0x4c4   :  { %v1125_v39 = vmul.f32 %v1660_v37, %v1107_v2  ;;  %1663 = vtanh.f32 %v1096_v36  ;;  %vm1130_vm9 = vweird.f32 %v1660_v37  ;;  %vm1116_vm12 = vmor %vm1114_vm10, %vm1115_vm8  ;;  %vm1144_vm1 = vweird.f32 %v1108_v24 }
 0x4c5   :  { %v1111_v44 = vsub.f32 1.0, %v1110_v38  ;;  %vm1131_vm13 = vmor %vm1129_vm11, %vm1130_vm9  ;;  %v1148_v52 = vand.u32 2147483647, %v1108_v24  ;;  %v1151_v15 = vor.u32 1.1754944e-38, %v1150_v47 }
 0x4c6   :  { %v1126_v23 = vsub.f32 1.0, %v1125_v39 }
 0x4c7   :  { %v1112_v60 = vmul.f32 %v1658_v25, %v1111_v44  ;;  %vm1149_vm3 = vcmp.eq.f32.partialorder %v1148_v52, 8.507059e+37 }
 0x4c8   :  { %v1127_v62 = vmul.f32 %v1660_v37, %v1126_v23 }
 0x4c9   :  { %v1662_v59 = vpop.eup %1661  ;;  %v1113_v0 = vadd.f32 %v1658_v25, %v1112_v60 }
 0x4ca   :  { %v1140_v4 = vmul.f32 %v1662_v59, %v1108_v24  ;;  %v1128_v10 = vadd.f32 %v1660_v37, %v1127_v62  ;;  %v1664_v14 = vpop.eup %1663  ;;  %vm1145_vm0 = vweird.f32 %v1662_v59 }
 0x4cb   :  { %v1117_v13 = vsel %vm1116_vm12, %v1658_v25, %v1113_v0  ;;  %vm1146_vm2 = vmor %vm1144_vm1, %vm1145_vm0 }
 0x4cc   :  { %v1141_v26 = vsub.f32 1.0, %v1140_v4  ;;  %v1122_v30 = vsel %vm1119_vm14, %v1121_v5, %v1117_v13  ;;  %v1132_v40 = vsel %vm1131_vm13, %v1660_v37, %v1128_v10 }
 0x4cd   :  { %v1137_v48 = vsel %vm1134_vm15, %v1136_v11, %v1132_v40  ;;  %v1157_v43 = vmul.f32 %v1664_v14, %v1122_v30 }
 0x4ce   :  { %v1142_v29 = vmul.f32 %v1662_v59, %v1141_v26  ;;  %v1156_v50 = vmul.f32 %v1137_v48, %v2186_v35  ;;  %v1511_v35 = vld [vmem:[%s2221_s0 + $0x70] sm:$0xff]  ;;  %s1765_s0 = smov [#allocation8]  }
 0x4cf   :  { %v1169_v7 = vunpack.c.l.bf16 %v1511_v35  ;;  %v1170_v8 = vunpack.c.h.bf16 %v1511_v35  ;;  %s1325_s14 = sshll.u32 %s1765_s0, 4  ;;  %s1326_s14 = int_to_ptr.vmem [resolvable:$true] %s1325_s14 }
 0x4d0   :  { %v2199_v27 = vadd.f32 %v1157_v43, %v1156_v50  ;;  %v1143_v51 = vadd.f32 %v1662_v59, %v1142_v29 }
 0x4d2   :  { %1665 = vtanh.f32 %v2199_v27  ;;  %v1147_v22 = vsel %vm1146_vm2, %v1662_v59, %v1143_v51 }
 0x4d3   :  { %v1152_v55 = vsel %vm1149_vm3, %v1151_v15, %v1147_v22 }
 0x4d8   :  { %v1666_v49 = vpop.eup %1665 }
 0x4d9   :  { %v1160_v3 = vmul.f32 %v1666_v49, %v1152_v55 }
 0x4db   :  { %v1163_v18 = vpack.c.bf16 %v1160_v3, %v1160_v3 }
 0x4dd   :  { %1510 = vst [vmem:[%s2223_s2 + $0x18] sm:$0xf] %v1163_v18  ;;  %1183 = vmatmul.bf16.vlgmr.msrb.gmra.mxu0 %v1163_v18  ;;  %1196 = vmatmul.bf16.vlgmr.msrb.gmra.mxu1 %v1163_v18 }
 0x4de   :  { %1209 = vmatmul.bf16.vlgmr.msrb.gmra.mxu2 %v1163_v18  ;;  %1222 = vmatmul.bf16.vlgmr.msrb.gmra.mxu3 %v1163_v18 }
 0x55a   :  { %v1184_v12 = vpop.f32.mrf.mxu0  ;;  %v1197_v16 = vpop.f32.mrf.mxu1 }
 0x55b   :  { %v1227_v17 = vadd.f32 %v1184_v12, %v1169_v7  ;;  %v1228_v21 = vadd.f32 %v1197_v16, %v1170_v8 }
 0x55d   :  { %v1513_v32 = vmul.f32 -1.442695, %v1227_v17  ;;  %v1514_v33 = vmul.f32 -1.442695, %v1228_v21 }
 0x55f   :  { %1667 = vpow2.f32 %v1513_v32 }
 0x560   :  { %1669 = vpow2.f32 %v1514_v33 }
 0x561   :  { %v1210_v41 = vpop.f32.mrf.mxu2  ;;  %v1223_v42 = vpop.f32.mrf.mxu3 }
 0x562   :  { %v1229_v45 = vadd.f32 %v1210_v41, %v1171_v34  ;;  %v1186_v46 = vpop.f32.mrf.mxu0  ;;  %v1199_v53 = vpop.f32.mrf.mxu1  ;;  %v1230_v36 = vadd.f32 %v1223_v42, %v1172_v19 }
 0x564   :  { %v1515_v54 = vmul.f32 -1.442695, %v1229_v45 }
 0x565   :  { %v1668_v57 = vpop.eup %1667 }
 0x566   :  { %v1670_v58 = vpop.eup %1669  ;;  %v1240_v1 = vadd.f32 1.0, %v1668_v57  ;;  %1671 = vpow2.f32 %v1515_v54 }
 0x567   :  { %v1241_v2 = vadd.f32 1.0, %v1670_v58 }
 0x568   :  { %1673 = vrcp.f32 %v1240_v1  ;;  %v1254_v31 = vand.u32 2147483648, %v1240_v1  ;;  %v1252_v61 = vand.u32 2147483647, %v1240_v1  ;;  %vm1248_vm6 = vweird.f32 %v1240_v1 }
 0x569   :  { %1675 = vrcp.f32 %v1241_v2  ;;  %v1212_v6 = vpop.f32.mrf.mxu2  ;;  %v1225_v9 = vpop.f32.mrf.mxu3  ;;  %v1269_v56 = vand.u32 2147483648, %v1241_v2  ;;  %v1267_v63 = vand.u32 2147483647, %v1241_v2  ;;  %vm1263_vm7 = vweird.f32 %v1241_v2 }
 0x56a   :  { %v1255_v5 = vor.u32 1.1754944e-38, %v1254_v31  ;;  %vm1253_vm10 = vcmp.eq.f32.partialorder %v1252_v61, 8.507059e+37 }
 0x56b   :  { %v1270_v11 = vor.u32 1.1754944e-38, %v1269_v56  ;;  %vm1268_vm11 = vcmp.eq.f32.partialorder %v1267_v63, 8.507059e+37 }
 0x56c   :  { %v1672_v20 = vpop.eup %1671 }
 0x56d   :  { %v1242_v24 = vadd.f32 1.0, %v1672_v20 }
 0x56e   :  { %v1674_v25 = vpop.eup %1673 }
 0x56f   :  { %v1676_v37 = vpop.eup %1675  ;;  %v1244_v38 = vmul.f32 %v1674_v25, %v1240_v1  ;;  %1677 = vrcp.f32 %v1242_v24  ;;  %vm1249_vm4 = vweird.f32 %v1674_v25  ;;  %v1284_v52 = vand.u32 2147483648, %v1242_v24 }
 0x570   :  { %v1259_v39 = vmul.f32 %v1676_v37, %v1241_v2  ;;  %1679 = vtanh.f32 %v1230_v36  ;;  %vm1264_vm5 = vweird.f32 %v1676_v37  ;;  %vm1250_vm8 = vmor %vm1248_vm6, %vm1249_vm4  ;;  %vm1278_vm13 = vweird.f32 %v1242_v24 }
 0x571   :  { %v1245_v44 = vsub.f32 1.0, %v1244_v38  ;;  %vm1265_vm9 = vmor %vm1263_vm7, %vm1264_vm5  ;;  %v1282_v22 = vand.u32 2147483647, %v1242_v24  ;;  %v1285_v49 = vor.u32 1.1754944e-38, %v1284_v52 }
 0x572   :  { %v1260_v23 = vsub.f32 1.0, %v1259_v39 }
 0x573   :  { %v1246_v60 = vmul.f32 %v1674_v25, %v1245_v44  ;;  %vm1283_vm15 = vcmp.eq.f32.partialorder %v1282_v22, 8.507059e+37 }
 0x574   :  { %v1261_v62 = vmul.f32 %v1676_v37, %v1260_v23 }
 0x575   :  { %v1678_v59 = vpop.eup %1677  ;;  %v1247_v0 = vadd.f32 %v1674_v25, %v1246_v60 }
 0x576   :  { %v1274_v4 = vmul.f32 %v1678_v59, %v1242_v24  ;;  %v1262_v10 = vadd.f32 %v1676_v37, %v1261_v62  ;;  %v1680_v14 = vpop.eup %1679  ;;  %vm1279_vm12 = vweird.f32 %v1678_v59 }
 0x577   :  { %v1251_v13 = vsel %vm1250_vm8, %v1674_v25, %v1247_v0  ;;  %vm1280_vm14 = vmor %vm1278_vm13, %vm1279_vm12 }
 0x578   :  { %v1275_v26 = vsub.f32 1.0, %v1274_v4  ;;  %v1256_v30 = vsel %vm1253_vm10, %v1255_v5, %v1251_v13  ;;  %v1266_v40 = vsel %vm1265_vm9, %v1676_v37, %v1262_v10 }
 0x579   :  { %v1271_v48 = vsel %vm1268_vm11, %v1270_v11, %v1266_v40  ;;  %v1291_v43 = vmul.f32 %v1680_v14, %v1256_v30 }
 0x57a   :  { %v1290_v29 = vmul.f32 %v1271_v48, %v2199_v27  ;;  %v1276_v50 = vmul.f32 %v1678_v59, %v1275_v26 }
 0x57c   :  { %v1292_v51 = vadd.f32 %v1291_v43, %v1290_v29  ;;  %v1277_v47 = vadd.f32 %v1678_v59, %v1276_v50 }
 0x57e   :  { %1681 = vtanh.f32 %v1292_v51  ;;  %1306 = vst [vmem:[#allocation8] sm:$0xff] %v1292_v51  ;;  %v1281_v15 = vsel %vm1280_vm14, %v1678_v59, %v1277_v47 }
 0x57f   :  { %1330 = dma.vmem_to_hbm [thread:$0]  %s1326_s14, 128, %s1328_s17, [#allocation9]   ;;  %v1286_v55 = vsel %vm1283_vm15, %v1285_v49, %v1281_v15 }
 0x584   :  { %v1682_v27 = vpop.eup %1681 }
 0x585   :  { %v1294_v3 = vmul.f32 %v1682_v27, %v1286_v55 }
 0x587   :  { %v1297_v18 = vpack.c.bf16 %v1294_v3, %v1294_v3  ;;  %1304 = vst [vmem:[#allocation7] sm:$0xff] %v1294_v3 }
 0x588   :  { %1319 = dma.vmem_to_hbm [thread:$0]  %s1315_s19, 128, %s1317_s21, [#allocation6]  }
 0x589   :  { %1516 = vst [vmem:[%s2223_s2 + $0x1c] sm:$0xf] %v1297_v18 }
 0x58a   :  { %1757 = dma.done.wait [#allocation6], 128  }
 0x58b   :  { %1758 = vsyncadd [#allocation6], 4294967168 }
 0x58c   :  { %1759 = dma.done.wait [#allocation9], 128  }
 0x58d   :  { %1760 = vsyncadd [#allocation9], 4294967168 }
 0x58e   :  { %1341 = vsyncpa [#allocation5], 1 }
 0x58f   :  { %1342 = vsyncpa [#allocation6], 1 }
 0x590   :  { %1343 = vsyncpa [#allocation9], 1 }

</bundles_post_ra>
